<compile_context>
chip_gen: v7x
topology: tpu7x:2x2x1
jax: 0.10.0
libtpu: 0.0.40
codegen_flags: <defaults>
</compile_context>

<pallas_src>
import functools

import jax
import jax.numpy as jnp
from jax.experimental import pallas as pl
from jax.experimental.pallas import tpu as pltpu

K = 3      # conv kernel size
PAD = 1    # "same" padding
LANE = 128
SUB = 8


def _rup(x, m):
    return ((x + m - 1) // m) * m


# ----------------------------------------------------------------------------
# im2col (wrapper-side): patches laid out (N, H*W, C*K*K), column index
# = c*K*K + (kh*K + kw), matching conv_w.reshape(D, C*K*K)
# ----------------------------------------------------------------------------
def _im2col(x_nchw):
    n, c, h, w = x_nchw.shape
    xp = jnp.pad(x_nchw, ((0, 0), (0, 0), (PAD, PAD), (PAD, PAD)))
    cols = []
    for dh in range(K):
        for dw in range(K):
            cols.append(xp[:, :, dh:dh + h, dw:dw + w])            # (N, C, H, W)
    patches = jnp.stack(cols, axis=2)                              # (N, C, K*K, H, W)
    patches = patches.transpose(0, 3, 4, 1, 2).reshape(n, h * w, c * K * K)
    return patches


# ----------------------------------------------------------------------------
# Fused kernel: conv-as-matmul (bias folded) + ReLU + combined pooling matmul
# (prototype class-means + query GAP) + gemm-form euclidean cdist + negate.
# ----------------------------------------------------------------------------
def _fused_proto_kernel(patches_ref, w_ref, mpool_ref, out_ref, *,
                        p_pad, n_way, n_query):
    # patches: (NT*HW, CK2+1)  w: (CK2+1, Dp)  mpool: (p_pad+q_pad, NT*HW)
    # out: (Q, P)
    y = jnp.maximum(
        jnp.dot(patches_ref[...], w_ref[...],
                preferred_element_type=jnp.float32), 0.0)              # (NT*HW, Dp)

    # one pooling matmul: rows [0, p_pad) are class-mean prototypes (first
    # n_way valid), rows [p_pad, ...) are query GAP embeddings (first Q valid);
    # padded rows are exactly zero.
    pooled = jnp.dot(mpool_ref[...], y,
                     preferred_element_type=jnp.float32)               # (p_pad+q_pad, Dp)
    proto = pooled[:p_pad, :]                                          # (p_pad, Dp)
    zq = pooled[p_pad:, :]                                             # (q_pad, Dp)

    # torch.cdist (p=2) via gemm identity; clamp tiny negatives before sqrt.
    cross = jax.lax.dot_general(zq, proto, (((1,), (1,)), ((), ())),
                                preferred_element_type=jnp.float32)    # (q_pad, p_pad)
    qn = jnp.sum(zq * zq, axis=-1, keepdims=True)                      # (q_pad, 1)
    ones_row = jnp.ones((1, proto.shape[1]), jnp.float32)
    pn = jax.lax.dot_general(ones_row, proto * proto,
                             (((1,), (1,)), ((), ())),
                             preferred_element_type=jnp.float32)       # (1, p_pad)
    d2 = jnp.maximum(qn + pn - 2.0 * cross, 0.0)                       # (q_pad, p_pad)
    out_ref[...] = -jnp.sqrt(d2[:n_query, :n_way])                     # scores (Q, P)


def prototypical_forward(support_images, support_labels, query_images,
                         conv_w, conv_b, n_way):
    # n_way = len(unique(support_labels)) -- supplied statically by the caller.
    s, c, h, w = support_images.shape
    q = query_images.shape[0]
    nt, hw = s + q, h * w
    d = conv_w.shape[0]
    ck2 = c * K * K
    d_pad = max(LANE, _rup(d, LANE))        # lane-dense channel dim
    rows = nt * hw
    p_pad, q_pad = _rup(n_way, SUB), _rup(q, SUB)

    images = jnp.concatenate([support_images, query_images], axis=0)
    patches = _im2col(images).astype(jnp.float32).reshape(rows, ck2)   # (NT*HW, CK2)
    patches = jnp.concatenate(
        [patches, jnp.ones((rows, 1), jnp.float32)], axis=1)           # bias column

    w_mat = conv_w.reshape(d, ck2).T.astype(jnp.float32)               # (CK2, D)
    w_mat = jnp.pad(w_mat, ((0, 0), (0, d_pad - d)))                   # zero channels
    b_row = jnp.pad(conv_b.astype(jnp.float32).reshape(1, d),
                    ((0, 0), (0, d_pad - d)))                          # (1, Dp)
    w_aug = jnp.concatenate([w_mat, b_row], axis=0)                    # (CK2+1, Dp)

    # pre-normalized pooling matrix: class-mean * GAP fused for prototypes
    # (counts clamped >= 1), plain GAP for queries, padded to sublane multiples.
    onehot = (support_labels[None, :]
              == jnp.arange(n_way, dtype=support_labels.dtype)[:, None]
              ).astype(jnp.float32)                                    # (P, S)
    counts = jnp.maximum(onehot.sum(axis=1, keepdims=True), 1.0)       # (P, 1)
    m_proto = jnp.concatenate(
        [jnp.repeat(onehot / (counts * hw), hw, axis=1),
         jnp.zeros((n_way, q * hw), jnp.float32)], axis=1)             # (P, NT*HW)
    m_query = jnp.concatenate(
        [jnp.zeros((q, s * hw), jnp.float32),
         jnp.repeat(jnp.eye(q, dtype=jnp.float32) / hw, hw, axis=1)],
        axis=1)                                                        # (Q, NT*HW)
    m_pool = jnp.zeros((p_pad + q_pad, rows), jnp.float32)
    m_pool = m_pool.at[:n_way].set(m_proto).at[p_pad:p_pad + q].set(m_query)

    kernel = functools.partial(_fused_proto_kernel,
                               p_pad=p_pad, n_way=n_way, n_query=q)
    scores = pl.pallas_call(
        kernel,
        out_shape=jax.ShapeDtypeStruct((q, n_way), jnp.float32),
        grid=(1,),
        in_specs=[
            pl.BlockSpec((rows, ck2 + 1), lambda i: (0, 0)),
            pl.BlockSpec((ck2 + 1, d_pad), lambda i: (0, 0)),
            pl.BlockSpec((p_pad + q_pad, rows), lambda i: (0, 0)),
        ],
        out_specs=pl.BlockSpec((q, n_way), lambda i: (0, 0)),
        compiler_params=pltpu.CompilerParams(dimension_semantics=("arbitrary",)),
    )(patches, w_aug, m_pool)
    return scores


# ----------------------------------------------------------------------------
# Pure-JAX reference (silent sanity check)
# ----------------------------------------------------------------------------
def _reference_forward(support_images, support_labels, query_images,
                       conv_w, conv_b, n_way):
    def embed(x):
        n, c, h, w = x.shape
        d = conv_w.shape[0]
        p = _im2col(x).astype(jnp.float32)
        y = p @ conv_w.reshape(d, c * K * K).T.astype(jnp.float32) + conv_b[None, None, :]
        y = jnp.maximum(y, 0.0)
        return y.mean(axis=1)
    zs, zq = embed(support_images), embed(query_images)
    protos = jnp.stack([zs[support_labels == l].mean(axis=0) for l in range(n_way)])
    dists = jnp.sqrt(jnp.sum((zq[:, None, :] - protos[None, :, :]) ** 2, axis=-1))
    return -dists


if __name__ == "__main__":
    key = jax.random.PRNGKey(0)
    k_w, k_b, k_s, k_q = jax.random.split(key, 4)

    n_way, n_shot, n_query_per_class = 3, 2, 2
    C_in, H, W, D = 4, 16, 16, 32
    S = n_way * n_shot
    Q = n_way * n_query_per_class

    # deterministic "backbone" parameters (Conv2d(C_in, D, 3, padding=1))
    conv_w = 0.1 * jax.random.normal(k_w, (D, C_in, K, K), dtype=jnp.float32)
    conv_b = 0.05 * jax.random.normal(k_b, (D,), dtype=jnp.float32)

    support_images = jax.random.normal(k_s, (S, C_in, H, W), dtype=jnp.float32)
    query_images = jax.random.normal(k_q, (Q, C_in, H, W), dtype=jnp.float32)
    support_labels = jnp.array([0, 0, 1, 1, 2, 2], dtype=jnp.int32)   # 0..n_way-1

    scores = prototypical_forward(support_images, support_labels, query_images,
                                  conv_w, conv_b, n_way)
    scores = jax.block_until_ready(scores)

    ref = _reference_forward(support_images, support_labels, query_images,
                             conv_w, conv_b, n_way)
    assert scores.shape == (Q, n_way)
    assert jnp.allclose(scores, ref, rtol=1e-2, atol=1e-2)

    print("KERNEL_OK")
</pallas_src>

<mosaic_0001>
module attributes {stable_mosaic.version = 11 : i64} {
  func.func @_fused_proto_kernel(%arg0: i32, %arg1: memref<3072x37xf32, #tpu.memory_space<vmem>>, %arg2: memref<37x128xf32, #tpu.memory_space<vmem>>, %arg3: memref<16x3072xf32, #tpu.memory_space<vmem>>, %arg4: memref<6x3xf32, #tpu.memory_space<vmem>>) attributes {dimension_semantics = [#tpu.dimension_semantics<arbitrary>], iteration_bounds = array<i64: 1>, scalar_prefetch = 0 : i64, scratch_operands = 0 : i64, tpu.core_type = #tpu.core_type<tc>, window_params = [{pipeline_mode = #tpu.pipeline_mode<synchronous>, transform_indices = @transform_0, window_bounds = array<i64: 3072, 37>}, {pipeline_mode = #tpu.pipeline_mode<synchronous>, transform_indices = @transform_1, window_bounds = array<i64: 37, 128>}, {pipeline_mode = #tpu.pipeline_mode<synchronous>, transform_indices = @transform_2, window_bounds = array<i64: 16, 3072>}, {pipeline_mode = #tpu.pipeline_mode<synchronous>, transform_indices = @transform_3, window_bounds = array<i64: 6, 3>}]} {
    %c0 = arith.constant 0 : index
    %c0_0 = arith.constant 0 : index
    %0 = vector.load %arg1[%c0, %c0_0] : memref<3072x37xf32, #tpu.memory_space<vmem>>, vector<3072x37xf32>
    %c0_1 = arith.constant 0 : index
    %c0_2 = arith.constant 0 : index
    %1 = vector.load %arg2[%c0_1, %c0_2] : memref<37x128xf32, #tpu.memory_space<vmem>>, vector<37x128xf32>
    %cst = arith.constant dense<0.000000e+00> : vector<3072x128xf32>
    %2 = tpu.matmul %0, %1, %cst {dimension_numbers = #tpu.dot_dimension_numbers<[1], [0], [0], [1], [0, 0, 1, 1], [], []>} : vector<3072x37xf32>, vector<37x128xf32>, vector<3072x128xf32> -> vector<3072x128xf32>
    %cst_3 = arith.constant 0.000000e+00 : f32
    %3 = vector.broadcast %cst_3 : f32 to vector<3072x128xf32>
    %4 = arith.maximumf %2, %3 : vector<3072x128xf32>
    %c0_4 = arith.constant 0 : index
    %c0_5 = arith.constant 0 : index
    %5 = vector.load %arg3[%c0_4, %c0_5] : memref<16x3072xf32, #tpu.memory_space<vmem>>, vector<16x3072xf32>
    %cst_6 = arith.constant dense<0.000000e+00> : vector<16x128xf32>
    %6 = tpu.matmul %5, %4, %cst_6 {dimension_numbers = #tpu.dot_dimension_numbers<[1], [0], [0], [1], [0, 0, 1, 1], [], []>} : vector<16x3072xf32>, vector<3072x128xf32>, vector<16x128xf32> -> vector<16x128xf32>
    %7 = vector.extract_strided_slice %6 {offsets = [0, 0], sizes = [8, 128], strides = [1, 1]} : vector<16x128xf32> to vector<8x128xf32>
    %8 = vector.extract_strided_slice %6 {offsets = [8, 0], sizes = [8, 128], strides = [1, 1]} : vector<16x128xf32> to vector<8x128xf32>
    %cst_7 = arith.constant dense<0.000000e+00> : vector<8x8xf32>
    %9 = tpu.matmul %8, %7, %cst_7 {dimension_numbers = #tpu.dot_dimension_numbers<[1], [1], [0], [0], [0, 0, 1, 0], [], []>} : vector<8x128xf32>, vector<8x128xf32>, vector<8x8xf32> -> vector<8x8xf32>
    %10 = arith.mulf %8, %8 : vector<8x128xf32>
    %cst_8 = arith.constant dense<0.000000e+00> : vector<8xf32>
    %11 = vector.multi_reduction <add>, %10, %cst_8 [1] : vector<8x128xf32> to vector<8xf32>
    %12 = vector.shape_cast %11 : vector<8xf32> to vector<8x1xf32>
    %cst_9 = arith.constant 1.000000e+00 : f32
    %13 = vector.broadcast %cst_9 : f32 to vector<1x128xf32>
    %14 = arith.mulf %7, %7 : vector<8x128xf32>
    %cst_10 = arith.constant dense<0.000000e+00> : vector<1x8xf32>
    %15 = tpu.matmul %13, %14, %cst_10 {dimension_numbers = #tpu.dot_dimension_numbers<[1], [1], [0], [0], [0, 0, 1, 0], [], []>} : vector<1x128xf32>, vector<8x128xf32>, vector<1x8xf32> -> vector<1x8xf32>
    %16 = vector.broadcast %12 : vector<8x1xf32> to vector<8x8xf32>
    %17 = vector.broadcast %15 : vector<1x8xf32> to vector<8x8xf32>
    %18 = arith.addf %16, %17 : vector<8x8xf32>
    %cst_11 = arith.constant 2.000000e+00 : f32
    %19 = vector.broadcast %cst_11 : f32 to vector<8x8xf32>
    %20 = arith.mulf %19, %9 : vector<8x8xf32>
    %21 = arith.subf %18, %20 : vector<8x8xf32>
    %cst_12 = arith.constant 0.000000e+00 : f32
    %22 = vector.broadcast %cst_12 : f32 to vector<8x8xf32>
    %23 = arith.maximumf %21, %22 : vector<8x8xf32>
    %24 = vector.extract_strided_slice %23 {offsets = [0, 0], sizes = [6, 3], strides = [1, 1]} : vector<8x8xf32> to vector<6x3xf32>
    %25 = math.sqrt %24 : vector<6x3xf32>
    %cst_13 = arith.constant 0.000000e+00 : f32
    %26 = vector.broadcast %cst_13 : f32 to vector<6x3xf32>
    %27 = arith.subf %26, %25 : vector<6x3xf32>
    %c0_14 = arith.constant 0 : index
    %c0_15 = arith.constant 0 : index
    %28 = vector.load %arg4[%c0_14, %c0_15] : memref<6x3xf32, #tpu.memory_space<vmem>>, vector<6x3xf32>
    tpu.vector_store %arg4[%c0_14, %c0_15], %27 {strides = array<i32>} : memref<6x3xf32, #tpu.memory_space<vmem>>, vector<6x3xf32>,
    return
  }
  func.func @transform_0(%arg0: i32) -> (i32, i32) {
    %c0_i32 = arith.constant 0 : i32
    %c0_i32_0 = arith.constant 0 : i32
    %c0_i32_1 = arith.constant 0 : i32
    return %c0_i32, %c0_i32_0 : i32, i32
  }
  func.func @transform_1(%arg0: i32) -> (i32, i32) {
    %c0_i32 = arith.constant 0 : i32
    %c0_i32_0 = arith.constant 0 : i32
    %c0_i32_1 = arith.constant 0 : i32
    return %c0_i32, %c0_i32_0 : i32, i32
  }
  func.func @transform_2(%arg0: i32) -> (i32, i32) {
    %c0_i32 = arith.constant 0 : i32
    %c0_i32_0 = arith.constant 0 : i32
    %c0_i32_1 = arith.constant 0 : i32
    return %c0_i32, %c0_i32_0 : i32, i32
  }
  func.func @transform_3(%arg0: i32) -> (i32, i32) {
    %c0_i32 = arith.constant 0 : i32
    %c0_i32_0 = arith.constant 0 : i32
    %c0_i32_1 = arith.constant 0 : i32
    return %c0_i32, %c0_i32_0 : i32, i32
  }
}

</mosaic_0001>

<bundles_post_ra>
// kernel: tpu_custom_call.1
= control target key start
LH: loop header
LB: loop body
LE: loop exit
PB: predicated region body
PF: predicated region fallthrough
CT: control target
= control target key end

     0   :  { %vm403_vm0 = vcmask 302080   ;;  %vm1556_vm1 = vcmask 1044480   ;;  %vm7277_vm2 = vmmov 0   ;;  %vm5037_vm5 = vcmask 21504   ;;  %s9332_s1 = inlined_call_operand.vmem [shape: f32[37,128], index: 1, kind: input, shape index: {}]   ;;  %s9333_s0 = inlined_call_operand.vmem [shape: f32[3072,37], index: 0, kind: input, shape index: {}]   ;;  %s9334_s2 = inlined_call_operand.vmem [shape: f32[16,3072], index: 2, kind: input, shape index: {}]   ;;  %s9335_s3 = inlined_call_operand.vmem [shape: f32[6,3], index: 3, kind: output, shape index: {}]  }
   0x1   :  { %v398_v0 = vld [vmem:[%s9332_s1] sm:$0xff]  ;;  %v399_v1 = vld [vmem:[%s9332_s1 + $0x8] sm:$0xff]  ;;  %v400_v2 = vld [vmem:[%s9332_s1 + $0x10] sm:$0xff] }
   0x2   :  { %v6873_v3 = vpack.c.bf16 %v399_v1, %v398_v0  ;;  %v401_v4 = vld [vmem:[%s9332_s1 + $0x18] sm:$0xff]  ;;  %v14_v5 = vld [vmem:[%s9333_s0] sm:$0xff]  ;;  %v15_v8 = vld [vmem:[%s9333_s0 + $0x8] sm:$0xff] }
   0x3   :  { %v6877_v6 = vpack.c.bf16 %v401_v4, %v400_v2  ;;  %6287 = vmatprep.mubr.msk.f32.mxu0 %vm403_vm0, %v14_v5  ;;  %v402_v7 = vld [vmem:[%s9332_s1 + $0x20] sm:$0x1f]  ;;  %v16_v9 = vld [vmem:[%s9333_s0 + $0x10] sm:$0xff]  ;;  %v17_v10 = vld [vmem:[%s9333_s0 + $0x18] sm:$0xff] }
   0x4   :  { %6874 = vmatprep.subr.bf16.mxu0 %v6873_v3  ;;  %7265 = vmatprep.subr.bf16.mxu1 %v6873_v3  ;;  %v18_v11 = vld [vmem:[%s9333_s0 + $0x20] sm:$0xff]  ;;  %v19_v12 = vld [vmem:[%s9333_s0 + $0x28] sm:$0xff]  ;;  %v20_v13 = vld [vmem:[%s9333_s0 + $0x30] sm:$0xff] }
   0x5   :  { %6876 = vmatpush3.bf16.msra.mxu0 %v6873_v3  ;;  %7268 = vmatpush3.bf16.msra.mxu1 %v6873_v3  ;;  %v298_v14 = vld [vmem:[%s9333_s0 + $0x8e0] sm:$0xff]  ;;  %v299_v15 = vld [vmem:[%s9333_s0 + $0x8e8] sm:$0xff]  ;;  %v21_v16 = vld [vmem:[%s9333_s0 + $0x38] sm:$0xff] }
   0x6   :  { %6878 = vmatprep.subr.bf16.mxu0 %v6877_v6  ;;  %7266 = vmatprep.subr.bf16.mxu1 %v6877_v6  ;;  %v300_v17 = vld [vmem:[%s9333_s0 + $0x8f0] sm:$0xff]  ;;  %v22_v18 = vld [vmem:[%s9333_s0 + $0x40] sm:$0xff]  ;;  %v301_v19 = vld [vmem:[%s9333_s0 + $0x8f8] sm:$0xff] }
   0x7   :  { %6713 = vmatprep.mubr.msk.f32.mxu1 %vm403_vm0, %v298_v14  ;;  %v302_v20 = vld [vmem:[%s9333_s0 + $0x900] sm:$0xff]  ;;  %v23_v21 = vld [vmem:[%s9333_s0 + $0x48] sm:$0xff]  ;;  %v24_v22 = vld [vmem:[%s9333_s0 + $0x50] sm:$0xff] }
   0x8   :  { %v303_v23 = vld [vmem:[%s9333_s0 + $0x908] sm:$0xff]  ;;  %v304_v24 = vld [vmem:[%s9333_s0 + $0x910] sm:$0xff]  ;;  %v25_v25 = vld [vmem:[%s9333_s0 + $0x58] sm:$0xff] }
   0x9   :  { %6880 = vmatpush3.bf16.msra.mxu0 %v6877_v6  ;;  %7269 = vmatpush3.bf16.msra.mxu1 %v6877_v6  ;;  %v26_v26 = vld [vmem:[%s9333_s0 + $0x60] sm:$0xff]  ;;  %v305_v27 = vld [vmem:[%s9333_s0 + $0x918] sm:$0xff]  ;;  %v27_v29 = vld [vmem:[%s9333_s0 + $0x68] sm:$0xff] }
   0xa   :  { %6285 = vmatprep.subr.msk.mxu0 %vm1556_vm1, %v402_v7  ;;  %7267 = vmatprep.subr.msk.mxu1 %vm1556_vm1, %v402_v7  ;;  %v306_v28 = vld [vmem:[%s9333_s0 + $0x920] sm:$0xff]  ;;  %v28_v30 = vld [vmem:[%s9333_s0 + $0x70] sm:$0xff]  ;;  %v307_v31 = vld [vmem:[%s9333_s0 + $0x928] sm:$0xff] }
   0xb   :  { %v308_v32 = vld [vmem:[%s9333_s0 + $0x930] sm:$0xff]  ;;  %v29_v33 = vld [vmem:[%s9333_s0 + $0x78] sm:$0xff]  ;;  %v30_v34 = vld [vmem:[%s9333_s0 + $0x80] sm:$0xff] }
   0xc   :  { %v309_v35 = vld [vmem:[%s9333_s0 + $0x938] sm:$0xff]  ;;  %v310_v36 = vld [vmem:[%s9333_s0 + $0x940] sm:$0xff]  ;;  %v31_v37 = vld [vmem:[%s9333_s0 + $0x88] sm:$0xff] }
   0xd   :  { %6286 = vmatpush3.msk.msra.mxu0 %vm1556_vm1, %v402_v7  ;;  %7270 = vmatpush3.msk.msra.mxu1 %vm1556_vm1, %v402_v7  ;;  %v32_v38 = vld [vmem:[%s9333_s0 + $0x90] sm:$0xff]  ;;  %v311_v39 = vld [vmem:[%s9333_s0 + $0x948] sm:$0xff]  ;;  %v33_v41 = vld [vmem:[%s9333_s0 + $0x98] sm:$0xff] }
   0xe   :  { %6288 = vmatmul.mubr.msk.f32.vlgmr.msra.gmra.mrb[0].mxu0 %vm403_vm0, %v15_v8  ;;  %6714 = vmatmul.mubr.msk.f32.vlgmr.msra.gmra.mrb[0].mxu1 %vm403_vm0, %v299_v15  ;;  %v312_v40 = vld [vmem:[%s9333_s0 + $0x950] sm:$0xff]  ;;  %v34_v42 = vld [vmem:[%s9333_s0 + $0xa0] sm:$0xff]  ;;  %v313_v43 = vld [vmem:[%s9333_s0 + $0x958] sm:$0xff] }
   0xf   :  { %6290 = vmatprep.mubr.msk.f32.mxu0 %vm403_vm0, %v16_v9  ;;  %6716 = vmatprep.mubr.msk.f32.mxu1 %vm403_vm0, %v300_v17  ;;  %v314_v44 = vld [vmem:[%s9333_s0 + $0x960] sm:$0xff]  ;;  %v35_v45 = vld [vmem:[%s9333_s0 + $0xa8] sm:$0xff]  ;;  %v36_v46 = vld [vmem:[%s9333_s0 + $0xb0] sm:$0xff] }
  0x10   :  { %v315_v47 = vld [vmem:[%s9333_s0 + $0x968] sm:$0xff]  ;;  %v316_v48 = vld [vmem:[%s9333_s0 + $0x970] sm:$0xff]  ;;  %v37_v49 = vld [vmem:[%s9333_s0 + $0xb8] sm:$0xff] }
  0x11   :  { %v38_v50 = vld [vmem:[%s9333_s0 + $0xc0] sm:$0xff]  ;;  %v317_v51 = vld [vmem:[%s9333_s0 + $0x978] sm:$0xff]  ;;  %v39_v53 = vld [vmem:[%s9333_s0 + $0xc8] sm:$0xff] }
  0x12   :  { %6291 = vmatmul.mubr.msk.f32.gmra.mrb[2].mxu0 %vm403_vm0, %v17_v10  ;;  %6717 = vmatmul.mubr.msk.f32.gmra.mrb[2].mxu1 %vm403_vm0, %v301_v19  ;;  %v318_v52 = vld [vmem:[%s9333_s0 + $0x980] sm:$0xff]  ;;  %v40_v54 = vld [vmem:[%s9333_s0 + $0xd0] sm:$0xff]  ;;  %v319_v55 = vld [vmem:[%s9333_s0 + $0x988] sm:$0xff] }
  0x13   :  { %6293 = vmatprep.mubr.msk.f32.mxu0 %vm403_vm0, %v18_v11  ;;  %6719 = vmatprep.mubr.msk.f32.mxu1 %vm403_vm0, %v302_v20  ;;  %v320_v56 = vld [vmem:[%s9333_s0 + $0x990] sm:$0xff]  ;;  %v41_v57 = vld [vmem:[%s9333_s0 + $0xd8] sm:$0xff]  ;;  %v42_v58 = vld [vmem:[%s9333_s0 + $0xe0] sm:$0xff] }
  0x14   :  { %v321_v59 = vld [vmem:[%s9333_s0 + $0x998] sm:$0xff]  ;;  %v322_v60 = vld [vmem:[%s9333_s0 + $0x9a0] sm:$0xff]  ;;  %v43_v61 = vld [vmem:[%s9333_s0 + $0xe8] sm:$0xff] }
  0x15   :  { %v44_v62 = vld [vmem:[%s9333_s0 + $0xf0] sm:$0xff]  ;;  %v323_v63 = vld [vmem:[%s9333_s0 + $0x9a8] sm:$0xff]  ;;  %v45_v1 = vld [vmem:[%s9333_s0 + $0xf8] sm:$0xff] }
  0x16   :  { %6294 = vmatmul.mubr.msk.f32.gmra.mrb[4].mxu0 %vm403_vm0, %v19_v12  ;;  %6720 = vmatmul.mubr.msk.f32.gmra.mrb[4].mxu1 %vm403_vm0, %v303_v23  ;;  %v324_v0 = vld [vmem:[%s9333_s0 + $0x9b0] sm:$0xff]  ;;  %v46_v2 = vld [vmem:[%s9333_s0 + $0x100] sm:$0xff]  ;;  %v325_v3 = vld [vmem:[%s9333_s0 + $0x9b8] sm:$0xff] }
  0x17   :  { %6296 = vmatprep.mubr.msk.f32.mxu0 %vm403_vm0, %v20_v13  ;;  %6722 = vmatprep.mubr.msk.f32.mxu1 %vm403_vm0, %v304_v24  ;;  %v326_v4 = vld [vmem:[%s9333_s0 + $0x9c0] sm:$0xff]  ;;  %v47_v5 = vld [vmem:[%s9333_s0 + $0x108] sm:$0xff]  ;;  %v48_v6 = vld [vmem:[%s9333_s0 + $0x110] sm:$0xff] }
  0x18   :  { %v327_v7 = vld [vmem:[%s9333_s0 + $0x9c8] sm:$0xff]  ;;  %v328_v8 = vld [vmem:[%s9333_s0 + $0x9d0] sm:$0xff]  ;;  %v49_v9 = vld [vmem:[%s9333_s0 + $0x118] sm:$0xff] }
  0x19   :  { %v50_v10 = vld [vmem:[%s9333_s0 + $0x120] sm:$0xff]  ;;  %v329_v11 = vld [vmem:[%s9333_s0 + $0x9d8] sm:$0xff]  ;;  %v51_v13 = vld [vmem:[%s9333_s0 + $0x128] sm:$0xff] }
  0x1a   :  { %6297 = vmatmul.mubr.msk.f32.gmra.mrb[6].mxu0 %vm403_vm0, %v21_v16  ;;  %6723 = vmatmul.mubr.msk.f32.gmra.mrb[6].mxu1 %vm403_vm0, %v305_v27  ;;  %v330_v12 = vld [vmem:[%s9333_s0 + $0x9e0] sm:$0xff]  ;;  %v52_v14 = vld [vmem:[%s9333_s0 + $0x130] sm:$0xff]  ;;  %v331_v15 = vld [vmem:[%s9333_s0 + $0x9e8] sm:$0xff] }
  0x1b   :  { %6299 = vmatprep.mubr.msk.f32.mxu0 %vm403_vm0, %v22_v18  ;;  %6725 = vmatprep.mubr.msk.f32.mxu1 %vm403_vm0, %v306_v28  ;;  %v332_v16 = vld [vmem:[%s9333_s0 + $0x9f0] sm:$0xff]  ;;  %v53_v17 = vld [vmem:[%s9333_s0 + $0x138] sm:$0xff]  ;;  %v54_v18 = vld [vmem:[%s9333_s0 + $0x140] sm:$0xff] }
  0x1c   :  { %v333_v19 = vld [vmem:[%s9333_s0 + $0x9f8] sm:$0xff]  ;;  %v334_v20 = vld [vmem:[%s9333_s0 + $0xa00] sm:$0xff]  ;;  %v335_v23 = vld [vmem:[%s9333_s0 + $0xa08] sm:$0xff] }
  0x1d   :  { %v336_v24 = vld [vmem:[%s9333_s0 + $0xa10] sm:$0xff]  ;;  %v337_v27 = vld [vmem:[%s9333_s0 + $0xa18] sm:$0xff]  ;;  %v338_v28 = vld [vmem:[%s9333_s0 + $0xa20] sm:$0xff] }
  0x1e   :  { %6300 = vmatmul.mubr.msk.f32.gmra.mrb[8].mxu0 %vm403_vm0, %v23_v21  ;;  %6726 = vmatmul.mubr.msk.f32.gmra.mrb[8].mxu1 %vm403_vm0, %v307_v31  ;;  %v55_v21 = vld [vmem:[%s9333_s0 + $0x148] sm:$0xff] }
  0x1f   :  { %6302 = vmatprep.mubr.msk.f32.mxu0 %vm403_vm0, %v24_v22  ;;  %6728 = vmatprep.mubr.msk.f32.mxu1 %vm403_vm0, %v308_v32  ;;  %v56_v22 = vld [vmem:[%s9333_s0 + $0x150] sm:$0xff]  ;;  %v339_v31 = vld [vmem:[%s9333_s0 + $0xa28] sm:$0xff] }
  0x20   :  { %v340_v32 = vld [vmem:[%s9333_s0 + $0xa30] sm:$0xff] }
  0x22   :  { %6303 = vmatmul.mubr.msk.f32.gmra.mrb[10].mxu0 %vm403_vm0, %v25_v25  ;;  %6729 = vmatmul.mubr.msk.f32.gmra.mrb[10].mxu1 %vm403_vm0, %v309_v35  ;;  %v57_v25 = vld [vmem:[%s9333_s0 + $0x158] sm:$0xff] }
  0x23   :  { %6305 = vmatprep.mubr.msk.f32.mxu0 %vm403_vm0, %v26_v26  ;;  %6731 = vmatprep.mubr.msk.f32.mxu1 %vm403_vm0, %v310_v36  ;;  %v58_v26 = vld [vmem:[%s9333_s0 + $0x160] sm:$0xff]  ;;  %v341_v35 = vld [vmem:[%s9333_s0 + $0xa38] sm:$0xff] }
  0x24   :  { %v342_v36 = vld [vmem:[%s9333_s0 + $0xa40] sm:$0xff] }
  0x26   :  { %6306 = vmatmul.mubr.msk.f32.gmra.mrb[12].mxu0 %vm403_vm0, %v27_v29  ;;  %6732 = vmatmul.mubr.msk.f32.gmra.mrb[12].mxu1 %vm403_vm0, %v311_v39  ;;  %v59_v29 = vld [vmem:[%s9333_s0 + $0x168] sm:$0xff] }
  0x27   :  { %6308 = vmatprep.mubr.msk.f32.mxu0 %vm403_vm0, %v28_v30  ;;  %6734 = vmatprep.mubr.msk.f32.mxu1 %vm403_vm0, %v312_v40  ;;  %v60_v30 = vld [vmem:[%s9333_s0 + $0x170] sm:$0xff]  ;;  %v343_v39 = vld [vmem:[%s9333_s0 + $0xa48] sm:$0xff] }
  0x28   :  { %v344_v40 = vld [vmem:[%s9333_s0 + $0xa50] sm:$0xff] }
  0x2a   :  { %6309 = vmatmul.mubr.msk.f32.gmra.mrb[14].mxu0 %vm403_vm0, %v29_v33  ;;  %6735 = vmatmul.mubr.msk.f32.gmra.mrb[14].mxu1 %vm403_vm0, %v313_v43  ;;  %v61_v33 = vld [vmem:[%s9333_s0 + $0x178] sm:$0xff] }
  0x2b   :  { %6311 = vmatprep.mubr.msk.f32.mxu0 %vm403_vm0, %v30_v34  ;;  %6737 = vmatprep.mubr.msk.f32.mxu1 %vm403_vm0, %v314_v44  ;;  %v62_v34 = vld [vmem:[%s9333_s0 + $0x180] sm:$0xff]  ;;  %v345_v43 = vld [vmem:[%s9333_s0 + $0xa58] sm:$0xff] }
  0x2c   :  { %v346_v44 = vld [vmem:[%s9333_s0 + $0xa60] sm:$0xff] }
  0x2e   :  { %6312 = vmatmul.mubr.msk.f32.gmra.mrb[16].mxu0 %vm403_vm0, %v31_v37  ;;  %6738 = vmatmul.mubr.msk.f32.gmra.mrb[16].mxu1 %vm403_vm0, %v315_v47  ;;  %v63_v37 = vld [vmem:[%s9333_s0 + $0x188] sm:$0xff] }
  0x2f   :  { %6314 = vmatprep.mubr.msk.f32.mxu0 %vm403_vm0, %v32_v38  ;;  %6740 = vmatprep.mubr.msk.f32.mxu1 %vm403_vm0, %v316_v48  ;;  %v64_v38 = vld [vmem:[%s9333_s0 + $0x190] sm:$0xff]  ;;  %v347_v47 = vld [vmem:[%s9333_s0 + $0xa68] sm:$0xff] }
  0x30   :  { %v348_v48 = vld [vmem:[%s9333_s0 + $0xa70] sm:$0xff] }
  0x32   :  { %6315 = vmatmul.mubr.msk.f32.gmra.mrb[18].mxu0 %vm403_vm0, %v33_v41  ;;  %6741 = vmatmul.mubr.msk.f32.gmra.mrb[18].mxu1 %vm403_vm0, %v317_v51  ;;  %v65_v41 = vld [vmem:[%s9333_s0 + $0x198] sm:$0xff] }
  0x33   :  { %6317 = vmatprep.mubr.msk.f32.mxu0 %vm403_vm0, %v34_v42  ;;  %6743 = vmatprep.mubr.msk.f32.mxu1 %vm403_vm0, %v318_v52  ;;  %v66_v42 = vld [vmem:[%s9333_s0 + $0x1a0] sm:$0xff]  ;;  %v349_v51 = vld [vmem:[%s9333_s0 + $0xa78] sm:$0xff] }
  0x34   :  { %v350_v52 = vld [vmem:[%s9333_s0 + $0xa80] sm:$0xff] }
  0x36   :  { %6318 = vmatmul.mubr.msk.f32.gmra.mrb[20].mxu0 %vm403_vm0, %v35_v45  ;;  %6744 = vmatmul.mubr.msk.f32.gmra.mrb[20].mxu1 %vm403_vm0, %v319_v55  ;;  %v67_v45 = vld [vmem:[%s9333_s0 + $0x1a8] sm:$0xff] }
  0x37   :  { %6320 = vmatprep.mubr.msk.f32.mxu0 %vm403_vm0, %v36_v46  ;;  %6746 = vmatprep.mubr.msk.f32.mxu1 %vm403_vm0, %v320_v56  ;;  %v68_v46 = vld [vmem:[%s9333_s0 + $0x1b0] sm:$0xff]  ;;  %v351_v55 = vld [vmem:[%s9333_s0 + $0xa88] sm:$0xff] }
  0x38   :  { %v352_v56 = vld [vmem:[%s9333_s0 + $0xa90] sm:$0xff] }
  0x3a   :  { %6321 = vmatmul.mubr.msk.f32.gmra.mrb[22].mxu0 %vm403_vm0, %v37_v49  ;;  %6747 = vmatmul.mubr.msk.f32.gmra.mrb[22].mxu1 %vm403_vm0, %v321_v59  ;;  %v69_v49 = vld [vmem:[%s9333_s0 + $0x1b8] sm:$0xff] }
  0x3b   :  { %6323 = vmatprep.mubr.msk.f32.mxu0 %vm403_vm0, %v38_v50  ;;  %6749 = vmatprep.mubr.msk.f32.mxu1 %vm403_vm0, %v322_v60  ;;  %v70_v50 = vld [vmem:[%s9333_s0 + $0x1c0] sm:$0xff]  ;;  %v353_v59 = vld [vmem:[%s9333_s0 + $0xa98] sm:$0xff] }
  0x3c   :  { %v354_v60 = vld [vmem:[%s9333_s0 + $0xaa0] sm:$0xff] }
  0x3e   :  { %6324 = vmatmul.mubr.msk.f32.gmra.mrb[24].mxu0 %vm403_vm0, %v39_v53  ;;  %6750 = vmatmul.mubr.msk.f32.gmra.mrb[24].mxu1 %vm403_vm0, %v323_v63  ;;  %v71_v53 = vld [vmem:[%s9333_s0 + $0x1c8] sm:$0xff] }
  0x3f   :  { %6326 = vmatprep.mubr.msk.f32.mxu0 %vm403_vm0, %v40_v54  ;;  %6752 = vmatprep.mubr.msk.f32.mxu1 %vm403_vm0, %v324_v0  ;;  %v72_v54 = vld [vmem:[%s9333_s0 + $0x1d0] sm:$0xff]  ;;  %v355_v63 = vld [vmem:[%s9333_s0 + $0xaa8] sm:$0xff] }
  0x40   :  { %v356_v0 = vld [vmem:[%s9333_s0 + $0xab0] sm:$0xff] }
  0x42   :  { %6327 = vmatmul.mubr.msk.f32.gmra.mrb[26].mxu0 %vm403_vm0, %v41_v57  ;;  %6753 = vmatmul.mubr.msk.f32.gmra.mrb[26].mxu1 %vm403_vm0, %v325_v3  ;;  %v73_v57 = vld [vmem:[%s9333_s0 + $0x1d8] sm:$0xff] }
  0x43   :  { %6329 = vmatprep.mubr.msk.f32.mxu0 %vm403_vm0, %v42_v58  ;;  %6755 = vmatprep.mubr.msk.f32.mxu1 %vm403_vm0, %v326_v4  ;;  %v74_v58 = vld [vmem:[%s9333_s0 + $0x1e0] sm:$0xff]  ;;  %v357_v3 = vld [vmem:[%s9333_s0 + $0xab8] sm:$0xff] }
  0x44   :  { %v358_v4 = vld [vmem:[%s9333_s0 + $0xac0] sm:$0xff] }
  0x46   :  { %6330 = vmatmul.mubr.msk.f32.gmra.mrb[28].mxu0 %vm403_vm0, %v43_v61  ;;  %6756 = vmatmul.mubr.msk.f32.gmra.mrb[28].mxu1 %vm403_vm0, %v327_v7  ;;  %v75_v61 = vld [vmem:[%s9333_s0 + $0x1e8] sm:$0xff] }
  0x47   :  { %6332 = vmatprep.mubr.msk.f32.mxu0 %vm403_vm0, %v44_v62  ;;  %6758 = vmatprep.mubr.msk.f32.mxu1 %vm403_vm0, %v328_v8  ;;  %v76_v62 = vld [vmem:[%s9333_s0 + $0x1f0] sm:$0xff]  ;;  %v359_v7 = vld [vmem:[%s9333_s0 + $0xac8] sm:$0xff] }
  0x48   :  { %v360_v8 = vld [vmem:[%s9333_s0 + $0xad0] sm:$0xff] }
  0x4a   :  { %6333 = vmatmul.mubr.msk.f32.gmra.mrb[30].mxu0 %vm403_vm0, %v45_v1  ;;  %6759 = vmatmul.mubr.msk.f32.gmra.mrb[30].mxu1 %vm403_vm0, %v329_v11  ;;  %v77_v1 = vld [vmem:[%s9333_s0 + $0x1f8] sm:$0xff] }
  0x4b   :  { %6335 = vmatprep.mubr.msk.f32.mxu0 %vm403_vm0, %v46_v2  ;;  %6761 = vmatprep.mubr.msk.f32.mxu1 %vm403_vm0, %v330_v12  ;;  %v78_v2 = vld [vmem:[%s9333_s0 + $0x200] sm:$0xff]  ;;  %v361_v11 = vld [vmem:[%s9333_s0 + $0xad8] sm:$0xff] }
  0x4c   :  { %v362_v12 = vld [vmem:[%s9333_s0 + $0xae0] sm:$0xff] }
  0x4e   :  { %6336 = vmatmul.mubr.msk.f32.gmra.mrb[32].mxu0 %vm403_vm0, %v47_v5  ;;  %6762 = vmatmul.mubr.msk.f32.gmra.mrb[32].mxu1 %vm403_vm0, %v331_v15  ;;  %v79_v5 = vld [vmem:[%s9333_s0 + $0x208] sm:$0xff] }
  0x4f   :  { %6338 = vmatprep.mubr.msk.f32.mxu0 %vm403_vm0, %v48_v6  ;;  %6764 = vmatprep.mubr.msk.f32.mxu1 %vm403_vm0, %v332_v16  ;;  %v80_v6 = vld [vmem:[%s9333_s0 + $0x210] sm:$0xff]  ;;  %v363_v15 = vld [vmem:[%s9333_s0 + $0xae8] sm:$0xff] }
  0x50   :  { %v364_v16 = vld [vmem:[%s9333_s0 + $0xaf0] sm:$0xff] }
  0x52   :  { %6339 = vmatmul.mubr.msk.f32.gmra.mrb[34].mxu0 %vm403_vm0, %v49_v9  ;;  %6765 = vmatmul.mubr.msk.f32.gmra.mrb[34].mxu1 %vm403_vm0, %v333_v19  ;;  %v81_v9 = vld [vmem:[%s9333_s0 + $0x218] sm:$0xff] }
  0x53   :  { %6341 = vmatprep.mubr.msk.f32.mxu0 %vm403_vm0, %v50_v10  ;;  %6767 = vmatprep.mubr.msk.f32.mxu1 %vm403_vm0, %v334_v20  ;;  %v82_v10 = vld [vmem:[%s9333_s0 + $0x220] sm:$0xff]  ;;  %v365_v19 = vld [vmem:[%s9333_s0 + $0xaf8] sm:$0xff] }
  0x54   :  { %v366_v20 = vld [vmem:[%s9333_s0 + $0xb00] sm:$0xff] }
  0x56   :  { %6342 = vmatmul.mubr.msk.f32.gmra.mrb[36].mxu0 %vm403_vm0, %v51_v13  ;;  %6768 = vmatmul.mubr.msk.f32.gmra.mrb[36].mxu1 %vm403_vm0, %v335_v23  ;;  %v83_v13 = vld [vmem:[%s9333_s0 + $0x228] sm:$0xff] }
  0x57   :  { %6344 = vmatprep.mubr.msk.f32.mxu0 %vm403_vm0, %v52_v14  ;;  %6770 = vmatprep.mubr.msk.f32.mxu1 %vm403_vm0, %v336_v24  ;;  %v84_v14 = vld [vmem:[%s9333_s0 + $0x230] sm:$0xff]  ;;  %v367_v23 = vld [vmem:[%s9333_s0 + $0xb08] sm:$0xff] }
  0x58   :  { %v368_v24 = vld [vmem:[%s9333_s0 + $0xb10] sm:$0xff] }
  0x5a   :  { %6345 = vmatmul.mubr.msk.f32.gmra.mrb[38].mxu0 %vm403_vm0, %v53_v17  ;;  %6771 = vmatmul.mubr.msk.f32.gmra.mrb[38].mxu1 %vm403_vm0, %v337_v27  ;;  %v85_v17 = vld [vmem:[%s9333_s0 + $0x238] sm:$0xff] }
  0x5b   :  { %6347 = vmatprep.mubr.msk.f32.mxu0 %vm403_vm0, %v54_v18  ;;  %6773 = vmatprep.mubr.msk.f32.mxu1 %vm403_vm0, %v338_v28  ;;  %v86_v18 = vld [vmem:[%s9333_s0 + $0x240] sm:$0xff]  ;;  %v369_v27 = vld [vmem:[%s9333_s0 + $0xb18] sm:$0xff] }
  0x5c   :  { %v370_v28 = vld [vmem:[%s9333_s0 + $0xb20] sm:$0xff] }
  0x5e   :  { %6348 = vmatmul.mubr.msk.f32.gmra.mrb[40].mxu0 %vm403_vm0, %v55_v21  ;;  %6774 = vmatmul.mubr.msk.f32.gmra.mrb[40].mxu1 %vm403_vm0, %v339_v31  ;;  %v87_v21 = vld [vmem:[%s9333_s0 + $0x248] sm:$0xff] }
  0x5f   :  { %6350 = vmatprep.mubr.msk.f32.mxu0 %vm403_vm0, %v56_v22  ;;  %6776 = vmatprep.mubr.msk.f32.mxu1 %vm403_vm0, %v340_v32  ;;  %v88_v22 = vld [vmem:[%s9333_s0 + $0x250] sm:$0xff]  ;;  %v371_v31 = vld [vmem:[%s9333_s0 + $0xb28] sm:$0xff] }
  0x60   :  { %v372_v32 = vld [vmem:[%s9333_s0 + $0xb30] sm:$0xff] }
  0x62   :  { %6351 = vmatmul.mubr.msk.f32.gmra.mrb[42].mxu0 %vm403_vm0, %v57_v25  ;;  %6777 = vmatmul.mubr.msk.f32.gmra.mrb[42].mxu1 %vm403_vm0, %v341_v35  ;;  %v89_v25 = vld [vmem:[%s9333_s0 + $0x258] sm:$0xff] }
  0x63   :  { %6353 = vmatprep.mubr.msk.f32.mxu0 %vm403_vm0, %v58_v26  ;;  %6779 = vmatprep.mubr.msk.f32.mxu1 %vm403_vm0, %v342_v36  ;;  %v90_v26 = vld [vmem:[%s9333_s0 + $0x260] sm:$0xff]  ;;  %v373_v35 = vld [vmem:[%s9333_s0 + $0xb38] sm:$0xff] }
  0x64   :  { %v374_v36 = vld [vmem:[%s9333_s0 + $0xb40] sm:$0xff] }
  0x66   :  { %6354 = vmatmul.mubr.msk.f32.gmra.mrb[44].mxu0 %vm403_vm0, %v59_v29  ;;  %6780 = vmatmul.mubr.msk.f32.gmra.mrb[44].mxu1 %vm403_vm0, %v343_v39  ;;  %v91_v29 = vld [vmem:[%s9333_s0 + $0x268] sm:$0xff] }
  0x67   :  { %6356 = vmatprep.mubr.msk.f32.mxu0 %vm403_vm0, %v60_v30  ;;  %6782 = vmatprep.mubr.msk.f32.mxu1 %vm403_vm0, %v344_v40  ;;  %v92_v30 = vld [vmem:[%s9333_s0 + $0x270] sm:$0xff]  ;;  %v375_v39 = vld [vmem:[%s9333_s0 + $0xb48] sm:$0xff] }
  0x68   :  { %v376_v40 = vld [vmem:[%s9333_s0 + $0xb50] sm:$0xff] }
  0x6a   :  { %6357 = vmatmul.mubr.msk.f32.gmra.mrb[46].mxu0 %vm403_vm0, %v61_v33  ;;  %6783 = vmatmul.mubr.msk.f32.gmra.mrb[46].mxu1 %vm403_vm0, %v345_v43  ;;  %v93_v33 = vld [vmem:[%s9333_s0 + $0x278] sm:$0xff] }
  0x6b   :  { %6359 = vmatprep.mubr.msk.f32.mxu0 %vm403_vm0, %v62_v34  ;;  %6785 = vmatprep.mubr.msk.f32.mxu1 %vm403_vm0, %v346_v44  ;;  %v94_v34 = vld [vmem:[%s9333_s0 + $0x280] sm:$0xff]  ;;  %v377_v43 = vld [vmem:[%s9333_s0 + $0xb58] sm:$0xff] }
  0x6c   :  { %v378_v44 = vld [vmem:[%s9333_s0 + $0xb60] sm:$0xff] }
  0x6e   :  { %6360 = vmatmul.mubr.msk.f32.gmra.mrb[48].mxu0 %vm403_vm0, %v63_v37  ;;  %6786 = vmatmul.mubr.msk.f32.gmra.mrb[48].mxu1 %vm403_vm0, %v347_v47  ;;  %v95_v37 = vld [vmem:[%s9333_s0 + $0x288] sm:$0xff] }
  0x6f   :  { %6362 = vmatprep.mubr.msk.f32.mxu0 %vm403_vm0, %v64_v38  ;;  %6788 = vmatprep.mubr.msk.f32.mxu1 %vm403_vm0, %v348_v48  ;;  %v96_v38 = vld [vmem:[%s9333_s0 + $0x290] sm:$0xff]  ;;  %v379_v47 = vld [vmem:[%s9333_s0 + $0xb68] sm:$0xff] }
  0x70   :  { %v380_v48 = vld [vmem:[%s9333_s0 + $0xb70] sm:$0xff] }
  0x72   :  { %6363 = vmatmul.mubr.msk.f32.gmra.mrb[50].mxu0 %vm403_vm0, %v65_v41  ;;  %6789 = vmatmul.mubr.msk.f32.gmra.mrb[50].mxu1 %vm403_vm0, %v349_v51  ;;  %v97_v41 = vld [vmem:[%s9333_s0 + $0x298] sm:$0xff] }
  0x73   :  { %6365 = vmatprep.mubr.msk.f32.mxu0 %vm403_vm0, %v66_v42  ;;  %6791 = vmatprep.mubr.msk.f32.mxu1 %vm403_vm0, %v350_v52  ;;  %v98_v42 = vld [vmem:[%s9333_s0 + $0x2a0] sm:$0xff]  ;;  %v381_v51 = vld [vmem:[%s9333_s0 + $0xb78] sm:$0xff] }
  0x74   :  { %v382_v52 = vld [vmem:[%s9333_s0 + $0xb80] sm:$0xff] }
  0x76   :  { %6366 = vmatmul.mubr.msk.f32.gmra.mrb[52].mxu0 %vm403_vm0, %v67_v45  ;;  %6792 = vmatmul.mubr.msk.f32.gmra.mrb[52].mxu1 %vm403_vm0, %v351_v55  ;;  %v99_v45 = vld [vmem:[%s9333_s0 + $0x2a8] sm:$0xff] }
  0x77   :  { %6368 = vmatprep.mubr.msk.f32.mxu0 %vm403_vm0, %v68_v46  ;;  %6794 = vmatprep.mubr.msk.f32.mxu1 %vm403_vm0, %v352_v56  ;;  %v100_v46 = vld [vmem:[%s9333_s0 + $0x2b0] sm:$0xff]  ;;  %v383_v55 = vld [vmem:[%s9333_s0 + $0xb88] sm:$0xff] }
  0x78   :  { %v384_v56 = vld [vmem:[%s9333_s0 + $0xb90] sm:$0xff] }
  0x7a   :  { %6369 = vmatmul.mubr.msk.f32.gmra.mrb[54].mxu0 %vm403_vm0, %v69_v49  ;;  %6795 = vmatmul.mubr.msk.f32.gmra.mrb[54].mxu1 %vm403_vm0, %v353_v59  ;;  %v101_v49 = vld [vmem:[%s9333_s0 + $0x2b8] sm:$0xff] }
  0x7b   :  { %6371 = vmatprep.mubr.msk.f32.mxu0 %vm403_vm0, %v70_v50  ;;  %6797 = vmatprep.mubr.msk.f32.mxu1 %vm403_vm0, %v354_v60  ;;  %v102_v50 = vld [vmem:[%s9333_s0 + $0x2c0] sm:$0xff]  ;;  %v385_v59 = vld [vmem:[%s9333_s0 + $0xb98] sm:$0xff] }
  0x7c   :  { %v386_v60 = vld [vmem:[%s9333_s0 + $0xba0] sm:$0xff] }
  0x7e   :  { %6372 = vmatmul.mubr.msk.f32.gmra.mrb[56].mxu0 %vm403_vm0, %v71_v53  ;;  %6798 = vmatmul.mubr.msk.f32.gmra.mrb[56].mxu1 %vm403_vm0, %v355_v63  ;;  %v103_v53 = vld [vmem:[%s9333_s0 + $0x2c8] sm:$0xff] }
  0x7f   :  { %6374 = vmatprep.mubr.msk.f32.mxu0 %vm403_vm0, %v72_v54  ;;  %6800 = vmatprep.mubr.msk.f32.mxu1 %vm403_vm0, %v356_v0  ;;  %v104_v54 = vld [vmem:[%s9333_s0 + $0x2d0] sm:$0xff]  ;;  %v387_v63 = vld [vmem:[%s9333_s0 + $0xba8] sm:$0xff] }
  0x80   :  { %v388_v0 = vld [vmem:[%s9333_s0 + $0xbb0] sm:$0xff] }
  0x82   :  { %6375 = vmatmul.mubr.msk.f32.gmra.mrb[58].mxu0 %vm403_vm0, %v73_v57  ;;  %6801 = vmatmul.mubr.msk.f32.gmra.mrb[58].mxu1 %vm403_vm0, %v357_v3  ;;  %v105_v57 = vld [vmem:[%s9333_s0 + $0x2d8] sm:$0xff] }
  0x83   :  { %6377 = vmatprep.mubr.msk.f32.mxu0 %vm403_vm0, %v74_v58  ;;  %6803 = vmatprep.mubr.msk.f32.mxu1 %vm403_vm0, %v358_v4  ;;  %v106_v58 = vld [vmem:[%s9333_s0 + $0x2e0] sm:$0xff]  ;;  %v389_v3 = vld [vmem:[%s9333_s0 + $0xbb8] sm:$0xff] }
  0x84   :  { %v390_v4 = vld [vmem:[%s9333_s0 + $0xbc0] sm:$0xff] }
  0x86   :  { %6378 = vmatmul.mubr.msk.f32.gmra.mrb[60].mxu0 %vm403_vm0, %v75_v61  ;;  %6804 = vmatmul.mubr.msk.f32.gmra.mrb[60].mxu1 %vm403_vm0, %v359_v7  ;;  %v107_v61 = vld [vmem:[%s9333_s0 + $0x2e8] sm:$0xff] }
  0x87   :  { %6380 = vmatprep.mubr.msk.f32.mxu0 %vm403_vm0, %v76_v62  ;;  %6806 = vmatprep.mubr.msk.f32.mxu1 %vm403_vm0, %v360_v8  ;;  %v108_v62 = vld [vmem:[%s9333_s0 + $0x2f0] sm:$0xff]  ;;  %v391_v7 = vld [vmem:[%s9333_s0 + $0xbc8] sm:$0xff] }
  0x88   :  { %v392_v8 = vld [vmem:[%s9333_s0 + $0xbd0] sm:$0xff] }
  0x8a   :  { %6381 = vmatmul.mubr.msk.f32.gmra.mrb[62].mxu0 %vm403_vm0, %v77_v1  ;;  %6807 = vmatmul.mubr.msk.f32.gmra.mrb[62].mxu1 %vm403_vm0, %v361_v11  ;;  %v109_v1 = vld [vmem:[%s9333_s0 + $0x2f8] sm:$0xff] }
  0x8b   :  { %6383 = vmatprep.mubr.msk.f32.mxu0 %vm403_vm0, %v78_v2  ;;  %6809 = vmatprep.mubr.msk.f32.mxu1 %vm403_vm0, %v362_v12  ;;  %v110_v2 = vld [vmem:[%s9333_s0 + $0x300] sm:$0xff]  ;;  %v393_v11 = vld [vmem:[%s9333_s0 + $0xbd8] sm:$0xff] }
  0x8c   :  { %v394_v12 = vld [vmem:[%s9333_s0 + $0xbe0] sm:$0xff] }
  0x8e   :  { %6384 = vmatmul.mubr.msk.f32.gmra.mrb[64].mxu0 %vm403_vm0, %v79_v5  ;;  %6810 = vmatmul.mubr.msk.f32.gmra.mrb[64].mxu1 %vm403_vm0, %v363_v15  ;;  %v111_v5 = vld [vmem:[%s9333_s0 + $0x308] sm:$0xff] }
  0x8f   :  { %6386 = vmatprep.mubr.msk.f32.mxu0 %vm403_vm0, %v80_v6  ;;  %6812 = vmatprep.mubr.msk.f32.mxu1 %vm403_vm0, %v364_v16  ;;  %v112_v6 = vld [vmem:[%s9333_s0 + $0x310] sm:$0xff]  ;;  %v395_v15 = vld [vmem:[%s9333_s0 + $0xbe8] sm:$0xff] }
  0x90   :  { %v396_v16 = vld [vmem:[%s9333_s0 + $0xbf0] sm:$0xff] }
  0x92   :  { %6387 = vmatmul.mubr.msk.f32.gmra.mrb[66].mxu0 %vm403_vm0, %v81_v9  ;;  %6813 = vmatmul.mubr.msk.f32.gmra.mrb[66].mxu1 %vm403_vm0, %v365_v19  ;;  %v113_v9 = vld [vmem:[%s9333_s0 + $0x318] sm:$0xff] }
  0x93   :  { %6389 = vmatprep.mubr.msk.f32.mxu0 %vm403_vm0, %v82_v10  ;;  %6815 = vmatprep.mubr.msk.f32.mxu1 %vm403_vm0, %v366_v20  ;;  %v114_v10 = vld [vmem:[%s9333_s0 + $0x320] sm:$0xff]  ;;  %v397_v19 = vld [vmem:[%s9333_s0 + $0xbf8] sm:$0xff]  ;;  %v3930_v20 = vld [vmem:[%s9334_s2 + $0x8] sm:$0xff] }
  0x96   :  { %6390 = vmatmul.mubr.msk.f32.gmra.mrb[68].mxu0 %vm403_vm0, %v83_v13  ;;  %6816 = vmatmul.mubr.msk.f32.gmra.mrb[68].mxu1 %vm403_vm0, %v367_v23  ;;  %v115_v13 = vld [vmem:[%s9333_s0 + $0x328] sm:$0xff]  ;;  %v121_v23 = vld [vmem:[%s9333_s0 + $0x358] sm:$0xff] }
  0x97   :  { %6392 = vmatprep.mubr.msk.f32.mxu0 %vm403_vm0, %v84_v14  ;;  %6818 = vmatprep.mubr.msk.f32.mxu1 %vm403_vm0, %v368_v24  ;;  %v116_v14 = vld [vmem:[%s9333_s0 + $0x330] sm:$0xff]  ;;  %v122_v24 = vld [vmem:[%s9333_s0 + $0x360] sm:$0xff] }
  0x9a   :  { %6393 = vmatmul.mubr.msk.f32.gmra.mrb[70].mxu0 %vm403_vm0, %v85_v17  ;;  %6819 = vmatmul.mubr.msk.f32.gmra.mrb[70].mxu1 %vm403_vm0, %v369_v27  ;;  %v117_v17 = vld [vmem:[%s9333_s0 + $0x338] sm:$0xff] }
  0x9b   :  { %6395 = vmatprep.mubr.msk.f32.mxu0 %vm403_vm0, %v86_v18  ;;  %6821 = vmatprep.mubr.msk.f32.mxu1 %vm403_vm0, %v370_v28  ;;  %v118_v18 = vld [vmem:[%s9333_s0 + $0x340] sm:$0xff] }
  0x9e   :  { %6396 = vmatmul.mubr.msk.f32.gmra.mrb[72].mxu0 %vm403_vm0, %v87_v21  ;;  %6822 = vmatmul.mubr.msk.f32.gmra.mrb[72].mxu1 %vm403_vm0, %v371_v31  ;;  %v119_v21 = vld [vmem:[%s9333_s0 + $0x348] sm:$0xff] }
  0x9f   :  { %6398 = vmatprep.mubr.msk.f32.mxu0 %vm403_vm0, %v88_v22  ;;  %6824 = vmatprep.mubr.msk.f32.mxu1 %vm403_vm0, %v372_v32  ;;  %v120_v22 = vld [vmem:[%s9333_s0 + $0x350] sm:$0xff] }
  0xa2   :  { %6399 = vmatmul.mubr.msk.f32.gmra.mrb[74].mxu0 %vm403_vm0, %v89_v25  ;;  %6825 = vmatmul.mubr.msk.f32.gmra.mrb[74].mxu1 %vm403_vm0, %v373_v35 }
  0xa3   :  { %6401 = vmatprep.mubr.msk.f32.mxu0 %vm403_vm0, %v90_v26  ;;  %6827 = vmatprep.mubr.msk.f32.mxu1 %vm403_vm0, %v374_v36  ;;  %v125_v36 = vld [vmem:[%s9333_s0 + $0x378] sm:$0xff] }
  0xa6   :  { %6402 = vmatmul.mubr.msk.f32.gmra.mrb[76].mxu0 %vm403_vm0, %v91_v29  ;;  %6828 = vmatmul.mubr.msk.f32.gmra.mrb[76].mxu1 %vm403_vm0, %v375_v39  ;;  %v123_v29 = vld [vmem:[%s9333_s0 + $0x368] sm:$0xff] }
  0xa7   :  { %6404 = vmatprep.mubr.msk.f32.mxu0 %vm403_vm0, %v92_v30  ;;  %6830 = vmatprep.mubr.msk.f32.mxu1 %vm403_vm0, %v376_v40  ;;  %v124_v30 = vld [vmem:[%s9333_s0 + $0x370] sm:$0xff] }
  0xaa   :  { %6405 = vmatmul.mubr.msk.f32.gmra.mrb[78].mxu0 %vm403_vm0, %v93_v33  ;;  %6831 = vmatmul.mubr.msk.f32.gmra.mrb[78].mxu1 %vm403_vm0, %v377_v43  ;;  %v127_v43 = vld [vmem:[%s9333_s0 + $0x388] sm:$0xff] }
  0xab   :  { %6407 = vmatprep.mubr.msk.f32.mxu0 %vm403_vm0, %v94_v34  ;;  %6833 = vmatprep.mubr.msk.f32.mxu1 %vm403_vm0, %v378_v44  ;;  %v128_v44 = vld [vmem:[%s9333_s0 + $0x390] sm:$0xff] }
  0xae   :  { %6408 = vmatmul.mubr.msk.f32.gmra.mrb[80].mxu0 %vm403_vm0, %v95_v37  ;;  %6834 = vmatmul.mubr.msk.f32.gmra.mrb[80].mxu1 %vm403_vm0, %v379_v47  ;;  %v126_v37 = vld [vmem:[%s9333_s0 + $0x380] sm:$0xff] }
  0xaf   :  { %6410 = vmatprep.mubr.msk.f32.mxu0 %vm403_vm0, %v96_v38  ;;  %6836 = vmatprep.mubr.msk.f32.mxu1 %vm403_vm0, %v380_v48 }
  0xb2   :  { %6411 = vmatmul.mubr.msk.f32.gmra.mrb[82].mxu0 %vm403_vm0, %v97_v41  ;;  %6837 = vmatmul.mubr.msk.f32.gmra.mrb[82].mxu1 %vm403_vm0, %v381_v51  ;;  %v130_v51 = vld [vmem:[%s9333_s0 + $0x3a0] sm:$0xff] }
  0xb3   :  { %6413 = vmatprep.mubr.msk.f32.mxu0 %vm403_vm0, %v98_v42  ;;  %6839 = vmatprep.mubr.msk.f32.mxu1 %vm403_vm0, %v382_v52 }
  0xb6   :  { %6414 = vmatmul.mubr.msk.f32.gmra.mrb[84].mxu0 %vm403_vm0, %v99_v45  ;;  %6840 = vmatmul.mubr.msk.f32.gmra.mrb[84].mxu1 %vm403_vm0, %v383_v55 }
  0xb7   :  { %6416 = vmatprep.mubr.msk.f32.mxu0 %vm403_vm0, %v100_v46  ;;  %6842 = vmatprep.mubr.msk.f32.mxu1 %vm403_vm0, %v384_v56 }
  0xba   :  { %6417 = vmatmul.mubr.msk.f32.gmra.mrb[86].mxu0 %vm403_vm0, %v101_v49  ;;  %6843 = vmatmul.mubr.msk.f32.gmra.mrb[86].mxu1 %vm403_vm0, %v385_v59 }
  0xbb   :  { %6419 = vmatprep.mubr.msk.f32.mxu0 %vm403_vm0, %v102_v50  ;;  %6845 = vmatprep.mubr.msk.f32.mxu1 %vm403_vm0, %v386_v60  ;;  %v129_v50 = vld [vmem:[%s9333_s0 + $0x398] sm:$0xff] }
  0xbe   :  { %6420 = vmatmul.mubr.msk.f32.gmra.mrb[88].mxu0 %vm403_vm0, %v103_v53  ;;  %6846 = vmatmul.mubr.msk.f32.gmra.mrb[88].mxu1 %vm403_vm0, %v387_v63 }
  0xbf   :  { %6422 = vmatprep.mubr.msk.f32.mxu0 %vm403_vm0, %v104_v54  ;;  %6848 = vmatprep.mubr.msk.f32.mxu1 %vm403_vm0, %v388_v0  ;;  %v133_v0 = vld [vmem:[%s9333_s0 + $0x3b8] sm:$0xff] }
  0xc2   :  { %6423 = vmatmul.mubr.msk.f32.gmra.mrb[90].mxu0 %vm403_vm0, %v105_v57  ;;  %6849 = vmatmul.mubr.msk.f32.gmra.mrb[90].mxu1 %vm403_vm0, %v389_v3  ;;  %v131_v57 = vld [vmem:[%s9333_s0 + $0x3a8] sm:$0xff] }
  0xc3   :  { %6425 = vmatprep.mubr.msk.f32.mxu0 %vm403_vm0, %v106_v58  ;;  %6851 = vmatprep.mubr.msk.f32.mxu1 %vm403_vm0, %v390_v4  ;;  %v132_v58 = vld [vmem:[%s9333_s0 + $0x3b0] sm:$0xff] }
  0xc6   :  { %6426 = vmatmul.mubr.msk.f32.gmra.mrb[92].mxu0 %vm403_vm0, %v107_v61  ;;  %6852 = vmatmul.mubr.msk.f32.gmra.mrb[92].mxu1 %vm403_vm0, %v391_v7  ;;  %v135_v7 = vld [vmem:[%s9333_s0 + $0x3c8] sm:$0xff] }
  0xc7   :  { %6428 = vmatprep.mubr.msk.f32.mxu0 %vm403_vm0, %v108_v62  ;;  %6854 = vmatprep.mubr.msk.f32.mxu1 %vm403_vm0, %v392_v8  ;;  %v136_v8 = vld [vmem:[%s9333_s0 + $0x3d0] sm:$0xff] }
  0xca   :  { %6429 = vmatmul.mubr.msk.f32.gmra.mrb[94].mxu0 %vm403_vm0, %v109_v1  ;;  %6855 = vmatmul.mubr.msk.f32.gmra.mrb[94].mxu1 %vm403_vm0, %v393_v11  ;;  %v134_v1 = vld [vmem:[%s9333_s0 + $0x3c0] sm:$0xff] }
  0xcb   :  { %6431 = vmatprep.mubr.msk.f32.mxu0 %vm403_vm0, %v110_v2  ;;  %6857 = vmatprep.mubr.msk.f32.mxu1 %vm403_vm0, %v394_v12 }
  0xce   :  { %6432 = vmatmul.mubr.msk.f32.gmra.mrb[96].mxu0 %vm403_vm0, %v111_v5  ;;  %6858 = vmatmul.mubr.msk.f32.gmra.mrb[96].mxu1 %vm403_vm0, %v395_v15  ;;  %v138_v15 = vld [vmem:[%s9333_s0 + $0x3e0] sm:$0xff] }
  0xcf   :  { %6434 = vmatprep.mubr.msk.f32.mxu0 %vm403_vm0, %v112_v6  ;;  %6860 = vmatprep.mubr.msk.f32.mxu1 %vm403_vm0, %v396_v16 }
  0xd2   :  { %6435 = vmatmul.mubr.msk.f32.gmra.mrb[98].mxu0 %vm403_vm0, %v113_v9  ;;  %6861 = vmatmul.mubr.msk.f32.gmra.mrb[98].mxu1 %vm403_vm0, %v397_v19 }
  0xd3   :  { %6437 = vmatprep.mubr.msk.f32.mxu0 %vm403_vm0, %v114_v10  ;;  %4041 = vmatprep.mubr.f32.mxu1 %v3930_v20 }
  0xd6   :  { %6438 = vmatmul.mubr.msk.f32.gmra.mrb[100].mxu0 %vm403_vm0, %v115_v13 }
  0xd7   :  { %6440 = vmatprep.mubr.msk.f32.mxu0 %vm403_vm0, %v116_v14  ;;  %v137_v14 = vld [vmem:[%s9333_s0 + $0x3d8] sm:$0xff] }
  0xda   :  { %6441 = vmatmul.mubr.msk.f32.gmra.mrb[102].mxu0 %vm403_vm0, %v117_v17 }
  0xdb   :  { %6443 = vmatprep.mubr.msk.f32.mxu0 %vm403_vm0, %v118_v18 }
  0xde   :  { %6444 = vmatmul.mubr.msk.f32.gmra.mrb[104].mxu0 %vm403_vm0, %v119_v21  ;;  %v139_v21 = vld [vmem:[%s9333_s0 + $0x3e8] sm:$0xff] }
  0xdf   :  { %6446 = vmatprep.mubr.msk.f32.mxu0 %vm403_vm0, %v120_v22  ;;  %v140_v22 = vld [vmem:[%s9333_s0 + $0x3f0] sm:$0xff] }
  0xe1   :  { %v6289_v25 = vpop.f32.mrb[0].mxu0 }
  0xe2   :  { %v3546_v26 = vmax.f32 %v6289_v25, 0.0  ;;  %v1626_v27 = vpop.f32.mrb[1].mxu0  ;;  %6447 = vmatmul.mubr.msk.f32.gmra.mrb[106].mxu0 %vm403_vm0, %v121_v23 }
  0xe3   :  { %v3545_v28 = vmax.f32 %v1626_v27, 0.0  ;;  %6449 = vmatprep.mubr.msk.f32.mxu0 %vm403_vm0, %v122_v24 }
  0xe5   :  { %v8159_v31 = vpack.c.bf16 %v3546_v26, %v3545_v28  ;;  %v6292_v32 = vpop.f32.mrb[2].mxu0  ;;  %v141_v28 = vld [vmem:[%s9333_s0 + $0x3f8] sm:$0xff] }
  0xe6   :  { %v3548_v33 = vmax.f32 %v6292_v32, 0.0  ;;  %v1636_v34 = vpop.f32.mrb[3].mxu0  ;;  %6450 = vmatmul.mubr.msk.f32.gmra.mrb[108].mxu0 %vm403_vm0, %v123_v29  ;;  %v142_v29 = vld [vmem:[%s9333_s0 + $0x400] sm:$0xff] }
  0xe7   :  { %v3547_v35 = vmax.f32 %v1636_v34, 0.0  ;;  %6452 = vmatprep.mubr.msk.f32.mxu0 %vm403_vm0, %v124_v30 }
  0xe9   :  { %v8169_v38 = vpack.c.bf16 %v3548_v33, %v3547_v35  ;;  %v6295_v39 = vpop.f32.mrb[4].mxu0 }
  0xea   :  { %v3550_v40 = vmax.f32 %v6295_v39, 0.0  ;;  %v1646_v41 = vpop.f32.mrb[5].mxu0  ;;  %6453 = vmatmul.mubr.msk.f32.gmra.mrb[110].mxu0 %vm403_vm0, %v125_v36  ;;  %v143_v36 = vld [vmem:[%s9333_s0 + $0x408] sm:$0xff] }
  0xeb   :  { %v3549_v42 = vmax.f32 %v1646_v41, 0.0  ;;  %6455 = vmatprep.mubr.msk.f32.mxu0 %vm403_vm0, %v126_v37 }
  0xed   :  { %v8179_v45 = vpack.c.bf16 %v3550_v40, %v3549_v42  ;;  %v6298_v46 = vpop.f32.mrb[6].mxu0 }
  0xee   :  { %v3552_v47 = vmax.f32 %v6298_v46, 0.0  ;;  %v1656_v48 = vpop.f32.mrb[7].mxu0  ;;  %6456 = vmatmul.mubr.msk.f32.gmra.mrb[112].mxu0 %vm403_vm0, %v127_v43  ;;  %v145_v43 = vld [vmem:[%s9333_s0 + $0x418] sm:$0xff] }
  0xef   :  { %v3551_v49 = vmax.f32 %v1656_v48, 0.0  ;;  %6458 = vmatprep.mubr.msk.f32.mxu0 %vm403_vm0, %v128_v44 }
  0xf1   :  { %v8189_v52 = vpack.c.bf16 %v3552_v47, %v3551_v49  ;;  %v6301_v53 = vpop.f32.mrb[8].mxu0 }
  0xf2   :  { %v3554_v54 = vmax.f32 %v6301_v53, 0.0  ;;  %v1666_v55 = vpop.f32.mrb[9].mxu0  ;;  %6459 = vmatmul.mubr.msk.f32.gmra.mrb[114].mxu0 %vm403_vm0, %v129_v50  ;;  %v147_v50 = vld [vmem:[%s9333_s0 + $0x428] sm:$0xff] }
  0xf3   :  { %v3553_v56 = vmax.f32 %v1666_v55, 0.0  ;;  %6461 = vmatprep.mubr.msk.f32.mxu0 %vm403_vm0, %v130_v51 }
  0xf5   :  { %v8199_v59 = vpack.c.bf16 %v3554_v54, %v3553_v56  ;;  %v6304_v60 = vpop.f32.mrb[10].mxu0 }
  0xf6   :  { %v3556_v61 = vmax.f32 %v6304_v60, 0.0  ;;  %v1676_v62 = vpop.f32.mrb[11].mxu0  ;;  %6462 = vmatmul.mubr.msk.f32.gmra.mrb[116].mxu0 %vm403_vm0, %v131_v57  ;;  %v149_v57 = vld [vmem:[%s9333_s0 + $0x438] sm:$0xff] }
  0xf7   :  { %v3555_v63 = vmax.f32 %v1676_v62, 0.0  ;;  %6464 = vmatprep.mubr.msk.f32.mxu0 %vm403_vm0, %v132_v58 }
  0xf9   :  { %v8209_v2 = vpack.c.bf16 %v3556_v61, %v3555_v63  ;;  %v6307_v3 = vpop.f32.mrb[12].mxu0 }
  0xfa   :  { %v3558_v4 = vmax.f32 %v6307_v3, 0.0  ;;  %v1686_v5 = vpop.f32.mrb[13].mxu0  ;;  %6465 = vmatmul.mubr.msk.f32.gmra.mrb[118].mxu0 %vm403_vm0, %v133_v0  ;;  %v151_v0 = vld [vmem:[%s9333_s0 + $0x448] sm:$0xff] }
  0xfb   :  { %v3557_v6 = vmax.f32 %v1686_v5, 0.0  ;;  %6467 = vmatprep.mubr.msk.f32.mxu0 %vm403_vm0, %v134_v1 }
  0xfd   :  { %v8219_v9 = vpack.c.bf16 %v3558_v4, %v3557_v6  ;;  %v6310_v10 = vpop.f32.mrb[14].mxu0 }
  0xfe   :  { %v3560_v11 = vmax.f32 %v6310_v10, 0.0  ;;  %v1696_v12 = vpop.f32.mrb[15].mxu0  ;;  %6468 = vmatmul.mubr.msk.f32.gmra.mrb[120].mxu0 %vm403_vm0, %v135_v7  ;;  %v153_v7 = vld [vmem:[%s9333_s0 + $0x458] sm:$0xff] }
  0xff   :  { %v3559_v13 = vmax.f32 %v1696_v12, 0.0  ;;  %6470 = vmatprep.mubr.msk.f32.mxu0 %vm403_vm0, %v136_v8 }
 0x101   :  { %v8229_v16 = vpack.c.bf16 %v3560_v11, %v3559_v13  ;;  %v6313_v17 = vpop.f32.mrb[16].mxu0 }
 0x102   :  { %v3562_v18 = vmax.f32 %v6313_v17, 0.0  ;;  %v1706_v19 = vpop.f32.mrb[17].mxu0  ;;  %6471 = vmatmul.mubr.msk.f32.gmra.mrb[122].mxu0 %vm403_vm0, %v137_v14  ;;  %v155_v14 = vld [vmem:[%s9333_s0 + $0x468] sm:$0xff] }
 0x103   :  { %v3561_v20 = vmax.f32 %v1706_v19, 0.0  ;;  %6473 = vmatprep.mubr.msk.f32.mxu0 %vm403_vm0, %v138_v15  ;;  %v3929_v15 = vld [vmem:[%s9334_s2] sm:$0xff]  ;;  %v3954_v19 = vld [vmem:[%s9334_s2 + $0xc8] sm:$0xff] }
 0x105   :  { %v6316_v23 = vpop.f32.mrb[18].mxu0  ;;  %v6881_v24 = vpack.c.bf16 %v3562_v18, %v3561_v20 }
 0x106   :  { %v3564_v25 = vmax.f32 %v6316_v23, 0.0  ;;  %v1716_v26 = vpop.f32.mrb[19].mxu0  ;;  %6474 = vmatmul.mubr.msk.f32.gmra.mrb[124].mxu0 %vm403_vm0, %v139_v21  ;;  %v158_v23 = vld [vmem:[%s9333_s0 + $0x480] sm:$0xff] }
 0x107   :  { %v3563_v27 = vmax.f32 %v1716_v26, 0.0  ;;  %6882 = vmatprep.subr.bf16.mxu1 %v6881_v24  ;;  %6476 = vmatprep.mubr.msk.f32.mxu0 %vm403_vm0, %v140_v22  ;;  %v157_v22 = vld [vmem:[%s9333_s0 + $0x478] sm:$0xff]  ;;  %v3953_v24 = vld [vmem:[%s9334_s2 + $0xc0] sm:$0xff] }
 0x108   :  { %6884 = vmatpush3.bf16.msra.mxu1 %v8159_v31  ;;  %v144_v31 = vld [vmem:[%s9333_s0 + $0x410] sm:$0xff] }
 0x109   :  { %v6319_v30 = vpop.f32.mrb[20].mxu0  ;;  %v6885_v32 = vpack.c.bf16 %v3564_v25, %v3563_v27  ;;  %v3932_v27 = vld [vmem:[%s9334_s2 + $0x18] sm:$0xff] }
 0x10a   :  { %v3566_v33 = vmax.f32 %v6319_v30, 0.0  ;;  %v1726_v34 = vpop.f32.mrb[21].mxu0  ;;  %6477 = vmatmul.mubr.msk.f32.gmra.mrb[126].mxu0 %vm403_vm0, %v141_v28 }
 0x10b   :  { %v3565_v35 = vmax.f32 %v1726_v34, 0.0  ;;  %6886 = vmatprep.subr.bf16.mxu1 %v6885_v32  ;;  %6479 = vmatprep.mubr.msk.f32.mxu0 %vm403_vm0, %v142_v29  ;;  %v159_v32 = vld [vmem:[%s9333_s0 + $0x488] sm:$0xff] }
 0x10c   :  { %6888 = vmatpush3.bf16.msra.mxu1 %v8169_v38  ;;  %v146_v38 = vld [vmem:[%s9333_s0 + $0x420] sm:$0xff] }
 0x10d   :  { %v6322_v37 = vpop.f32.mrb[22].mxu0  ;;  %v6889_v39 = vpack.c.bf16 %v3566_v33, %v3565_v35  ;;  %v160_v33 = vld [vmem:[%s9333_s0 + $0x490] sm:$0xff] }
 0x10e   :  { %v3568_v40 = vmax.f32 %v6322_v37, 0.0  ;;  %v1736_v41 = vpop.f32.mrb[23].mxu0  ;;  %6480 = vmatmul.mubr.msk.f32.gmra.mrb[128].mxu0 %vm403_vm0, %v143_v36 }
 0x10f   :  { %v3567_v42 = vmax.f32 %v1736_v41, 0.0  ;;  %6890 = vmatprep.subr.bf16.mxu1 %v6889_v39  ;;  %6482 = vmatprep.mubr.msk.f32.mxu0 %vm403_vm0, %v144_v31  ;;  %v161_v39 = vld [vmem:[%s9333_s0 + $0x498] sm:$0xff] }
 0x110   :  { %6892 = vmatpush3.bf16.msra.mxu1 %v8179_v45  ;;  %v148_v45 = vld [vmem:[%s9333_s0 + $0x430] sm:$0xff] }
 0x111   :  { %v6325_v44 = vpop.f32.mrb[24].mxu0  ;;  %v6893_v46 = vpack.c.bf16 %v3568_v40, %v3567_v42  ;;  %v162_v40 = vld [vmem:[%s9333_s0 + $0x4a0] sm:$0xff] }
 0x112   :  { %v3570_v47 = vmax.f32 %v6325_v44, 0.0  ;;  %v1746_v48 = vpop.f32.mrb[25].mxu0  ;;  %6483 = vmatmul.mubr.msk.f32.gmra.mrb[130].mxu0 %vm403_vm0, %v145_v43 }
 0x113   :  { %v3569_v49 = vmax.f32 %v1746_v48, 0.0  ;;  %6894 = vmatprep.subr.bf16.mxu1 %v6893_v46  ;;  %6485 = vmatprep.mubr.msk.f32.mxu0 %vm403_vm0, %v146_v38  ;;  %v163_v46 = vld [vmem:[%s9333_s0 + $0x4a8] sm:$0xff] }
 0x114   :  { %6896 = vmatpush3.bf16.msra.mxu1 %v8189_v52  ;;  %v150_v52 = vld [vmem:[%s9333_s0 + $0x440] sm:$0xff] }
 0x115   :  { %v6328_v51 = vpop.f32.mrb[26].mxu0  ;;  %v6897_v53 = vpack.c.bf16 %v3570_v47, %v3569_v49  ;;  %v164_v47 = vld [vmem:[%s9333_s0 + $0x4b0] sm:$0xff] }
 0x116   :  { %v3572_v54 = vmax.f32 %v6328_v51, 0.0  ;;  %v1756_v55 = vpop.f32.mrb[27].mxu0  ;;  %6486 = vmatmul.mubr.msk.f32.gmra.mrb[132].mxu0 %vm403_vm0, %v147_v50 }
 0x117   :  { %v3571_v56 = vmax.f32 %v1756_v55, 0.0  ;;  %6898 = vmatprep.subr.bf16.mxu1 %v6897_v53  ;;  %6488 = vmatprep.mubr.msk.f32.mxu0 %vm403_vm0, %v148_v45  ;;  %v165_v53 = vld [vmem:[%s9333_s0 + $0x4b8] sm:$0xff] }
 0x118   :  { %6900 = vmatpush3.bf16.msra.mxu1 %v8199_v59  ;;  %v152_v59 = vld [vmem:[%s9333_s0 + $0x450] sm:$0xff] }
 0x119   :  { %v6331_v58 = vpop.f32.mrb[28].mxu0  ;;  %v6901_v60 = vpack.c.bf16 %v3572_v54, %v3571_v56  ;;  %v166_v54 = vld [vmem:[%s9333_s0 + $0x4c0] sm:$0xff] }
 0x11a   :  { %v3574_v61 = vmax.f32 %v6331_v58, 0.0  ;;  %v1766_v62 = vpop.f32.mrb[29].mxu0  ;;  %6489 = vmatmul.mubr.msk.f32.gmra.mrb[134].mxu0 %vm403_vm0, %v149_v57 }
 0x11b   :  { %v3573_v63 = vmax.f32 %v1766_v62, 0.0  ;;  %6902 = vmatprep.subr.bf16.mxu1 %v6901_v60  ;;  %6491 = vmatprep.mubr.msk.f32.mxu0 %vm403_vm0, %v150_v52  ;;  %v167_v60 = vld [vmem:[%s9333_s0 + $0x4c8] sm:$0xff] }
 0x11c   :  { %6904 = vmatpush3.bf16.msra.mxu1 %v8209_v2  ;;  %v154_v2 = vld [vmem:[%s9333_s0 + $0x460] sm:$0xff] }
 0x11d   :  { %v6905_v1 = vpack.c.bf16 %v3574_v61, %v3573_v63  ;;  %v6334_v3 = vpop.f32.mrb[30].mxu0  ;;  %v168_v61 = vld [vmem:[%s9333_s0 + $0x4d0] sm:$0xff] }
 0x11e   :  { %v3576_v4 = vmax.f32 %v6334_v3, 0.0  ;;  %v1776_v5 = vpop.f32.mrb[31].mxu0  ;;  %6492 = vmatmul.mubr.msk.f32.gmra.mrb[136].mxu0 %vm403_vm0, %v151_v0  ;;  %v169_v3 = vld [vmem:[%s9333_s0 + $0x4d8] sm:$0xff] }
 0x11f   :  { %v3575_v6 = vmax.f32 %v1776_v5, 0.0  ;;  %6906 = vmatprep.subr.bf16.mxu1 %v6905_v1  ;;  %6494 = vmatprep.mubr.msk.f32.mxu0 %vm403_vm0, %v152_v59 }
 0x120   :  { %6908 = vmatpush3.bf16.msra.mxu1 %v8219_v9  ;;  %v156_v9 = vld [vmem:[%s9333_s0 + $0x470] sm:$0xff] }
 0x121   :  { %v6909_v8 = vpack.c.bf16 %v3576_v4, %v3575_v6  ;;  %v6337_v10 = vpop.f32.mrb[32].mxu0  ;;  %v170_v4 = vld [vmem:[%s9333_s0 + $0x4e0] sm:$0xff] }
 0x122   :  { %v3578_v11 = vmax.f32 %v6337_v10, 0.0  ;;  %v1786_v12 = vpop.f32.mrb[33].mxu0  ;;  %6495 = vmatmul.mubr.msk.f32.gmra.mrb[138].mxu0 %vm403_vm0, %v153_v7  ;;  %v171_v10 = vld [vmem:[%s9333_s0 + $0x4e8] sm:$0xff] }
 0x123   :  { %v3577_v13 = vmax.f32 %v1786_v12, 0.0  ;;  %6910 = vmatprep.subr.bf16.mxu1 %v6909_v8  ;;  %6497 = vmatprep.mubr.msk.f32.mxu0 %vm403_vm0, %v154_v2 }
 0x124   :  { %6912 = vmatpush3.bf16.msra.mxu1 %v8229_v16 }
 0x125   :  { %v8314_v17 = vpack.c.bf16 %v3578_v11, %v3577_v13  ;;  %v6340_v18 = vpop.f32.mrb[34].mxu0  ;;  %v172_v11 = vld [vmem:[%s9333_s0 + $0x4f0] sm:$0xff] }
 0x126   :  { %v3580_v20 = vmax.f32 %v6340_v18, 0.0  ;;  %v1796_v21 = vpop.f32.mrb[35].mxu0  ;;  %6498 = vmatmul.mubr.msk.f32.gmra.mrb[140].mxu0 %vm403_vm0, %v155_v14  ;;  %v173_v18 = vld [vmem:[%s9333_s0 + $0x4f8] sm:$0xff] }
 0x127   :  { %v3579_v16 = vmax.f32 %v1796_v21, 0.0  ;;  %6500 = vmatprep.mubr.msk.f32.mxu0 %vm403_vm0, %v156_v9  ;;  %4042 = vmatmul.mubr.f32.vlgmr.msra.gmra.mrb[100].mxu1 %v3929_v15 }
 0x128   :  { %4046 = vmatprep.mubr.f32.mxu1 %v3954_v19  ;;  %v174_v19 = vld [vmem:[%s9333_s0 + $0x500] sm:$0xff] }
 0x129   :  { %v8330_v25 = vpack.c.bf16 %v3580_v20, %v3579_v16  ;;  %v6343_v26 = vpop.f32.mrb[36].mxu0 }
 0x12a   :  { %v3582_v28 = vmax.f32 %v6343_v26, 0.0  ;;  %v1806_v29 = vpop.f32.mrb[37].mxu0  ;;  %6501 = vmatmul.mubr.msk.f32.gmra.mrb[142].mxu0 %vm403_vm0, %v157_v22 }
 0x12b   :  { %v3581_v30 = vmax.f32 %v1806_v29, 0.0  ;;  %6503 = vmatprep.mubr.msk.f32.mxu0 %vm403_vm0, %v158_v23  ;;  %4047 = vmatmul.mubr.f32.gmra.mrb[102].mxu1 %v3953_v24  ;;  %v175_v24 = vld [vmem:[%s9333_s0 + $0x508] sm:$0xff] }
 0x12c   :  { %4116 = vmatprep.mubr.f32.mxu1 %v3932_v27 }
 0x12d   :  { %v8343_v34 = vpack.c.bf16 %v3582_v28, %v3581_v30  ;;  %v6346_v35 = vpop.f32.mrb[38].mxu0 }
 0x12e   :  { %v3584_v36 = vmax.f32 %v6346_v35, 0.0  ;;  %v1816_v31 = vpop.f32.mrb[39].mxu0  ;;  %6504 = vmatmul.mubr.msk.f32.gmra.mrb[144].mxu0 %vm403_vm0, %v159_v32  ;;  %v177_v32 = vld [vmem:[%s9333_s0 + $0x518] sm:$0xff] }
 0x12f   :  { %v3583_v37 = vmax.f32 %v1816_v31, 0.0  ;;  %6506 = vmatprep.mubr.msk.f32.mxu0 %vm403_vm0, %v160_v33 }
 0x131   :  { %v8353_v41 = vpack.c.bf16 %v3584_v36, %v3583_v37  ;;  %v6349_v42 = vpop.f32.mrb[40].mxu0 }
 0x132   :  { %v3586_v43 = vmax.f32 %v6349_v42, 0.0  ;;  %v1826_v38 = vpop.f32.mrb[41].mxu0  ;;  %6507 = vmatmul.mubr.msk.f32.gmra.mrb[146].mxu0 %vm403_vm0, %v161_v39  ;;  %v179_v39 = vld [vmem:[%s9333_s0 + $0x528] sm:$0xff] }
 0x133   :  { %v3585_v44 = vmax.f32 %v1826_v38, 0.0  ;;  %6509 = vmatprep.mubr.msk.f32.mxu0 %vm403_vm0, %v162_v40 }
 0x135   :  { %v8363_v48 = vpack.c.bf16 %v3586_v43, %v3585_v44  ;;  %v6352_v49 = vpop.f32.mrb[42].mxu0 }
 0x136   :  { %v3588_v50 = vmax.f32 %v6352_v49, 0.0  ;;  %v1836_v45 = vpop.f32.mrb[43].mxu0  ;;  %6510 = vmatmul.mubr.msk.f32.gmra.mrb[148].mxu0 %vm403_vm0, %v163_v46  ;;  %v181_v46 = vld [vmem:[%s9333_s0 + $0x538] sm:$0xff] }
 0x137   :  { %v3587_v51 = vmax.f32 %v1836_v45, 0.0  ;;  %6512 = vmatprep.mubr.msk.f32.mxu0 %vm403_vm0, %v164_v47 }
 0x139   :  { %v8373_v55 = vpack.c.bf16 %v3588_v50, %v3587_v51  ;;  %v6355_v56 = vpop.f32.mrb[44].mxu0 }
 0x13a   :  { %v3590_v57 = vmax.f32 %v6355_v56, 0.0  ;;  %v1846_v52 = vpop.f32.mrb[45].mxu0  ;;  %6513 = vmatmul.mubr.msk.f32.gmra.mrb[150].mxu0 %vm403_vm0, %v165_v53  ;;  %v183_v53 = vld [vmem:[%s9333_s0 + $0x548] sm:$0xff] }
 0x13b   :  { %v3589_v58 = vmax.f32 %v1846_v52, 0.0  ;;  %6515 = vmatprep.mubr.msk.f32.mxu0 %vm403_vm0, %v166_v54 }
 0x13d   :  { %v8383_v62 = vpack.c.bf16 %v3590_v57, %v3589_v58  ;;  %v6358_v63 = vpop.f32.mrb[46].mxu0 }
 0x13e   :  { %v3592_v0 = vmax.f32 %v6358_v63, 0.0  ;;  %v1856_v59 = vpop.f32.mrb[47].mxu0  ;;  %6516 = vmatmul.mubr.msk.f32.gmra.mrb[152].mxu0 %vm403_vm0, %v167_v60  ;;  %v185_v60 = vld [vmem:[%s9333_s0 + $0x558] sm:$0xff] }
 0x13f   :  { %v3591_v1 = vmax.f32 %v1856_v59, 0.0  ;;  %6518 = vmatprep.mubr.msk.f32.mxu0 %vm403_vm0, %v168_v61 }
 0x141   :  { %v8393_v5 = vpack.c.bf16 %v3592_v0, %v3591_v1  ;;  %v6361_v6 = vpop.f32.mrb[48].mxu0 }
 0x142   :  { %v3594_v7 = vmax.f32 %v6361_v6, 0.0  ;;  %v1866_v2 = vpop.f32.mrb[49].mxu0  ;;  %6519 = vmatmul.mubr.msk.f32.gmra.mrb[154].mxu0 %vm403_vm0, %v169_v3  ;;  %v187_v3 = vld [vmem:[%s9333_s0 + $0x568] sm:$0xff] }
 0x143   :  { %v3593_v8 = vmax.f32 %v1866_v2, 0.0  ;;  %6521 = vmatprep.mubr.msk.f32.mxu0 %vm403_vm0, %v170_v4  ;;  %v3931_v4 = vld [vmem:[%s9334_s2 + $0x10] sm:$0xff]  ;;  %v3956_v2 = vld [vmem:[%s9334_s2 + $0xd8] sm:$0xff] }
 0x145   :  { %v6913_v12 = vpack.c.bf16 %v3594_v7, %v3593_v8  ;;  %v6364_v13 = vpop.f32.mrb[50].mxu0 }
 0x146   :  { %v3596_v14 = vmax.f32 %v6364_v13, 0.0  ;;  %v1876_v9 = vpop.f32.mrb[51].mxu0  ;;  %6522 = vmatmul.mubr.msk.f32.gmra.mrb[156].mxu0 %vm403_vm0, %v171_v10  ;;  %v3955_v13 = vld [vmem:[%s9334_s2 + $0xd0] sm:$0xff] }
 0x147   :  { %v3595_v15 = vmax.f32 %v1876_v9, 0.0  ;;  %6914 = vmatprep.subr.bf16.mxu1 %v6913_v12  ;;  %6524 = vmatprep.mubr.msk.f32.mxu0 %vm403_vm0, %v172_v11  ;;  %v189_v11 = vld [vmem:[%s9333_s0 + $0x578] sm:$0xff]  ;;  %v190_v12 = vld [vmem:[%s9333_s0 + $0x580] sm:$0xff] }
 0x148   :  { %6916 = vmatpush3.bf16.msra.mxu1 %v8314_v17  ;;  %v176_v17 = vld [vmem:[%s9333_s0 + $0x510] sm:$0xff] }
 0x149   :  { %v6917_v20 = vpack.c.bf16 %v3596_v14, %v3595_v15  ;;  %v6367_v21 = vpop.f32.mrb[52].mxu0  ;;  %v3934_v15 = vld [vmem:[%s9334_s2 + $0x28] sm:$0xff] }
 0x14a   :  { %v3598_v16 = vmax.f32 %v6367_v21, 0.0  ;;  %v1886_v22 = vpop.f32.mrb[53].mxu0  ;;  %6525 = vmatmul.mubr.msk.f32.gmra.mrb[158].mxu0 %vm403_vm0, %v173_v18  ;;  %v191_v21 = vld [vmem:[%s9333_s0 + $0x588] sm:$0xff] }
 0x14b   :  { %v3597_v23 = vmax.f32 %v1886_v22, 0.0  ;;  %6918 = vmatprep.subr.bf16.mxu1 %v6917_v20  ;;  %6527 = vmatprep.mubr.msk.f32.mxu0 %vm403_vm0, %v174_v19 }
 0x14c   :  { %6920 = vmatpush3.bf16.msra.mxu1 %v8330_v25  ;;  %v178_v25 = vld [vmem:[%s9333_s0 + $0x520] sm:$0xff] }
 0x14d   :  { %v6921_v26 = vpack.c.bf16 %v3598_v16, %v3597_v23  ;;  %v6370_v27 = vpop.f32.mrb[54].mxu0  ;;  %v192_v16 = vld [vmem:[%s9333_s0 + $0x590] sm:$0xff] }
 0x14e   :  { %v3600_v28 = vmax.f32 %v6370_v27, 0.0  ;;  %v1896_v29 = vpop.f32.mrb[55].mxu0  ;;  %6528 = vmatmul.mubr.msk.f32.gmra.mrb[160].mxu0 %vm403_vm0, %v175_v24  ;;  %v193_v27 = vld [vmem:[%s9333_s0 + $0x598] sm:$0xff] }
 0x14f   :  { %v3599_v30 = vmax.f32 %v1896_v29, 0.0  ;;  %6922 = vmatprep.subr.bf16.mxu1 %v6921_v26  ;;  %6530 = vmatprep.mubr.msk.f32.mxu0 %vm403_vm0, %v176_v17 }
 0x150   :  { %6924 = vmatpush3.bf16.msra.mxu1 %v8343_v34  ;;  %v180_v34 = vld [vmem:[%s9333_s0 + $0x530] sm:$0xff] }
 0x151   :  { %v6925_v33 = vpack.c.bf16 %v3600_v28, %v3599_v30  ;;  %v6373_v35 = vpop.f32.mrb[56].mxu0  ;;  %v194_v28 = vld [vmem:[%s9333_s0 + $0x5a0] sm:$0xff] }
 0x152   :  { %v3602_v36 = vmax.f32 %v6373_v35, 0.0  ;;  %v1906_v31 = vpop.f32.mrb[57].mxu0  ;;  %6531 = vmatmul.mubr.msk.f32.gmra.mrb[162].mxu0 %vm403_vm0, %v177_v32  ;;  %v195_v35 = vld [vmem:[%s9333_s0 + $0x5a8] sm:$0xff] }
 0x153   :  { %v3601_v37 = vmax.f32 %v1906_v31, 0.0  ;;  %6926 = vmatprep.subr.bf16.mxu1 %v6925_v33  ;;  %6533 = vmatprep.mubr.msk.f32.mxu0 %vm403_vm0, %v178_v25 }
 0x154   :  { %6928 = vmatpush3.bf16.msra.mxu1 %v8353_v41  ;;  %v182_v41 = vld [vmem:[%s9333_s0 + $0x540] sm:$0xff] }
 0x155   :  { %v6929_v40 = vpack.c.bf16 %v3602_v36, %v3601_v37  ;;  %v6376_v42 = vpop.f32.mrb[58].mxu0  ;;  %v196_v36 = vld [vmem:[%s9333_s0 + $0x5b0] sm:$0xff] }
 0x156   :  { %v3604_v43 = vmax.f32 %v6376_v42, 0.0  ;;  %v1916_v38 = vpop.f32.mrb[59].mxu0  ;;  %6534 = vmatmul.mubr.msk.f32.gmra.mrb[164].mxu0 %vm403_vm0, %v179_v39  ;;  %v197_v42 = vld [vmem:[%s9333_s0 + $0x5b8] sm:$0xff] }
 0x157   :  { %v3603_v44 = vmax.f32 %v1916_v38, 0.0  ;;  %6930 = vmatprep.subr.bf16.mxu1 %v6929_v40  ;;  %6536 = vmatprep.mubr.msk.f32.mxu0 %vm403_vm0, %v180_v34 }
 0x158   :  { %6932 = vmatpush3.bf16.msra.mxu1 %v8363_v48  ;;  %v184_v48 = vld [vmem:[%s9333_s0 + $0x550] sm:$0xff] }
 0x159   :  { %v6933_v47 = vpack.c.bf16 %v3604_v43, %v3603_v44  ;;  %v6379_v49 = vpop.f32.mrb[60].mxu0  ;;  %v198_v43 = vld [vmem:[%s9333_s0 + $0x5c0] sm:$0xff] }
 0x15a   :  { %v3606_v50 = vmax.f32 %v6379_v49, 0.0  ;;  %v1926_v45 = vpop.f32.mrb[61].mxu0  ;;  %6537 = vmatmul.mubr.msk.f32.gmra.mrb[166].mxu0 %vm403_vm0, %v181_v46  ;;  %v199_v49 = vld [vmem:[%s9333_s0 + $0x5c8] sm:$0xff] }
 0x15b   :  { %v3605_v51 = vmax.f32 %v1926_v45, 0.0  ;;  %6934 = vmatprep.subr.bf16.mxu1 %v6933_v47  ;;  %6539 = vmatprep.mubr.msk.f32.mxu0 %vm403_vm0, %v182_v41 }
 0x15c   :  { %6936 = vmatpush3.bf16.msra.mxu1 %v8373_v55  ;;  %v186_v55 = vld [vmem:[%s9333_s0 + $0x560] sm:$0xff] }
 0x15d   :  { %v6937_v54 = vpack.c.bf16 %v3606_v50, %v3605_v51  ;;  %v6382_v56 = vpop.f32.mrb[62].mxu0  ;;  %v200_v50 = vld [vmem:[%s9333_s0 + $0x5d0] sm:$0xff] }
 0x15e   :  { %v3608_v57 = vmax.f32 %v6382_v56, 0.0  ;;  %v1936_v52 = vpop.f32.mrb[63].mxu0  ;;  %6540 = vmatmul.mubr.msk.f32.gmra.mrb[168].mxu0 %vm403_vm0, %v183_v53  ;;  %v201_v56 = vld [vmem:[%s9333_s0 + $0x5d8] sm:$0xff] }
 0x15f   :  { %v3607_v58 = vmax.f32 %v1936_v52, 0.0  ;;  %6938 = vmatprep.subr.bf16.mxu1 %v6937_v54  ;;  %6542 = vmatprep.mubr.msk.f32.mxu0 %vm403_vm0, %v184_v48 }
 0x160   :  { %6940 = vmatpush3.bf16.msra.mxu1 %v8383_v62  ;;  %v188_v62 = vld [vmem:[%s9333_s0 + $0x570] sm:$0xff] }
 0x161   :  { %v6941_v61 = vpack.c.bf16 %v3608_v57, %v3607_v58  ;;  %v6385_v63 = vpop.f32.mrb[64].mxu0  ;;  %v202_v57 = vld [vmem:[%s9333_s0 + $0x5e0] sm:$0xff] }
 0x162   :  { %v3610_v0 = vmax.f32 %v6385_v63, 0.0  ;;  %v1946_v59 = vpop.f32.mrb[65].mxu0  ;;  %6543 = vmatmul.mubr.msk.f32.gmra.mrb[170].mxu0 %vm403_vm0, %v185_v60  ;;  %v203_v63 = vld [vmem:[%s9333_s0 + $0x5e8] sm:$0xff] }
 0x163   :  { %v3609_v1 = vmax.f32 %v1946_v59, 0.0  ;;  %6942 = vmatprep.subr.bf16.mxu1 %v6941_v61  ;;  %6545 = vmatprep.mubr.msk.f32.mxu0 %vm403_vm0, %v186_v55 }
 0x164   :  { %6944 = vmatpush3.bf16.msra.mxu1 %v8393_v5 }
 0x165   :  { %v8478_v6 = vpack.c.bf16 %v3610_v0, %v3609_v1  ;;  %v6388_v7 = vpop.f32.mrb[66].mxu0  ;;  %v204_v0 = vld [vmem:[%s9333_s0 + $0x5f0] sm:$0xff] }
 0x166   :  { %v3612_v8 = vmax.f32 %v6388_v7, 0.0  ;;  %v1956_v10 = vpop.f32.mrb[67].mxu0  ;;  %6546 = vmatmul.mubr.msk.f32.gmra.mrb[172].mxu0 %vm403_vm0, %v187_v3  ;;  %v205_v7 = vld [vmem:[%s9333_s0 + $0x5f8] sm:$0xff] }
 0x167   :  { %v3611_v5 = vmax.f32 %v1956_v10, 0.0  ;;  %6548 = vmatprep.mubr.msk.f32.mxu0 %vm403_vm0, %v188_v62  ;;  %4117 = vmatmul.mubr.f32.vlgmr.msra.gmra.mrb[104].mxu1 %v3931_v4 }
 0x168   :  { %4121 = vmatprep.mubr.f32.mxu1 %v3956_v2  ;;  %v206_v2 = vld [vmem:[%s9333_s0 + $0x600] sm:$0xff] }
 0x169   :  { %v8494_v14 = vpack.c.bf16 %v3612_v8, %v3611_v5  ;;  %v6391_v9 = vpop.f32.mrb[68].mxu0 }
 0x16a   :  { %v3614_v18 = vmax.f32 %v6391_v9, 0.0  ;;  %v1966_v19 = vpop.f32.mrb[69].mxu0  ;;  %6549 = vmatmul.mubr.msk.f32.gmra.mrb[174].mxu0 %vm403_vm0, %v189_v11 }
 0x16b   :  { %v3613_v20 = vmax.f32 %v1966_v19, 0.0  ;;  %6551 = vmatprep.mubr.msk.f32.mxu0 %vm403_vm0, %v190_v12  ;;  %4122 = vmatmul.mubr.f32.gmra.mrb[106].mxu1 %v3955_v13  ;;  %v207_v13 = vld [vmem:[%s9333_s0 + $0x608] sm:$0xff] }
 0x16c   :  { %4191 = vmatprep.mubr.f32.mxu1 %v3934_v15 }
 0x16d   :  { %v8507_v22 = vpack.c.bf16 %v3614_v18, %v3613_v20  ;;  %v6394_v23 = vpop.f32.mrb[70].mxu0 }
 0x16e   :  { %v3616_v24 = vmax.f32 %v6394_v23, 0.0  ;;  %v1976_v17 = vpop.f32.mrb[71].mxu0  ;;  %6552 = vmatmul.mubr.msk.f32.gmra.mrb[176].mxu0 %vm403_vm0, %v191_v21  ;;  %v209_v21 = vld [vmem:[%s9333_s0 + $0x618] sm:$0xff] }
 0x16f   :  { %v3615_v26 = vmax.f32 %v1976_v17, 0.0  ;;  %6554 = vmatprep.mubr.msk.f32.mxu0 %vm403_vm0, %v192_v16 }
 0x171   :  { %v8517_v29 = vpack.c.bf16 %v3616_v24, %v3615_v26  ;;  %v6397_v30 = vpop.f32.mrb[72].mxu0 }
 0x172   :  { %v3618_v32 = vmax.f32 %v6397_v30, 0.0  ;;  %v1986_v25 = vpop.f32.mrb[73].mxu0  ;;  %6555 = vmatmul.mubr.msk.f32.gmra.mrb[178].mxu0 %vm403_vm0, %v193_v27  ;;  %v211_v27 = vld [vmem:[%s9333_s0 + $0x628] sm:$0xff] }
 0x173   :  { %v3617_v33 = vmax.f32 %v1986_v25, 0.0  ;;  %6557 = vmatprep.mubr.msk.f32.mxu0 %vm403_vm0, %v194_v28 }
 0x175   :  { %v8527_v31 = vpack.c.bf16 %v3618_v32, %v3617_v33  ;;  %v6400_v37 = vpop.f32.mrb[74].mxu0 }
 0x176   :  { %v3620_v39 = vmax.f32 %v6400_v37, 0.0  ;;  %v1996_v34 = vpop.f32.mrb[75].mxu0  ;;  %6558 = vmatmul.mubr.msk.f32.gmra.mrb[180].mxu0 %vm403_vm0, %v195_v35  ;;  %v213_v35 = vld [vmem:[%s9333_s0 + $0x638] sm:$0xff] }
 0x177   :  { %v3619_v40 = vmax.f32 %v1996_v34, 0.0  ;;  %6560 = vmatprep.mubr.msk.f32.mxu0 %vm403_vm0, %v196_v36 }
 0x179   :  { %v8537_v38 = vpack.c.bf16 %v3620_v39, %v3619_v40  ;;  %v6403_v44 = vpop.f32.mrb[76].mxu0 }
 0x17a   :  { %v3622_v46 = vmax.f32 %v6403_v44, 0.0  ;;  %v2006_v41 = vpop.f32.mrb[77].mxu0  ;;  %6561 = vmatmul.mubr.msk.f32.gmra.mrb[182].mxu0 %vm403_vm0, %v197_v42  ;;  %v215_v42 = vld [vmem:[%s9333_s0 + $0x648] sm:$0xff] }
 0x17b   :  { %v3621_v47 = vmax.f32 %v2006_v41, 0.0  ;;  %6563 = vmatprep.mubr.msk.f32.mxu0 %vm403_vm0, %v198_v43 }
 0x17d   :  { %v8547_v45 = vpack.c.bf16 %v3622_v46, %v3621_v47  ;;  %v6406_v51 = vpop.f32.mrb[78].mxu0 }
 0x17e   :  { %v3624_v53 = vmax.f32 %v6406_v51, 0.0  ;;  %v2016_v48 = vpop.f32.mrb[79].mxu0  ;;  %6564 = vmatmul.mubr.msk.f32.gmra.mrb[184].mxu0 %vm403_vm0, %v199_v49  ;;  %v217_v49 = vld [vmem:[%s9333_s0 + $0x658] sm:$0xff] }
 0x17f   :  { %v3623_v54 = vmax.f32 %v2016_v48, 0.0  ;;  %6566 = vmatprep.mubr.msk.f32.mxu0 %vm403_vm0, %v200_v50 }
 0x181   :  { %v8557_v52 = vpack.c.bf16 %v3624_v53, %v3623_v54  ;;  %v6409_v58 = vpop.f32.mrb[80].mxu0 }
 0x182   :  { %v3626_v60 = vmax.f32 %v6409_v58, 0.0  ;;  %v2026_v55 = vpop.f32.mrb[81].mxu0  ;;  %6567 = vmatmul.mubr.msk.f32.gmra.mrb[186].mxu0 %vm403_vm0, %v201_v56  ;;  %v219_v56 = vld [vmem:[%s9333_s0 + $0x668] sm:$0xff] }
 0x183   :  { %v3625_v61 = vmax.f32 %v2026_v55, 0.0  ;;  %6569 = vmatprep.mubr.msk.f32.mxu0 %vm403_vm0, %v202_v57  ;;  %v3933_v57 = vld [vmem:[%s9334_s2 + $0x20] sm:$0xff]  ;;  %v3958_v55 = vld [vmem:[%s9334_s2 + $0xe8] sm:$0xff] }
 0x185   :  { %v6945_v59 = vpack.c.bf16 %v3626_v60, %v3625_v61  ;;  %v6412_v1 = vpop.f32.mrb[82].mxu0 }
 0x186   :  { %v3628_v3 = vmax.f32 %v6412_v1, 0.0  ;;  %v2036_v62 = vpop.f32.mrb[83].mxu0  ;;  %6570 = vmatmul.mubr.msk.f32.gmra.mrb[188].mxu0 %vm403_vm0, %v203_v63  ;;  %v3957_v1 = vld [vmem:[%s9334_s2 + $0xe0] sm:$0xff] }
 0x187   :  { %v3627_v4 = vmax.f32 %v2036_v62, 0.0  ;;  %6946 = vmatprep.subr.bf16.mxu1 %v6945_v59  ;;  %6572 = vmatprep.mubr.msk.f32.mxu0 %vm403_vm0, %v204_v0  ;;  %v221_v0 = vld [vmem:[%s9333_s0 + $0x678] sm:$0xff]  ;;  %v222_v59 = vld [vmem:[%s9333_s0 + $0x680] sm:$0xff] }
 0x188   :  { %6948 = vmatpush3.bf16.msra.mxu1 %v8478_v6  ;;  %v208_v6 = vld [vmem:[%s9333_s0 + $0x610] sm:$0xff] }
 0x189   :  { %v6949_v8 = vpack.c.bf16 %v3628_v3, %v3627_v4  ;;  %v6415_v10 = vpop.f32.mrb[84].mxu0  ;;  %v3936_v4 = vld [vmem:[%s9334_s2 + $0x38] sm:$0xff] }
 0x18a   :  { %v3630_v5 = vmax.f32 %v6415_v10, 0.0  ;;  %v2046_v11 = vpop.f32.mrb[85].mxu0  ;;  %6573 = vmatmul.mubr.msk.f32.gmra.mrb[190].mxu0 %vm403_vm0, %v205_v7  ;;  %v223_v10 = vld [vmem:[%s9333_s0 + $0x688] sm:$0xff] }
 0x18b   :  { %v3629_v12 = vmax.f32 %v2046_v11, 0.0  ;;  %6950 = vmatprep.subr.bf16.mxu1 %v6949_v8  ;;  %6575 = vmatprep.mubr.msk.f32.mxu0 %vm403_vm0, %v206_v2 }
 0x18c   :  { %6952 = vmatpush3.bf16.msra.mxu1 %v8494_v14  ;;  %v210_v14 = vld [vmem:[%s9333_s0 + $0x620] sm:$0xff] }
 0x18d   :  { %v6953_v9 = vpack.c.bf16 %v3630_v5, %v3629_v12  ;;  %v6418_v15 = vpop.f32.mrb[86].mxu0  ;;  %v224_v5 = vld [vmem:[%s9333_s0 + $0x690] sm:$0xff] }
 0x18e   :  { %v3632_v18 = vmax.f32 %v6418_v15, 0.0  ;;  %v2056_v19 = vpop.f32.mrb[87].mxu0  ;;  %6576 = vmatmul.mubr.msk.f32.gmra.mrb[192].mxu0 %vm403_vm0, %v207_v13  ;;  %v225_v15 = vld [vmem:[%s9333_s0 + $0x698] sm:$0xff] }
 0x18f   :  { %v3631_v20 = vmax.f32 %v2056_v19, 0.0  ;;  %6954 = vmatprep.subr.bf16.mxu1 %v6953_v9  ;;  %6578 = vmatprep.mubr.msk.f32.mxu0 %vm403_vm0, %v208_v6 }
 0x190   :  { %6956 = vmatpush3.bf16.msra.mxu1 %v8507_v22  ;;  %v212_v22 = vld [vmem:[%s9333_s0 + $0x630] sm:$0xff] }
 0x191   :  { %v6957_v16 = vpack.c.bf16 %v3632_v18, %v3631_v20  ;;  %v6421_v23 = vpop.f32.mrb[88].mxu0  ;;  %v226_v18 = vld [vmem:[%s9333_s0 + $0x6a0] sm:$0xff] }
 0x192   :  { %v3634_v24 = vmax.f32 %v6421_v23, 0.0  ;;  %v2066_v17 = vpop.f32.mrb[89].mxu0  ;;  %6579 = vmatmul.mubr.msk.f32.gmra.mrb[194].mxu0 %vm403_vm0, %v209_v21 }
 0x193   :  { %v3633_v26 = vmax.f32 %v2066_v17, 0.0  ;;  %6958 = vmatprep.subr.bf16.mxu1 %v6957_v16  ;;  %6581 = vmatprep.mubr.msk.f32.mxu0 %vm403_vm0, %v210_v14  ;;  %v6715_v16 = vpop.f32.mrb[0].mxu1 }
 0x194   :  { %6960 = vmatpush3.bf16.msra.mxu1 %v8517_v29  ;;  %v214_v29 = vld [vmem:[%s9333_s0 + $0x640] sm:$0xff]  ;;  %v3046_v17 = vpop.f32.mrb[1].mxu1 }
 0x195   :  { %v6961_v28 = vpack.c.bf16 %v3634_v24, %v3633_v26  ;;  %v6424_v30 = vpop.f32.mrb[90].mxu0  ;;  %v227_v24 = vld [vmem:[%s9333_s0 + $0x6a8] sm:$0xff]  ;;  %v228_v26 = vld [vmem:[%s9333_s0 + $0x6b0] sm:$0xff] }
 0x196   :  { %v3636_v32 = vmax.f32 %v6424_v30, 0.0  ;;  %v2076_v25 = vpop.f32.mrb[91].mxu0  ;;  %6582 = vmatmul.mubr.msk.f32.gmra.mrb[196].mxu0 %vm403_vm0, %v211_v27  ;;  %v3830_v27 = vmax.f32 %v6715_v16, 0.0 }
 0x197   :  { %v3635_v33 = vmax.f32 %v2076_v25, 0.0  ;;  %6962 = vmatprep.subr.bf16.mxu1 %v6961_v28  ;;  %6584 = vmatprep.mubr.msk.f32.mxu0 %vm403_vm0, %v212_v22  ;;  %v3829_v22 = vmax.f32 %v3046_v17, 0.0 }
 0x198   :  { %6964 = vmatpush3.bf16.msra.mxu1 %v8527_v31  ;;  %v216_v31 = vld [vmem:[%s9333_s0 + $0x650] sm:$0xff] }
 0x199   :  { %v6965_v36 = vpack.c.bf16 %v3636_v32, %v3635_v33  ;;  %v6427_v37 = vpop.f32.mrb[92].mxu0  ;;  %v8694_v33 = vpack.c.bf16 %v3830_v27, %v3829_v22 }
 0x19a   :  { %v3638_v39 = vmax.f32 %v6427_v37, 0.0  ;;  %v2086_v34 = vpop.f32.mrb[93].mxu0  ;;  %6585 = vmatmul.mubr.msk.f32.gmra.mrb[198].mxu0 %vm403_vm0, %v213_v35  ;;  %v6718_v35 = vpop.f32.mrb[2].mxu1 }
 0x19b   :  { %v3637_v40 = vmax.f32 %v2086_v34, 0.0  ;;  %6966 = vmatprep.subr.bf16.mxu1 %v6965_v36  ;;  %6587 = vmatprep.mubr.msk.f32.mxu0 %vm403_vm0, %v214_v29  ;;  %v229_v36 = vld [vmem:[%s9333_s0 + $0x6b8] sm:$0xff]  ;;  %v3056_v37 = vpop.f32.mrb[3].mxu1  ;;  %v3832_v34 = vmax.f32 %v6718_v35, 0.0 }
 0x19c   :  { %6968 = vmatpush3.bf16.msra.mxu1 %v8537_v38  ;;  %v218_v38 = vld [vmem:[%s9333_s0 + $0x660] sm:$0xff] }
 0x19d   :  { %v6969_v43 = vpack.c.bf16 %v3638_v39, %v3637_v40  ;;  %v6430_v44 = vpop.f32.mrb[94].mxu0  ;;  %v230_v39 = vld [vmem:[%s9333_s0 + $0x6c0] sm:$0xff]  ;;  %v3831_v40 = vmax.f32 %v3056_v37, 0.0 }
 0x19e   :  { %v3640_v46 = vmax.f32 %v6430_v44, 0.0  ;;  %v2096_v41 = vpop.f32.mrb[95].mxu0  ;;  %6588 = vmatmul.mubr.msk.f32.gmra.mrb[200].mxu0 %vm403_vm0, %v215_v42 }
 0x19f   :  { %v3639_v47 = vmax.f32 %v2096_v41, 0.0  ;;  %6970 = vmatprep.subr.bf16.mxu1 %v6969_v43  ;;  %6590 = vmatprep.mubr.msk.f32.mxu0 %vm403_vm0, %v216_v31  ;;  %v6721_v41 = vpop.f32.mrb[4].mxu1 }
 0x1a0   :  { %6972 = vmatpush3.bf16.msra.mxu1 %v8547_v45  ;;  %v220_v45 = vld [vmem:[%s9333_s0 + $0x670] sm:$0xff] }
 0x1a1   :  { %v6973_v50 = vpack.c.bf16 %v3640_v46, %v3639_v47  ;;  %v6433_v51 = vpop.f32.mrb[96].mxu0  ;;  %v8706_v46 = vpack.c.bf16 %v3832_v34, %v3831_v40  ;;  %v240_v34 = vld [vmem:[%s9333_s0 + $0x710] sm:$0xff] }
 0x1a2   :  { %v3642_v53 = vmax.f32 %v6433_v51, 0.0  ;;  %v2106_v48 = vpop.f32.mrb[97].mxu0  ;;  %6591 = vmatmul.mubr.msk.f32.gmra.mrb[202].mxu0 %vm403_vm0, %v217_v49  ;;  %v231_v49 = vld [vmem:[%s9333_s0 + $0x6c8] sm:$0xff]  ;;  %v3834_v51 = vmax.f32 %v6721_v41, 0.0 }
 0x1a3   :  { %v3641_v54 = vmax.f32 %v2106_v48, 0.0  ;;  %6974 = vmatprep.subr.bf16.mxu1 %v6973_v50  ;;  %6593 = vmatprep.mubr.msk.f32.mxu0 %vm403_vm0, %v218_v38  ;;  %v3066_v38 = vpop.f32.mrb[5].mxu1  ;;  %v232_v50 = vld [vmem:[%s9333_s0 + $0x6d0] sm:$0xff] }
 0x1a4   :  { %6976 = vmatpush3.bf16.msra.mxu1 %v8557_v52 }
 0x1a5   :  { %v8642_v58 = vpack.c.bf16 %v3642_v53, %v3641_v54  ;;  %v6436_v60 = vpop.f32.mrb[98].mxu0  ;;  %v3833_v53 = vmax.f32 %v3066_v38, 0.0 }
 0x1a6   :  { %v3644_v61 = vmax.f32 %v6436_v60, 0.0  ;;  %v2116_v63 = vpop.f32.mrb[99].mxu0  ;;  %6594 = vmatmul.mubr.msk.f32.gmra.mrb[204].mxu0 %vm403_vm0, %v219_v56  ;;  %v6724_v60 = vpop.f32.mrb[6].mxu1 }
 0x1a7   :  { %v3643_v52 = vmax.f32 %v2116_v63, 0.0  ;;  %6596 = vmatprep.mubr.msk.f32.mxu0 %vm403_vm0, %v220_v45  ;;  %4192 = vmatmul.mubr.f32.vlgmr.msra.gmra.mrb[108].mxu1 %v3933_v57  ;;  %v8718_v57 = vpack.c.bf16 %v3834_v51, %v3833_v53  ;;  %v3076_v63 = vpop.f32.mrb[7].mxu1  ;;  %v242_v53 = vld [vmem:[%s9333_s0 + $0x720] sm:$0xff] }
 0x1a8   :  { %4196 = vmatprep.mubr.f32.mxu1 %v3958_v55 }
 0x1a9   :  { %v8658_v3 = vpack.c.bf16 %v3644_v61, %v3643_v52  ;;  %v6439_v62 = vpop.f32.mrb[100].mxu0  ;;  %v233_v61 = vld [vmem:[%s9333_s0 + $0x6d8] sm:$0xff]  ;;  %v234_v52 = vld [vmem:[%s9333_s0 + $0x6e0] sm:$0xff] }
 0x1aa   :  { %v3646_v7 = vmax.f32 %v6439_v62, 0.0  ;;  %v2126_v2 = vpop.f32.mrb[101].mxu0  ;;  %6597 = vmatmul.mubr.msk.f32.gmra.mrb[206].mxu0 %vm403_vm0, %v221_v0  ;;  %v3836_v0 = vmax.f32 %v6724_v60, 0.0 }
 0x1ab   :  { %v3645_v8 = vmax.f32 %v2126_v2, 0.0  ;;  %6599 = vmatprep.mubr.msk.f32.mxu0 %vm403_vm0, %v222_v59  ;;  %4197 = vmatmul.mubr.f32.gmra.mrb[110].mxu1 %v3957_v1  ;;  %v3835_v59 = vmax.f32 %v3076_v63, 0.0 }
 0x1ac   :  { %4266 = vmatprep.mubr.f32.mxu1 %v3936_v4 }
 0x1ad   :  { %v8671_v11 = vpack.c.bf16 %v3646_v7, %v3645_v8  ;;  %v6442_v12 = vpop.f32.mrb[102].mxu0  ;;  %v8730_v2 = vpack.c.bf16 %v3836_v0, %v3835_v59  ;;  %v6727_v8 = vpop.f32.mrb[8].mxu1 }
 0x1ae   :  { %v3648_v13 = vmax.f32 %v6442_v12, 0.0  ;;  %v2136_v6 = vpop.f32.mrb[103].mxu0  ;;  %6600 = vmatmul.mubr.msk.f32.gmra.mrb[208].mxu0 %vm403_vm0, %v223_v10  ;;  %v3086_v12 = vpop.f32.mrb[9].mxu1 }
 0x1af   :  { %v3647_v9 = vmax.f32 %v2136_v6, 0.0  ;;  %6602 = vmatprep.mubr.msk.f32.mxu0 %vm403_vm0, %v224_v5  ;;  %v235_v5 = vld [vmem:[%s9333_s0 + $0x6e8] sm:$0xff]  ;;  %v3838_v6 = vmax.f32 %v6727_v8, 0.0  ;;  %v6730_v16 = vpop.f32.mrb[10].mxu1 }
 0x1b0   :  { %v3096_v17 = vpop.f32.mrb[11].mxu1  ;;  %v3840_v27 = vmax.f32 %v6730_v16, 0.0 }
 0x1b1   :  { %v8681_v19 = vpack.c.bf16 %v3648_v13, %v3647_v9  ;;  %v6445_v20 = vpop.f32.mrb[104].mxu0  ;;  %v236_v13 = vld [vmem:[%s9333_s0 + $0x6f0] sm:$0xff]  ;;  %v3837_v9 = vmax.f32 %v3086_v12, 0.0  ;;  %v3839_v22 = vmax.f32 %v3096_v17, 0.0 }
 0x1b2   :  { %v3650_v21 = vmax.f32 %v6445_v20, 0.0  ;;  %v2146_v14 = vpop.f32.mrb[105].mxu0  ;;  %6603 = vmatmul.mubr.msk.f32.gmra.mrb[210].mxu0 %vm403_vm0, %v225_v15 }
 0x1b3   :  { %v3649_v23 = vmax.f32 %v2146_v14, 0.0  ;;  %6605 = vmatprep.mubr.msk.f32.mxu0 %vm403_vm0, %v226_v18  ;;  %v8740_v14 = vpack.c.bf16 %v3838_v6, %v3837_v9 }
 0x1b5   :  { %v8691_v28 = vpack.c.bf16 %v3650_v21, %v3649_v23  ;;  %v6448_v30 = vpop.f32.mrb[106].mxu0 }
 0x1b6   :  { %v3652_v32 = vmax.f32 %v6448_v30, 0.0  ;;  %v2156_v25 = vpop.f32.mrb[107].mxu0  ;;  %6606 = vmatmul.mubr.msk.f32.gmra.mrb[212].mxu0 %vm403_vm0, %v227_v24  ;;  %v237_v24 = vld [vmem:[%s9333_s0 + $0x6f8] sm:$0xff] }
 0x1b7   :  { %v3651_v29 = vmax.f32 %v2156_v25, 0.0  ;;  %6608 = vmatprep.mubr.msk.f32.mxu0 %vm403_vm0, %v228_v26  ;;  %v238_v26 = vld [vmem:[%s9333_s0 + $0x700] sm:$0xff] }
 0x1b9   :  { %v8703_v42 = vpack.c.bf16 %v3652_v32, %v3651_v29  ;;  %v6451_v31 = vpop.f32.mrb[108].mxu0  ;;  %v8751_v29 = vpack.c.bf16 %v3840_v27, %v3839_v22 }
 0x1ba   :  { %v3654_v43 = vmax.f32 %v6451_v31, 0.0  ;;  %v2166_v44 = vpop.f32.mrb[109].mxu0  ;;  %6609 = vmatmul.mubr.msk.f32.gmra.mrb[214].mxu0 %vm403_vm0, %v229_v36  ;;  %v6733_v36 = vpop.f32.mrb[12].mxu1 }
 0x1bb   :  { %v3653_v47 = vmax.f32 %v2166_v44, 0.0  ;;  %6611 = vmatprep.mubr.msk.f32.mxu0 %vm403_vm0, %v230_v39  ;;  %v3106_v39 = vpop.f32.mrb[13].mxu1  ;;  %v3842_v40 = vmax.f32 %v6733_v36, 0.0 }
 0x1bc   :  { %v3841_v31 = vmax.f32 %v3106_v39, 0.0  ;;  %v6736_v38 = vpop.f32.mrb[14].mxu1 }
 0x1bd   :  { %v8715_v48 = vpack.c.bf16 %v3654_v43, %v3653_v47  ;;  %v6454_v54 = vpop.f32.mrb[110].mxu0  ;;  %v3116_v51 = vpop.f32.mrb[15].mxu1 }
 0x1be   :  { %v3656_v56 = vmax.f32 %v6454_v54, 0.0  ;;  %v2176_v45 = vpop.f32.mrb[111].mxu0  ;;  %6612 = vmatmul.mubr.msk.f32.gmra.mrb[216].mxu0 %vm403_vm0, %v231_v49  ;;  %v8762_v49 = vpack.c.bf16 %v3842_v40, %v3841_v31  ;;  %v3844_v54 = vmax.f32 %v6736_v38, 0.0 }
 0x1bf   :  { %v3655_v55 = vmax.f32 %v2176_v45, 0.0  ;;  %6614 = vmatprep.mubr.msk.f32.mxu0 %vm403_vm0, %v232_v50 }
 0x1c1   :  { %v8727_v1 = vpack.c.bf16 %v3656_v56, %v3655_v55  ;;  %v6457_v62 = vpop.f32.mrb[112].mxu0  ;;  %v3843_v56 = vmax.f32 %v3116_v51, 0.0 }
 0x1c2   :  { %v3658_v4 = vmax.f32 %v6457_v62, 0.0  ;;  %v2186_v7 = vpop.f32.mrb[113].mxu0  ;;  %6615 = vmatmul.mubr.msk.f32.gmra.mrb[218].mxu0 %vm403_vm0, %v233_v61  ;;  %v244_v62 = vld [vmem:[%s9333_s0 + $0x730] sm:$0xff] }
 0x1c3   :  { %v3657_v10 = vmax.f32 %v2186_v7, 0.0  ;;  %6617 = vmatprep.mubr.msk.f32.mxu0 %vm403_vm0, %v234_v52  ;;  %v8773_v63 = vpack.c.bf16 %v3844_v54, %v3843_v56  ;;  %v6739_v52 = vpop.f32.mrb[16].mxu1 }
 0x1c4   :  { %v3126_v59 = vpop.f32.mrb[17].mxu1 }
 0x1c5   :  { %v6977_v15 = vpack.c.bf16 %v3658_v4, %v3657_v10  ;;  %v6460_v18 = vpop.f32.mrb[114].mxu0  ;;  %v3846_v4 = vmax.f32 %v6739_v52, 0.0  ;;  %v3845_v7 = vmax.f32 %v3126_v59, 0.0  ;;  %v6742_v6 = vpop.f32.mrb[18].mxu1  ;;  %v3960_v59 = vld [vmem:[%s9334_s2 + $0xf8] sm:$0xff] }
 0x1c6   :  { %v3660_v20 = vmax.f32 %v6460_v18, 0.0  ;;  %v2196_v21 = vpop.f32.mrb[115].mxu0  ;;  %6618 = vmatmul.mubr.msk.f32.gmra.mrb[220].mxu0 %vm403_vm0, %v235_v5  ;;  %v246_v18 = vld [vmem:[%s9333_s0 + $0x740] sm:$0xff] }
 0x1c7   :  { %v3659_v23 = vmax.f32 %v2196_v21, 0.0  ;;  %6978 = vmatprep.subr.bf16.mxu1 %v6977_v15  ;;  %6620 = vmatprep.mubr.msk.f32.mxu0 %vm403_vm0, %v236_v13  ;;  %v8784_v13 = vpack.c.bf16 %v3846_v4, %v3845_v7  ;;  %v3136_v15 = vpop.f32.mrb[19].mxu1 }
 0x1c8   :  { %6980 = vmatpush3.bf16.msra.mxu1 %v8642_v58  ;;  %v239_v58 = vld [vmem:[%s9333_s0 + $0x708] sm:$0xff]  ;;  %v3847_v21 = vmax.f32 %v3136_v15, 0.0  ;;  %v6745_v27 = vpop.f32.mrb[20].mxu1 }
 0x1c9   :  { %v6981_v30 = vpack.c.bf16 %v3660_v20, %v3659_v23  ;;  %v6463_v32 = vpop.f32.mrb[116].mxu0  ;;  %v3848_v20 = vmax.f32 %v6742_v6, 0.0  ;;  %v3959_v6 = vld [vmem:[%s9334_s2 + $0xf0] sm:$0xff] }
 0x1ca   :  { %v3662_v25 = vmax.f32 %v6463_v32, 0.0  ;;  %v2206_v35 = vpop.f32.mrb[117].mxu0  ;;  %6621 = vmatmul.mubr.msk.f32.gmra.mrb[222].mxu0 %vm403_vm0, %v237_v24  ;;  %v248_v32 = vld [vmem:[%s9333_s0 + $0x750] sm:$0xff] }
 0x1cb   :  { %v3661_v37 = vmax.f32 %v2206_v35, 0.0  ;;  %6982 = vmatprep.subr.bf16.mxu1 %v6981_v30  ;;  %6623 = vmatprep.mubr.msk.f32.mxu0 %vm403_vm0, %v238_v26  ;;  %v8795_v26 = vpack.c.bf16 %v3848_v20, %v3847_v21  ;;  %v3146_v30 = vpop.f32.mrb[21].mxu1  ;;  %v3938_v20 = vld [vmem:[%s9334_s2 + $0x48] sm:$0xff] }
 0x1cc   :  { %6984 = vmatpush3.bf16.msra.mxu1 %v8658_v3  ;;  %v241_v3 = vld [vmem:[%s9333_s0 + $0x718] sm:$0xff]  ;;  %v3849_v35 = vmax.f32 %v3146_v30, 0.0  ;;  %v6748_v40 = vpop.f32.mrb[22].mxu1 }
 0x1cd   :  { %v6985_v43 = vpack.c.bf16 %v3662_v25, %v3661_v37  ;;  %v6466_v44 = vpop.f32.mrb[118].mxu0  ;;  %v3850_v25 = vmax.f32 %v6745_v27, 0.0  ;;  %v255_v27 = vld [vmem:[%s9333_s0 + $0x788] sm:$0xff] }
 0x1ce   :  { %v3664_v41 = vmax.f32 %v6466_v44, 0.0  ;;  %v2216_v47 = vpop.f32.mrb[119].mxu0  ;;  %6624 = vmatmul.mubr.msk.f32.gmra.mrb[224].mxu0 %vm403_vm0, %v239_v58  ;;  %v250_v44 = vld [vmem:[%s9333_s0 + $0x760] sm:$0xff] }
 0x1cf   :  { %v3663_v50 = vmax.f32 %v2216_v47, 0.0  ;;  %6986 = vmatprep.subr.bf16.mxu1 %v6985_v43  ;;  %6626 = vmatprep.mubr.msk.f32.mxu0 %vm403_vm0, %v240_v34  ;;  %v8806_v34 = vpack.c.bf16 %v3850_v25, %v3849_v35  ;;  %v3156_v43 = vpop.f32.mrb[23].mxu1 }
 0x1d0   :  { %6988 = vmatpush3.bf16.msra.mxu1 %v8671_v11  ;;  %v243_v11 = vld [vmem:[%s9333_s0 + $0x728] sm:$0xff]  ;;  %v3851_v47 = vmax.f32 %v3156_v43, 0.0  ;;  %v6751_v54 = vpop.f32.mrb[24].mxu1  ;;  %v258_v43 = vld [vmem:[%s9333_s0 + $0x7a0] sm:$0xff] }
 0x1d1   :  { %v6989_v45 = vpack.c.bf16 %v3664_v41, %v3663_v50  ;;  %v6469_v60 = vpop.f32.mrb[120].mxu0  ;;  %v3852_v41 = vmax.f32 %v6748_v40, 0.0 }
 0x1d2   :  { %v3666_v55 = vmax.f32 %v6469_v60, 0.0  ;;  %v2226_v61 = vpop.f32.mrb[121].mxu0  ;;  %6627 = vmatmul.mubr.msk.f32.gmra.mrb[226].mxu0 %vm403_vm0, %v241_v3  ;;  %v252_v60 = vld [vmem:[%s9333_s0 + $0x770] sm:$0xff] }
 0x1d3   :  { %v3665_v0 = vmax.f32 %v2226_v61, 0.0  ;;  %6990 = vmatprep.subr.bf16.mxu1 %v6989_v45  ;;  %6629 = vmatprep.mubr.msk.f32.mxu0 %vm403_vm0, %v242_v53  ;;  %v8817_v53 = vpack.c.bf16 %v3852_v41, %v3851_v47  ;;  %v3166_v45 = vpop.f32.mrb[25].mxu1  ;;  %v3854_v61 = vmax.f32 %v6751_v54, 0.0 }
 0x1d4   :  { %6992 = vmatpush3.bf16.msra.mxu1 %v8681_v19  ;;  %v245_v19 = vld [vmem:[%s9333_s0 + $0x738] sm:$0xff]  ;;  %v3853_v52 = vmax.f32 %v3166_v45, 0.0  ;;  %v6754_v7 = vpop.f32.mrb[26].mxu1 }
 0x1d5   :  { %v6993_v8 = vpack.c.bf16 %v3666_v55, %v3665_v0  ;;  %v6472_v10 = vpop.f32.mrb[122].mxu0  ;;  %v3935_v55 = vld [vmem:[%s9334_s2 + $0x30] sm:$0xff] }
 0x1d6   :  { %v3668_v5 = vmax.f32 %v6472_v10, 0.0  ;;  %v2236_v12 = vpop.f32.mrb[123].mxu0  ;;  %6630 = vmatmul.mubr.msk.f32.gmra.mrb[228].mxu0 %vm403_vm0, %v243_v11  ;;  %v253_v10 = vld [vmem:[%s9333_s0 + $0x778] sm:$0xff] }
 0x1d7   :  { %v3667_v9 = vmax.f32 %v2236_v12, 0.0  ;;  %6994 = vmatprep.subr.bf16.mxu1 %v6993_v8  ;;  %6632 = vmatprep.mubr.msk.f32.mxu0 %vm403_vm0, %v244_v62  ;;  %v254_v12 = vld [vmem:[%s9333_s0 + $0x780] sm:$0xff] }
 0x1d8   :  { %6996 = vmatpush3.bf16.msra.mxu1 %v8691_v28  ;;  %v247_v28 = vld [vmem:[%s9333_s0 + $0x748] sm:$0xff] }
 0x1d9   :  { %v6997_v16 = vpack.c.bf16 %v3668_v5, %v3667_v9  ;;  %v6475_v23 = vpop.f32.mrb[124].mxu0  ;;  %v3176_v5 = vpop.f32.mrb[27].mxu1  ;;  %v3856_v9 = vmax.f32 %v6754_v7, 0.0 }
 0x1da   :  { %v3670_v24 = vmax.f32 %v6475_v23, 0.0  ;;  %v2246_v17 = vpop.f32.mrb[125].mxu0  ;;  %6633 = vmatmul.mubr.msk.f32.gmra.mrb[230].mxu0 %vm403_vm0, %v245_v19  ;;  %v3855_v19 = vmax.f32 %v3176_v5, 0.0 }
 0x1db   :  { %v3669_v22 = vmax.f32 %v2246_v17, 0.0  ;;  %6998 = vmatprep.subr.bf16.mxu1 %v6997_v16  ;;  %6635 = vmatprep.mubr.msk.f32.mxu0 %vm403_vm0, %v246_v18 }
 0x1dc   :  { %7000 = vmatpush3.bf16.msra.mxu1 %v8703_v42  ;;  %v249_v42 = vld [vmem:[%s9333_s0 + $0x758] sm:$0xff]  ;;  %v8854_v23 = vpack.c.bf16 %v3856_v9, %v3855_v19 }
 0x1dd   :  { %v7001_v36 = vpack.c.bf16 %v3670_v24, %v3669_v22  ;;  %v6478_v37 = vpop.f32.mrb[126].mxu0  ;;  %v6757_v24 = vpop.f32.mrb[28].mxu1 }
 0x1de   :  { %v3672_v58 = vmax.f32 %v6478_v37, 0.0  ;;  %v2256_v39 = vpop.f32.mrb[127].mxu0  ;;  %6636 = vmatmul.mubr.msk.f32.gmra.mrb[232].mxu0 %vm403_vm0, %v247_v28  ;;  %v3186_v22 = vpop.f32.mrb[29].mxu1  ;;  %v256_v28 = vld [vmem:[%s9333_s0 + $0x790] sm:$0xff]  ;;  %v3858_v30 = vmax.f32 %v6757_v24, 0.0 }
 0x1df   :  { %v3671_v31 = vmax.f32 %v2256_v39, 0.0  ;;  %7002 = vmatprep.subr.bf16.mxu1 %v7001_v36  ;;  %6638 = vmatprep.mubr.msk.f32.mxu0 %vm403_vm0, %v248_v32  ;;  %v3857_v32 = vmax.f32 %v3186_v22, 0.0  ;;  %v6760_v39 = vpop.f32.mrb[30].mxu1 }
 0x1e0   :  { %7004 = vmatpush3.bf16.msra.mxu1 %v8715_v48  ;;  %v251_v48 = vld [vmem:[%s9333_s0 + $0x768] sm:$0xff] }
 0x1e1   :  { %v7005_v38 = vpack.c.bf16 %v3672_v58, %v3671_v31  ;;  %v6481_v50 = vpop.f32.mrb[128].mxu0  ;;  %v8866_v58 = vpack.c.bf16 %v3858_v30, %v3857_v32  ;;  %v257_v31 = vld [vmem:[%s9333_s0 + $0x798] sm:$0xff] }
 0x1e2   :  { %v3674_v3 = vmax.f32 %v6481_v50, 0.0  ;;  %v2266_v51 = vpop.f32.mrb[129].mxu0  ;;  %6639 = vmatmul.mubr.msk.f32.gmra.mrb[234].mxu0 %vm403_vm0, %v249_v42  ;;  %v3196_v42 = vpop.f32.mrb[31].mxu1 }
 0x1e3   :  { %v3673_v56 = vmax.f32 %v2266_v51, 0.0  ;;  %7006 = vmatprep.subr.bf16.mxu1 %v7005_v38  ;;  %6641 = vmatprep.mubr.msk.f32.mxu0 %vm403_vm0, %v250_v44  ;;  %v3860_v44 = vmax.f32 %v6760_v39, 0.0  ;;  %v3859_v41 = vmax.f32 %v3196_v42, 0.0  ;;  %v6763_v54 = vpop.f32.mrb[32].mxu1 }
 0x1e4   :  { %7008 = vmatpush3.bf16.msra.mxu1 %v8727_v1  ;;  %v8836_v1 = vpack.c.bf16 %v3854_v61, %v3853_v52  ;;  %v3206_v45 = vpop.f32.mrb[33].mxu1 }
 0x1e5   :  { %v8830_v0 = vpack.c.bf16 %v3674_v3, %v3673_v56  ;;  %v6484_v11 = vpop.f32.mrb[130].mxu0  ;;  %v8878_v51 = vpack.c.bf16 %v3860_v44, %v3859_v41  ;;  %v3861_v61 = vmax.f32 %v3206_v45, 0.0  ;;  %v6766_v7 = vpop.f32.mrb[34].mxu1  ;;  %v266_v41 = vld [vmem:[%s9333_s0 + $0x7e0] sm:$0xff] }
 0x1e6   :  { %v3676_v62 = vmax.f32 %v6484_v11, 0.0  ;;  %v2276_v4 = vpop.f32.mrb[131].mxu0  ;;  %6642 = vmatmul.mubr.msk.f32.gmra.mrb[236].mxu0 %vm403_vm0, %v251_v48  ;;  %v259_v48 = vld [vmem:[%s9333_s0 + $0x7a8] sm:$0xff]  ;;  %v3216_v5 = vpop.f32.mrb[35].mxu1 }
 0x1e7   :  { %v3675_v8 = vmax.f32 %v2276_v4, 0.0  ;;  %6644 = vmatprep.mubr.msk.f32.mxu0 %vm403_vm0, %v252_v60  ;;  %4267 = vmatmul.mubr.f32.vlgmr.msra.gmra.mrb[112].mxu1 %v3935_v55  ;;  %v260_v60 = vld [vmem:[%s9333_s0 + $0x7b0] sm:$0xff]  ;;  %v3862_v55 = vmax.f32 %v6763_v54, 0.0  ;;  %v3863_v9 = vmax.f32 %v3216_v5, 0.0  ;;  %v6769_v24 = vpop.f32.mrb[36].mxu1 }
 0x1e8   :  { %4271 = vmatprep.mubr.f32.mxu1 %v3960_v59  ;;  %v3226_v22 = vpop.f32.mrb[37].mxu1  ;;  %v3866_v30 = vmax.f32 %v6769_v24, 0.0  ;;  %v270_v24 = vld [vmem:[%s9333_s0 + $0x800] sm:$0xff] }
 0x1e9   :  { %v8848_v15 = vpack.c.bf16 %v3676_v62, %v3675_v8  ;;  %v6487_v18 = vpop.f32.mrb[132].mxu0  ;;  %v8890_v4 = vpack.c.bf16 %v3862_v55, %v3861_v61  ;;  %v3865_v32 = vmax.f32 %v3226_v22, 0.0  ;;  %v267_v61 = vld [vmem:[%s9333_s0 + $0x7e8] sm:$0xff] }
 0x1ea   :  { %v3678_v21 = vmax.f32 %v6487_v18, 0.0  ;;  %v2286_v16 = vpop.f32.mrb[133].mxu0  ;;  %6645 = vmatmul.mubr.msk.f32.gmra.mrb[238].mxu0 %vm403_vm0, %v253_v10  ;;  %v261_v10 = vld [vmem:[%s9333_s0 + $0x7b8] sm:$0xff] }
 0x1eb   :  { %v3677_v17 = vmax.f32 %v2286_v16, 0.0  ;;  %6647 = vmatprep.mubr.msk.f32.mxu0 %vm403_vm0, %v254_v12  ;;  %4272 = vmatmul.mubr.f32.gmra.mrb[114].mxu1 %v3959_v6  ;;  %v262_v12 = vld [vmem:[%s9333_s0 + $0x7c0] sm:$0xff]  ;;  %v3864_v6 = vmax.f32 %v6766_v7, 0.0 }
 0x1ec   :  { %4341 = vmatprep.mubr.f32.mxu1 %v3938_v20 }
 0x1ed   :  { %v8863_v25 = vpack.c.bf16 %v3678_v21, %v3677_v17  ;;  %v6490_v35 = vpop.f32.mrb[134].mxu0  ;;  %v8902_v16 = vpack.c.bf16 %v3864_v6, %v3863_v9 }
 0x1ee   :  { %v3680_v36 = vmax.f32 %v6490_v35, 0.0  ;;  %v2296_v37 = vpop.f32.mrb[135].mxu0  ;;  %6648 = vmatmul.mubr.msk.f32.gmra.mrb[240].mxu0 %vm403_vm0, %v255_v27  ;;  %v263_v27 = vld [vmem:[%s9333_s0 + $0x7c8] sm:$0xff] }
 0x1ef   :  { %v3679_v40 = vmax.f32 %v2296_v37, 0.0  ;;  %6650 = vmatprep.mubr.msk.f32.mxu0 %vm403_vm0, %v256_v28  ;;  %v264_v28 = vld [vmem:[%s9333_s0 + $0x7d0] sm:$0xff] }
 0x1f1   :  { %v8875_v47 = vpack.c.bf16 %v3680_v36, %v3679_v40  ;;  %v6493_v38 = vpop.f32.mrb[136].mxu0  ;;  %v8914_v40 = vpack.c.bf16 %v3866_v30, %v3865_v32 }
 0x1f2   :  { %v3682_v50 = vmax.f32 %v6493_v38, 0.0  ;;  %v2306_v3 = vpop.f32.mrb[137].mxu0  ;;  %6651 = vmatmul.mubr.msk.f32.gmra.mrb[242].mxu0 %vm403_vm0, %v257_v31  ;;  %v6772_v31 = vpop.f32.mrb[38].mxu1 }
 0x1f3   :  { %v3681_v56 = vmax.f32 %v2306_v3, 0.0  ;;  %6653 = vmatprep.mubr.msk.f32.mxu0 %vm403_vm0, %v258_v43  ;;  %v265_v43 = vld [vmem:[%s9333_s0 + $0x7d8] sm:$0xff]  ;;  %v3236_v44 = vpop.f32.mrb[39].mxu1  ;;  %v3868_v38 = vmax.f32 %v6772_v31, 0.0 }
 0x1f5   :  { %v8887_v52 = vpack.c.bf16 %v3682_v50, %v3681_v56  ;;  %v6496_v11 = vpop.f32.mrb[138].mxu0  ;;  %v3867_v50 = vmax.f32 %v3236_v44, 0.0 }
 0x1f6   :  { %v3684_v59 = vmax.f32 %v6496_v11, 0.0  ;;  %v2316_v62 = vpop.f32.mrb[139].mxu0  ;;  %6654 = vmatmul.mubr.msk.f32.gmra.mrb[244].mxu0 %vm403_vm0, %v259_v48 }
 0x1f7   :  { %v3683_v8 = vmax.f32 %v2316_v62, 0.0  ;;  %6656 = vmatprep.mubr.msk.f32.mxu0 %vm403_vm0, %v260_v60  ;;  %v8926_v45 = vpack.c.bf16 %v3868_v38, %v3867_v50  ;;  %v6775_v60 = vpop.f32.mrb[40].mxu1 }
 0x1f8   :  { %v3246_v11 = vpop.f32.mrb[41].mxu1  ;;  %v3870_v62 = vmax.f32 %v6775_v60, 0.0 }
 0x1f9   :  { %v8899_v19 = vpack.c.bf16 %v3684_v59, %v3683_v8  ;;  %v6499_v18 = vpop.f32.mrb[140].mxu0  ;;  %v268_v59 = vld [vmem:[%s9333_s0 + $0x7f0] sm:$0xff]  ;;  %v3869_v7 = vmax.f32 %v3246_v11, 0.0  ;;  %v6778_v9 = vpop.f32.mrb[42].mxu1 }
 0x1fa   :  { %v3686_v20 = vmax.f32 %v6499_v18, 0.0  ;;  %v2326_v21 = vpop.f32.mrb[141].mxu0  ;;  %6657 = vmatmul.mubr.msk.f32.gmra.mrb[246].mxu0 %vm403_vm0, %v261_v10 }
 0x1fb   :  { %v3685_v17 = vmax.f32 %v2326_v21, 0.0  ;;  %6659 = vmatprep.mubr.msk.f32.mxu0 %vm403_vm0, %v262_v12  ;;  %v8936_v6 = vpack.c.bf16 %v3870_v62, %v3869_v7  ;;  %v3256_v21 = vpop.f32.mrb[43].mxu1 }
 0x1fd   :  { %v8911_v35 = vpack.c.bf16 %v3686_v20, %v3685_v17  ;;  %v6502_v36 = vpop.f32.mrb[142].mxu0  ;;  %v269_v20 = vld [vmem:[%s9333_s0 + $0x7f8] sm:$0xff]  ;;  %v3872_v17 = vmax.f32 %v6778_v9, 0.0 }
 0x1fe   :  { %v3688_v37 = vmax.f32 %v6502_v36, 0.0  ;;  %v2336_v39 = vpop.f32.mrb[143].mxu0  ;;  %6660 = vmatmul.mubr.msk.f32.gmra.mrb[248].mxu0 %vm403_vm0, %v263_v27  ;;  %v3871_v27 = vmax.f32 %v3256_v21, 0.0 }
 0x1ff   :  { %v3687_v42 = vmax.f32 %v2336_v39, 0.0  ;;  %6662 = vmatprep.mubr.msk.f32.mxu0 %vm403_vm0, %v264_v28 }
 0x200   :  { %v8947_v36 = vpack.c.bf16 %v3872_v17, %v3871_v27 }
 0x201   :  { %v8923_v3 = vpack.c.bf16 %v3688_v37, %v3687_v42  ;;  %v6505_v54 = vpop.f32.mrb[144].mxu0  ;;  %v6781_v37 = vpop.f32.mrb[44].mxu1  ;;  %v272_v42 = vld [vmem:[%s9333_s0 + $0x810] sm:$0xff] }
 0x202   :  { %v3690_v56 = vmax.f32 %v6505_v54, 0.0  ;;  %v2346_v48 = vpop.f32.mrb[145].mxu0  ;;  %6663 = vmatmul.mubr.msk.f32.gmra.mrb[250].mxu0 %vm403_vm0, %v265_v43  ;;  %v3266_v31 = vpop.f32.mrb[45].mxu1  ;;  %v3874_v43 = vmax.f32 %v6781_v37, 0.0 }
 0x203   :  { %v3689_v55 = vmax.f32 %v2346_v48, 0.0  ;;  %6665 = vmatprep.mubr.msk.f32.mxu0 %vm403_vm0, %v266_v41  ;;  %v3873_v44 = vmax.f32 %v3266_v31, 0.0  ;;  %v6784_v48 = vpop.f32.mrb[46].mxu1 }
 0x204   :  { %v3876_v11 = vmax.f32 %v6784_v48, 0.0 }
 0x205   :  { %v7009_v8 = vpack.c.bf16 %v3690_v56, %v3689_v55  ;;  %v6508_v10 = vpop.f32.mrb[146].mxu0  ;;  %v8958_v56 = vpack.c.bf16 %v3874_v43, %v3873_v44  ;;  %v3276_v55 = vpop.f32.mrb[47].mxu1 }
 0x206   :  { %v3692_v5 = vmax.f32 %v6508_v10, 0.0  ;;  %v2356_v12 = vpop.f32.mrb[147].mxu0  ;;  %6666 = vmatmul.mubr.msk.f32.gmra.mrb[252].mxu0 %vm403_vm0, %v267_v61  ;;  %v274_v61 = vld [vmem:[%s9333_s0 + $0x820] sm:$0xff] }
 0x207   :  { %v3691_v18 = vmax.f32 %v2356_v12, 0.0  ;;  %7010 = vmatprep.subr.bf16.mxu1 %v7009_v8  ;;  %6668 = vmatprep.mubr.msk.f32.mxu0 %vm403_vm0, %v268_v59  ;;  %v3875_v59 = vmax.f32 %v3276_v55, 0.0  ;;  %v6787_v12 = vpop.f32.mrb[48].mxu1 }
 0x208   :  { %7012 = vmatpush3.bf16.msra.mxu1 %v8830_v0  ;;  %v271_v0 = vld [vmem:[%s9333_s0 + $0x808] sm:$0xff]  ;;  %v3878_v21 = vmax.f32 %v6787_v12, 0.0 }
 0x209   :  { %v7013_v22 = vpack.c.bf16 %v3692_v5, %v3691_v18  ;;  %v6511_v28 = vpop.f32.mrb[148].mxu0  ;;  %v8969_v5 = vpack.c.bf16 %v3876_v11, %v3875_v59  ;;  %v3286_v18 = vpop.f32.mrb[49].mxu1 }
 0x20a   :  { %v3694_v30 = vmax.f32 %v6511_v28, 0.0  ;;  %v2366_v32 = vpop.f32.mrb[149].mxu0  ;;  %6669 = vmatmul.mubr.msk.f32.gmra.mrb[254].mxu0 %vm403_vm0, %v269_v20  ;;  %v276_v20 = vld [vmem:[%s9333_s0 + $0x830] sm:$0xff] }
 0x20b   :  { %v3693_v39 = vmax.f32 %v2366_v32, 0.0  ;;  %7014 = vmatprep.subr.bf16.mxu1 %v7013_v22  ;;  %6671 = vmatprep.mubr.msk.f32.mxu0 %vm403_vm0, %v270_v24  ;;  %v3877_v24 = vmax.f32 %v3286_v18, 0.0  ;;  %v6790_v32 = vpop.f32.mrb[50].mxu1 }
 0x20c   :  { %7016 = vmatpush3.bf16.msra.mxu1 %v8848_v15  ;;  %v273_v15 = vld [vmem:[%s9333_s0 + $0x818] sm:$0xff]  ;;  %v3880_v31 = vmax.f32 %v6790_v32, 0.0 }
 0x20d   :  { %v7017_v41 = vpack.c.bf16 %v3694_v30, %v3693_v39  ;;  %v6514_v38 = vpop.f32.mrb[150].mxu0  ;;  %v8980_v30 = vpack.c.bf16 %v3878_v21, %v3877_v24  ;;  %v3296_v39 = vpop.f32.mrb[51].mxu1 }
 0x20e   :  { %v3696_v50 = vmax.f32 %v6514_v38, 0.0  ;;  %v2376_v54 = vpop.f32.mrb[151].mxu0  ;;  %6672 = vmatmul.mubr.msk.f32.gmra.mrb[0].mxu0 %vm403_vm0, %v271_v0  ;;  %v278_v0 = vld [vmem:[%s9333_s0 + $0x840] sm:$0xff] }
 0x20f   :  { %v3695_v60 = vmax.f32 %v2376_v54, 0.0  ;;  %7018 = vmatprep.subr.bf16.mxu1 %v7017_v41  ;;  %6674 = vmatprep.mubr.msk.f32.mxu0 %vm403_vm0, %v272_v42  ;;  %v3879_v42 = vmax.f32 %v3296_v39, 0.0  ;;  %v6793_v54 = vpop.f32.mrb[52].mxu1  ;;  %v3937_v39 = vld [vmem:[%s9334_s2 + $0x40] sm:$0xff] }
 0x210   :  { %7020 = vmatpush3.bf16.msra.mxu1 %v8863_v25  ;;  %v275_v25 = vld [vmem:[%s9333_s0 + $0x828] sm:$0xff]  ;;  %v3882_v55 = vmax.f32 %v6793_v54, 0.0 }
 0x211   :  { %v7021_v62 = vpack.c.bf16 %v3696_v50, %v3695_v60  ;;  %v6517_v7 = vpop.f32.mrb[152].mxu0  ;;  %v8991_v50 = vpack.c.bf16 %v3880_v31, %v3879_v42  ;;  %v3306_v60 = vpop.f32.mrb[53].mxu1 }
 0x212   :  { %v3698_v8 = vmax.f32 %v6517_v7, 0.0  ;;  %v2386_v10 = vpop.f32.mrb[153].mxu0  ;;  %6675 = vmatmul.mubr.msk.f32.gmra.mrb[2].mxu0 %vm403_vm0, %v273_v15  ;;  %v280_v15 = vld [vmem:[%s9333_s0 + $0x850] sm:$0xff] }
 0x213   :  { %v3697_v9 = vmax.f32 %v2386_v10, 0.0  ;;  %7022 = vmatprep.subr.bf16.mxu1 %v7021_v62  ;;  %6677 = vmatprep.mubr.msk.f32.mxu0 %vm403_vm0, %v274_v61  ;;  %v3881_v61 = vmax.f32 %v3306_v60, 0.0  ;;  %v6796_v10 = vpop.f32.mrb[54].mxu1 }
 0x214   :  { %7024 = vmatpush3.bf16.msra.mxu1 %v8875_v47  ;;  %v277_v47 = vld [vmem:[%s9333_s0 + $0x838] sm:$0xff]  ;;  %v3884_v18 = vmax.f32 %v6796_v10, 0.0 }
 0x215   :  { %v7025_v17 = vpack.c.bf16 %v3698_v8, %v3697_v9  ;;  %v6520_v27 = vpop.f32.mrb[154].mxu0  ;;  %v9002_v8 = vpack.c.bf16 %v3882_v55, %v3881_v61  ;;  %v3316_v9 = vpop.f32.mrb[55].mxu1  ;;  %v3961_v55 = vld [vmem:[%s9334_s2 + $0x100] sm:$0xff] }
 0x216   :  { %v3700_v22 = vmax.f32 %v6520_v27, 0.0  ;;  %v2396_v28 = vpop.f32.mrb[155].mxu0  ;;  %6678 = vmatmul.mubr.msk.f32.gmra.mrb[4].mxu0 %vm403_vm0, %v275_v25  ;;  %v282_v25 = vld [vmem:[%s9333_s0 + $0x860] sm:$0xff] }
 0x217   :  { %v3699_v37 = vmax.f32 %v2396_v28, 0.0  ;;  %7026 = vmatprep.subr.bf16.mxu1 %v7025_v17  ;;  %6680 = vmatprep.mubr.msk.f32.mxu0 %vm403_vm0, %v276_v20  ;;  %v3883_v20 = vmax.f32 %v3316_v9, 0.0  ;;  %v6799_v28 = vpop.f32.mrb[56].mxu1 }
 0x218   :  { %7028 = vmatpush3.bf16.msra.mxu1 %v8887_v52  ;;  %v279_v52 = vld [vmem:[%s9333_s0 + $0x848] sm:$0xff] }
 0x219   :  { %v7029_v43 = vpack.c.bf16 %v3700_v22, %v3699_v37  ;;  %v6523_v44 = vpop.f32.mrb[156].mxu0  ;;  %v9013_v22 = vpack.c.bf16 %v3884_v18, %v3883_v20  ;;  %v3326_v37 = vpop.f32.mrb[57].mxu1  ;;  %v287_v18 = vld [vmem:[%s9333_s0 + $0x888] sm:$0xff] }
 0x21a   :  { %v3702_v41 = vmax.f32 %v6523_v44, 0.0  ;;  %v2406_v38 = vpop.f32.mrb[157].mxu0  ;;  %6681 = vmatmul.mubr.msk.f32.gmra.mrb[6].mxu0 %vm403_vm0, %v277_v47  ;;  %v284_v47 = vld [vmem:[%s9333_s0 + $0x870] sm:$0xff]  ;;  %v3885_v31 = vmax.f32 %v3326_v37, 0.0  ;;  %v3962_v44 = vld [vmem:[%s9334_s2 + $0x108] sm:$0xff]  ;;  %v6802_v54 = vpop.f32.mrb[58].mxu1 }
 0x21b   :  { %v3701_v48 = vmax.f32 %v2406_v38, 0.0  ;;  %7030 = vmatprep.subr.bf16.mxu1 %v7029_v43  ;;  %6683 = vmatprep.mubr.msk.f32.mxu0 %vm403_vm0, %v278_v0  ;;  %v3886_v0 = vmax.f32 %v6799_v28, 0.0  ;;  %v3336_v60 = vpop.f32.mrb[59].mxu1  ;;  %v3888_v61 = vmax.f32 %v6802_v54, 0.0 }
 0x21c   :  { %7032 = vmatpush3.bf16.msra.mxu1 %v8899_v19  ;;  %v281_v19 = vld [vmem:[%s9333_s0 + $0x858] sm:$0xff]  ;;  %v6805_v9 = vpop.f32.mrb[60].mxu1 }
 0x21d   :  { %v7033_v11 = vpack.c.bf16 %v3702_v41, %v3701_v48  ;;  %v6526_v59 = vpop.f32.mrb[158].mxu0  ;;  %v3346_v20 = vpop.f32.mrb[61].mxu1 }
 0x21e   :  { %v3704_v62 = vmax.f32 %v6526_v59, 0.0  ;;  %v2416_v7 = vpop.f32.mrb[159].mxu0  ;;  %6684 = vmatmul.mubr.msk.f32.gmra.mrb[8].mxu0 %vm403_vm0, %v279_v52  ;;  %v285_v52 = vld [vmem:[%s9333_s0 + $0x878] sm:$0xff] }
 0x21f   :  { %v3703_v12 = vmax.f32 %v2416_v7, 0.0  ;;  %7034 = vmatprep.subr.bf16.mxu1 %v7033_v11  ;;  %6686 = vmatprep.mubr.msk.f32.mxu0 %vm403_vm0, %v280_v15  ;;  %v286_v15 = vld [vmem:[%s9333_s0 + $0x880] sm:$0xff]  ;;  %v3887_v11 = vmax.f32 %v3336_v60, 0.0  ;;  %v3940_v7 = vld [vmem:[%s9334_s2 + $0x58] sm:$0xff] }
 0x220   :  { %7036 = vmatpush3.bf16.msra.mxu1 %v8911_v35  ;;  %v283_v35 = vld [vmem:[%s9333_s0 + $0x868] sm:$0xff] }
 0x221   :  { %v7037_v21 = vpack.c.bf16 %v3704_v62, %v3703_v12  ;;  %v6529_v24 = vpop.f32.mrb[160].mxu0 }
 0x222   :  { %v3706_v17 = vmax.f32 %v6529_v24, 0.0  ;;  %v2426_v27 = vpop.f32.mrb[161].mxu0  ;;  %6687 = vmatmul.mubr.msk.f32.gmra.mrb[10].mxu0 %vm403_vm0, %v281_v19  ;;  %v9050_v19 = vpack.c.bf16 %v3888_v61, %v3887_v11  ;;  %v3890_v24 = vmax.f32 %v6805_v9, 0.0  ;;  %v291_v61 = vld [vmem:[%s9333_s0 + $0x8a8] sm:$0xff] }
 0x223   :  { %v3705_v32 = vmax.f32 %v2426_v27, 0.0  ;;  %7038 = vmatprep.subr.bf16.mxu1 %v7037_v21  ;;  %6689 = vmatprep.mubr.msk.f32.mxu0 %vm403_vm0, %v282_v25  ;;  %v288_v21 = vld [vmem:[%s9333_s0 + $0x890] sm:$0xff] }
 0x224   :  { %7040 = vmatpush3.bf16.msra.mxu1 %v8923_v3  ;;  %v9032_v3 = vpack.c.bf16 %v3886_v0, %v3885_v31  ;;  %v289_v0 = vld [vmem:[%s9333_s0 + $0x898] sm:$0xff] }
 0x225   :  { %v9026_v42 = vpack.c.bf16 %v3706_v17, %v3705_v32  ;;  %v6532_v43 = vpop.f32.mrb[162].mxu0  ;;  %v3889_v17 = vmax.f32 %v3346_v20, 0.0 }
 0x226   :  { %v3708_v41 = vmax.f32 %v6532_v43, 0.0  ;;  %v2436_v38 = vpop.f32.mrb[163].mxu0  ;;  %6690 = vmatmul.mubr.msk.f32.gmra.mrb[12].mxu0 %vm403_vm0, %v283_v35  ;;  %v290_v43 = vld [vmem:[%s9333_s0 + $0x8a0] sm:$0xff] }
 0x227   :  { %v3707_v48 = vmax.f32 %v2436_v38, 0.0  ;;  %6692 = vmatprep.mubr.msk.f32.mxu0 %vm403_vm0, %v284_v47  ;;  %4342 = vmatmul.mubr.f32.vlgmr.msra.gmra.mrb[116].mxu1 %v3937_v39  ;;  %v9062_v37 = vpack.c.bf16 %v3890_v24, %v3889_v17  ;;  %v6808_v47 = vpop.f32.mrb[62].mxu1  ;;  %v293_v17 = vld [vmem:[%s9333_s0 + $0x8b8] sm:$0xff] }
 0x228   :  { %4346 = vmatprep.mubr.f32.mxu1 %v3962_v44  ;;  %v3356_v31 = vpop.f32.mrb[63].mxu1  ;;  %v3892_v44 = vmax.f32 %v6808_v47, 0.0 }
 0x229   :  { %v9044_v59 = vpack.c.bf16 %v3708_v41, %v3707_v48  ;;  %v6535_v62 = vpop.f32.mrb[164].mxu0  ;;  %v3891_v41 = vmax.f32 %v3356_v31, 0.0 }
 0x22a   :  { %v3710_v10 = vmax.f32 %v6535_v62, 0.0  ;;  %v2446_v12 = vpop.f32.mrb[165].mxu0  ;;  %6693 = vmatmul.mubr.msk.f32.gmra.mrb[14].mxu0 %vm403_vm0, %v285_v52  ;;  %v292_v62 = vld [vmem:[%s9333_s0 + $0x8b0] sm:$0xff] }
 0x22b   :  { %v3709_v25 = vmax.f32 %v2446_v12, 0.0  ;;  %6695 = vmatprep.mubr.msk.f32.mxu0 %vm403_vm0, %v286_v15  ;;  %4347 = vmatmul.mubr.f32.gmra.mrb[118].mxu1 %v3961_v55  ;;  %v9074_v60 = vpack.c.bf16 %v3892_v44, %v3891_v41  ;;  %v6811_v15 = vpop.f32.mrb[64].mxu1 }
 0x22c   :  { %4416 = vmatprep.mubr.f32.mxu1 %v3940_v7  ;;  %v3366_v11 = vpop.f32.mrb[65].mxu1  ;;  %v3894_v7 = vmax.f32 %v6811_v15, 0.0  ;;  %v296_v15 = vld [vmem:[%s9333_s0 + $0x8d0] sm:$0xff] }
 0x22d   :  { %v9059_v27 = vpack.c.bf16 %v3710_v10, %v3709_v25  ;;  %v6538_v28 = vpop.f32.mrb[166].mxu0  ;;  %v3893_v10 = vmax.f32 %v3366_v11, 0.0 }
 0x22e   :  { %v3712_v32 = vmax.f32 %v6538_v28, 0.0  ;;  %v2456_v35 = vpop.f32.mrb[167].mxu0  ;;  %6696 = vmatmul.mubr.msk.f32.gmra.mrb[16].mxu0 %vm403_vm0, %v287_v18 }
 0x22f   :  { %v3711_v39 = vmax.f32 %v2456_v35, 0.0  ;;  %6698 = vmatprep.mubr.msk.f32.mxu0 %vm403_vm0, %v288_v21  ;;  %v9086_v20 = vpack.c.bf16 %v3894_v7, %v3893_v10  ;;  %v6814_v21 = vpop.f32.mrb[66].mxu1 }
 0x230   :  { %v3376_v28 = vpop.f32.mrb[67].mxu1  ;;  %v3896_v35 = vmax.f32 %v6814_v21, 0.0  ;;  %v297_v21 = vld [vmem:[%s9333_s0 + $0x8d8] sm:$0xff] }
 0x231   :  { %v9071_v38 = vpack.c.bf16 %v3712_v32, %v3711_v39  ;;  %v6541_v54 = vpop.f32.mrb[168].mxu0  ;;  %v294_v32 = vld [vmem:[%s9333_s0 + $0x8c0] sm:$0xff]  ;;  %v3895_v47 = vmax.f32 %v3376_v28, 0.0  ;;  %v6817_v41 = vpop.f32.mrb[68].mxu1 }
 0x232   :  { %v3714_v48 = vmax.f32 %v6541_v54, 0.0  ;;  %v2466_v52 = vpop.f32.mrb[169].mxu0  ;;  %6699 = vmatmul.mubr.msk.f32.gmra.mrb[18].mxu0 %vm403_vm0, %v289_v0 }
 0x233   :  { %v3713_v55 = vmax.f32 %v2466_v52, 0.0  ;;  %6701 = vmatprep.mubr.msk.f32.mxu0 %vm403_vm0, %v290_v43  ;;  %v9098_v44 = vpack.c.bf16 %v3896_v35, %v3895_v47  ;;  %v3386_v52 = vpop.f32.mrb[69].mxu1 }
 0x235   :  { %v9083_v12 = vpack.c.bf16 %v3714_v48, %v3713_v55  ;;  %v6544_v9 = vpop.f32.mrb[170].mxu0  ;;  %v295_v48 = vld [vmem:[%s9333_s0 + $0x8c8] sm:$0xff]  ;;  %v3898_v55 = vmax.f32 %v6817_v41, 0.0 }
 0x236   :  { %v3716_v25 = vmax.f32 %v6544_v9, 0.0  ;;  %v2476_v18 = vpop.f32.mrb[171].mxu0  ;;  %6702 = vmatmul.mubr.msk.f32.gmra.mrb[20].mxu0 %vm403_vm0, %v291_v61  ;;  %v3897_v61 = vmax.f32 %v3386_v52, 0.0 }
 0x237   :  { %v3715_v24 = vmax.f32 %v2476_v18, 0.0  ;;  %6704 = vmatprep.mubr.msk.f32.mxu0 %vm403_vm0, %v292_v62 }
 0x238   :  { %v9110_v9 = vpack.c.bf16 %v3898_v55, %v3897_v61 }
 0x239   :  { %v9095_v39 = vpack.c.bf16 %v3716_v25, %v3715_v24  ;;  %v6547_v0 = vpop.f32.mrb[172].mxu0  ;;  %v6820_v25 = vpop.f32.mrb[70].mxu1 }
 0x23a   :  { %v3718_v31 = vmax.f32 %v6547_v0, 0.0  ;;  %v2486_v43 = vpop.f32.mrb[173].mxu0  ;;  %6705 = vmatmul.mubr.msk.f32.gmra.mrb[22].mxu0 %vm403_vm0, %v293_v17  ;;  %9336 = vst [vmem:[#allocation2_spill] sm:$0xff] %v9110_v9  ;;  %v3396_v24 = vpop.f32.mrb[71].mxu1  ;;  %v3900_v17 = vmax.f32 %v6820_v25, 0.0 }
 0x23b   :  { %v3717_v54 = vmax.f32 %v2486_v43, 0.0  ;;  %6707 = vmatprep.mubr.msk.f32.mxu0 %vm403_vm0, %v294_v32  ;;  %v3899_v28 = vmax.f32 %v3396_v24, 0.0  ;;  %v6823_v43 = vpop.f32.mrb[72].mxu1 }
 0x23d   :  { %v9107_v11 = vpack.c.bf16 %v3718_v31, %v3717_v54  ;;  %v6550_v62 = vpop.f32.mrb[174].mxu0  ;;  %v9119_v31 = vpack.c.bf16 %v3900_v17, %v3899_v28  ;;  %v3406_v54 = vpop.f32.mrb[73].mxu1 }
 0x23e   :  { %v3720_v7 = vmax.f32 %v6550_v62, 0.0  ;;  %v2496_v10 = vpop.f32.mrb[175].mxu0  ;;  %6708 = vmatmul.mubr.msk.f32.gmra.mrb[24].mxu0 %vm403_vm0, %v295_v48  ;;  %v3902_v48 = vmax.f32 %v6823_v43, 0.0  ;;  %v3901_v52 = vmax.f32 %v3406_v54, 0.0 }
 0x23f   :  { %v3719_v18 = vmax.f32 %v2496_v10, 0.0  ;;  %6710 = vmatprep.mubr.msk.f32.mxu0 %vm403_vm0, %v296_v15  ;;  %9337 = vst [vmem:[#allocation3_spill] sm:$0xff] %v9119_v31 }
 0x240   :  { %v9121_v10 = vpack.c.bf16 %v3902_v48, %v3901_v52 }
 0x241   :  { %v9116_v32 = vpack.c.bf16 %v3720_v7, %v3719_v18  ;;  %v6553_v35 = vpop.f32.mrb[176].mxu0  ;;  %v6826_v7 = vpop.f32.mrb[74].mxu1 }
 0x242   :  { %v3722_v47 = vmax.f32 %v6553_v35, 0.0  ;;  %v2506_v0 = vpop.f32.mrb[177].mxu0  ;;  %6711 = vmatmul.mubr.msk.f32.gmra.mrb[26].mxu0 %vm403_vm0, %v297_v21  ;;  %9338 = vst [vmem:[#allocation4_spill] sm:$0xff] %v9121_v10  ;;  %v3416_v18 = vpop.f32.mrb[75].mxu1  ;;  %v3904_v21 = vmax.f32 %v6826_v7, 0.0 }
 0x243   :  { %v3721_v41 = vmax.f32 %v2506_v0, 0.0  ;;  %v3903_v24 = vmax.f32 %v3416_v18, 0.0 }
 0x245   :  { %v7041_v15 = vpack.c.bf16 %v3722_v47, %v3721_v41  ;;  %v6556_v55 = vpop.f32.mrb[178].mxu0  ;;  %v9124_v43 = vpack.c.bf16 %v3904_v21, %v3903_v24  ;;  %v6829_v47 = vpop.f32.mrb[76].mxu1 }
 0x246   :  { %v3724_v61 = vmax.f32 %v6556_v55, 0.0  ;;  %v2516_v62 = vpop.f32.mrb[179].mxu0  ;;  %v3426_v54 = vpop.f32.mrb[77].mxu1  ;;  %v3906_v48 = vmax.f32 %v6829_v47, 0.0 }
 0x247   :  { %v3723_v25 = vmax.f32 %v2516_v62, 0.0  ;;  %7042 = vmatprep.subr.bf16.mxu1 %v7041_v15  ;;  %9339 = vst [vmem:[#allocation5_spill] sm:$0xff] %v9124_v43  ;;  %v3905_v52 = vmax.f32 %v3426_v54, 0.0 }
 0x248   :  { %7044 = vmatpush3.bf16.msra.mxu1 %v9026_v42 }
 0x249   :  { %v7045_v17 = vpack.c.bf16 %v3724_v61, %v3723_v25  ;;  %v6559_v28 = vpop.f32.mrb[180].mxu0  ;;  %v9127_v7 = vpack.c.bf16 %v3906_v48, %v3905_v52  ;;  %v6832_v61 = vpop.f32.mrb[78].mxu1 }
 0x24a   :  { %v3726_v35 = vmax.f32 %v6559_v28, 0.0  ;;  %v2526_v0 = vpop.f32.mrb[181].mxu0  ;;  %v3436_v18 = vpop.f32.mrb[79].mxu1  ;;  %v3908_v21 = vmax.f32 %v6832_v61, 0.0 }
 0x24b   :  { %v3725_v41 = vmax.f32 %v2526_v0, 0.0  ;;  %7046 = vmatprep.subr.bf16.mxu1 %v7045_v17  ;;  %9340 = vst [vmem:[#allocation6_spill] sm:$0xff] %v9127_v7  ;;  %v3907_v24 = vmax.f32 %v3436_v18, 0.0 }
 0x24c   :  { %7048 = vmatpush3.bf16.msra.mxu1 %v9044_v59 }
 0x24d   :  { %v7049_v15 = vpack.c.bf16 %v3726_v35, %v3725_v41  ;;  %v6562_v55 = vpop.f32.mrb[182].mxu0  ;;  %v9130_v47 = vpack.c.bf16 %v3908_v21, %v3907_v24  ;;  %v6835_v35 = vpop.f32.mrb[80].mxu1 }
 0x24e   :  { %v3728_v62 = vmax.f32 %v6562_v55, 0.0  ;;  %v2536_v42 = vpop.f32.mrb[183].mxu0  ;;  %v3446_v54 = vpop.f32.mrb[81].mxu1  ;;  %v3910_v48 = vmax.f32 %v6835_v35, 0.0 }
 0x24f   :  { %v3727_v25 = vmax.f32 %v2536_v42, 0.0  ;;  %7050 = vmatprep.subr.bf16.mxu1 %v7049_v15  ;;  %9341 = vst [vmem:[#allocation7_spill] sm:$0xff] %v9130_v47  ;;  %v3909_v52 = vmax.f32 %v3446_v54, 0.0 }
 0x250   :  { %7052 = vmatpush3.bf16.msra.mxu1 %v9059_v27 }
 0x251   :  { %v7053_v17 = vpack.c.bf16 %v3728_v62, %v3727_v25  ;;  %v6565_v28 = vpop.f32.mrb[184].mxu0  ;;  %v9133_v61 = vpack.c.bf16 %v3910_v48, %v3909_v52  ;;  %v6838_v62 = vpop.f32.mrb[82].mxu1 }
 0x252   :  { %v3730_v0 = vmax.f32 %v6565_v28, 0.0  ;;  %v2546_v59 = vpop.f32.mrb[185].mxu0  ;;  %v3456_v18 = vpop.f32.mrb[83].mxu1  ;;  %v3912_v21 = vmax.f32 %v6838_v62, 0.0 }
 0x253   :  { %v3729_v41 = vmax.f32 %v2546_v59, 0.0  ;;  %7054 = vmatprep.subr.bf16.mxu1 %v7053_v17  ;;  %9342 = vst [vmem:[#allocation8_spill] sm:$0xff] %v9133_v61  ;;  %v3911_v24 = vmax.f32 %v3456_v18, 0.0 }
 0x254   :  { %7056 = vmatpush3.bf16.msra.mxu1 %v9071_v38 }
 0x255   :  { %v7057_v15 = vpack.c.bf16 %v3730_v0, %v3729_v41  ;;  %v6568_v55 = vpop.f32.mrb[186].mxu0  ;;  %v9136_v35 = vpack.c.bf16 %v3912_v21, %v3911_v24  ;;  %v6841_v0 = vpop.f32.mrb[84].mxu1 }
 0x256   :  { %v3732_v42 = vmax.f32 %v6568_v55, 0.0  ;;  %v2556_v27 = vpop.f32.mrb[187].mxu0  ;;  %v3466_v54 = vpop.f32.mrb[85].mxu1  ;;  %v3914_v48 = vmax.f32 %v6841_v0, 0.0 }
 0x257   :  { %v3731_v25 = vmax.f32 %v2556_v27, 0.0  ;;  %7058 = vmatprep.subr.bf16.mxu1 %v7057_v15  ;;  %9343 = vst [vmem:[#allocation9_spill] sm:$0xff] %v9136_v35  ;;  %v3913_v52 = vmax.f32 %v3466_v54, 0.0 }
 0x258   :  { %7060 = vmatpush3.bf16.msra.mxu1 %v9083_v12 }
 0x259   :  { %v7061_v17 = vpack.c.bf16 %v3732_v42, %v3731_v25  ;;  %v6571_v28 = vpop.f32.mrb[188].mxu0  ;;  %v9139_v62 = vpack.c.bf16 %v3914_v48, %v3913_v52  ;;  %v6844_v42 = vpop.f32.mrb[86].mxu1  ;;  %v3939_v48 = vld [vmem:[%s9334_s2 + $0x50] sm:$0xff] }
 0x25a   :  { %v3734_v59 = vmax.f32 %v6571_v28, 0.0  ;;  %v2566_v38 = vpop.f32.mrb[189].mxu0  ;;  %v3476_v18 = vpop.f32.mrb[87].mxu1  ;;  %v3916_v21 = vmax.f32 %v6844_v42, 0.0 }
 0x25b   :  { %v3733_v41 = vmax.f32 %v2566_v38, 0.0  ;;  %7062 = vmatprep.subr.bf16.mxu1 %v7061_v17  ;;  %9344 = vst [vmem:[#allocation10_spill] sm:$0xff] %v9139_v62  ;;  %v3915_v24 = vmax.f32 %v3476_v18, 0.0 }
 0x25c   :  { %7064 = vmatpush3.bf16.msra.mxu1 %v9095_v39 }
 0x25d   :  { %v7065_v15 = vpack.c.bf16 %v3734_v59, %v3733_v41  ;;  %v6574_v55 = vpop.f32.mrb[190].mxu0  ;;  %v9142_v0 = vpack.c.bf16 %v3916_v21, %v3915_v24  ;;  %v6847_v59 = vpop.f32.mrb[88].mxu1  ;;  %v3963_v24 = vld [vmem:[%s9334_s2 + $0x110] sm:$0xff] }
 0x25e   :  { %v3736_v27 = vmax.f32 %v6574_v55, 0.0  ;;  %v2576_v12 = vpop.f32.mrb[191].mxu0  ;;  %v3486_v54 = vpop.f32.mrb[89].mxu1  ;;  %v3918_v52 = vmax.f32 %v6847_v59, 0.0 }
 0x25f   :  { %v3735_v25 = vmax.f32 %v2576_v12, 0.0  ;;  %7066 = vmatprep.subr.bf16.mxu1 %v7065_v15  ;;  %9345 = vst [vmem:[#allocation11_spill] sm:$0xff] %v9142_v0  ;;  %v6850_v18 = vpop.f32.mrb[90].mxu1 }
 0x260   :  { %7068 = vmatpush3.bf16.msra.mxu1 %v9107_v11  ;;  %v3917_v11 = vmax.f32 %v3486_v54, 0.0 }
 0x261   :  { %v7069_v17 = vpack.c.bf16 %v3736_v27, %v3735_v25  ;;  %v6577_v28 = vpop.f32.mrb[192].mxu0  ;;  %v3964_v27 = vld [vmem:[%s9334_s2 + $0x118] sm:$0xff] }
 0x262   :  { %v3738_v38 = vmax.f32 %v6577_v28, 0.0  ;;  %v2586_v39 = vpop.f32.mrb[193].mxu0  ;;  %v9153_v25 = vpack.c.bf16 %v3918_v52, %v3917_v11 }
 0x263   :  { %v3737_v41 = vmax.f32 %v2586_v39, 0.0  ;;  %7070 = vmatprep.subr.bf16.mxu1 %v7069_v17  ;;  %v3920_v17 = vmax.f32 %v6850_v18, 0.0 }
 0x264   :  { %7072 = vmatpush3.bf16.msra.mxu1 %v9116_v32  ;;  %9346 = vst [vmem:[#allocation12_spill] sm:$0xff] %v9153_v25  ;;  %v3496_v32 = vpop.f32.mrb[91].mxu1 }
 0x265   :  { %v9148_v15 = vpack.c.bf16 %v3738_v38, %v3737_v41  ;;  %v6580_v55 = vpop.f32.mrb[194].mxu0  ;;  %v3919_v28 = vmax.f32 %v3496_v32, 0.0  ;;  %v6853_v38 = vpop.f32.mrb[92].mxu1  ;;  %v3942_v41 = vld [vmem:[%s9334_s2 + $0x68] sm:$0xff] }
 0x266   :  { %v3740_v12 = vmax.f32 %v6580_v55, 0.0  ;;  %v2596_v42 = vpop.f32.mrb[195].mxu0  ;;  %v3922_v54 = vmax.f32 %v6853_v38, 0.0  ;;  %v3506_v52 = vpop.f32.mrb[93].mxu1 }
 0x267   :  { %v3739_v21 = vmax.f32 %v2596_v42, 0.0  ;;  %4417 = vmatmul.mubr.f32.vlgmr.msra.gmra.mrb[120].mxu1 %v3939_v48  ;;  %v9163_v55 = vpack.c.bf16 %v3920_v17, %v3919_v28  ;;  %v6856_v42 = vpop.f32.mrb[94].mxu1 }
 0x268   :  { %4421 = vmatprep.mubr.f32.mxu1 %v3964_v27  ;;  %v3921_v27 = vmax.f32 %v3506_v52, 0.0  ;;  %v3516_v18 = vpop.f32.mrb[95].mxu1  ;;  %v3924_v47 = vmax.f32 %v6856_v42, 0.0 }
 0x269   :  { %v9158_v39 = vpack.c.bf16 %v3740_v12, %v3739_v21  ;;  %v6583_v59 = vpop.f32.mrb[196].mxu0  ;;  %9347 = vst [vmem:[#allocation13_spill] sm:$0xff] %v9163_v55  ;;  %v6859_v12 = vpop.f32.mrb[96].mxu1  ;;  %v3923_v7 = vmax.f32 %v3516_v18, 0.0 }
 0x26a   :  { %v3742_v11 = vmax.f32 %v6583_v59, 0.0  ;;  %v2606_v48 = vpop.f32.mrb[197].mxu0  ;;  %v9165_v32 = vpack.c.bf16 %v3922_v54, %v3921_v27  ;;  %v3926_v38 = vmax.f32 %v6859_v12, 0.0  ;;  %v3526_v43 = vpop.f32.mrb[97].mxu1 }
 0x26b   :  { %v3741_v35 = vmax.f32 %v2606_v48, 0.0  ;;  %4422 = vmatmul.mubr.f32.gmra.mrb[122].mxu1 %v3963_v24  ;;  %v3925_v17 = vmax.f32 %v3526_v43, 0.0  ;;  %v6862_v28 = vpop.f32.mrb[98].mxu1  ;;  %v9169_v55 = vpack.c.bf16 %v3924_v47, %v3923_v7 }
 0x26c   :  { %4491 = vmatprep.mubr.f32.mxu1 %v3942_v41  ;;  %9348 = vst [vmem:[#allocation14_spill] sm:$0xff] %v9165_v32  ;;  %v3536_v24 = vpop.f32.mrb[99].mxu1 }
 0x26d   :  { %v9167_v21 = vpack.c.bf16 %v3742_v11, %v3741_v35  ;;  %v6586_v61 = vpop.f32.mrb[198].mxu0  ;;  %9349 = vst [vmem:[#allocation15_spill] sm:$0xff] %v9169_v55  ;;  %v9171_v48 = vpack.c.bf16 %v3926_v38, %v3925_v17  ;;  %v5849_v41 = vpop.f32.mrb[100].mxu1  ;;  %v3928_v11 = vmax.f32 %v6862_v28, 0.0  ;;  %v3927_v27 = vmax.f32 %v3536_v24, 0.0 }
 0x26e   :  { %v3744_v59 = vmax.f32 %v6586_v61, 0.0  ;;  %v2616_v10 = vpop.f32.mrb[199].mxu0  ;;  %v5850_v42 = vpop.f32.mrb[101].mxu1 }
 0x26f   :  { %v3743_v52 = vmax.f32 %v2616_v10, 0.0  ;;  %9350 = vst [vmem:[#allocation16_spill] sm:$0xff] %v9171_v48  ;;  %v5851_v32 = vadd.f32 %v5850_v42, %v5849_v41  ;;  %v5852_v61 = vpop.f32.mrb[102].mxu1  ;;  %v9175_v43 = vpack.c.bf16 %v3928_v11, %v3927_v27 }
 0x270   :  { %v5853_v10 = vpop.f32.mrb[103].mxu1 }
 0x271   :  { %v9173_v54 = vpack.c.bf16 %v3744_v59, %v3743_v52  ;;  %v6589_v35 = vpop.f32.mrb[200].mxu0  ;;  %9351 = vst [vmem:[#allocation17_spill] sm:$0xff] %v9175_v43  ;;  %v5887_v7 = vpop.f32.mrb[104].mxu1  ;;  %v5854_v17 = vadd.f32 %v5853_v10, %v5852_v61 }
 0x272   :  { %v3746_v18 = vmax.f32 %v6589_v35, 0.0  ;;  %v2626_v12 = vpop.f32.mrb[201].mxu0  ;;  %v5888_v48 = vpop.f32.mrb[105].mxu1 }
 0x273   :  { %v3745_v25 = vmax.f32 %v2626_v12, 0.0  ;;  %v5889_v55 = vadd.f32 %v5888_v48, %v5887_v7  ;;  %v5890_v28 = vpop.f32.mrb[106].mxu1 }
 0x274   :  { %v5891_v31 = vpop.f32.mrb[107].mxu1 }
 0x275   :  { %v9177_v47 = vpack.c.bf16 %v3746_v18, %v3745_v25  ;;  %v6592_v38 = vpop.f32.mrb[202].mxu0  ;;  %v4119_v35 = vadd.f32 %v5889_v55, %v5851_v32  ;;  %v5892_v42 = vadd.f32 %v5891_v31, %v5890_v28 }
 0x276   :  { %v3748_v59 = vmax.f32 %v6592_v38, 0.0  ;;  %v2636_v52 = vpop.f32.mrb[203].mxu0 }
 0x277   :  { %v3747_v24 = vmax.f32 %v2636_v52, 0.0  ;;  %v4124_v25 = vadd.f32 %v5892_v42, %v5854_v17 }
 0x279   :  { %v9179_v0 = vpack.c.bf16 %v3748_v59, %v3747_v24  ;;  %v6595_v41 = vpop.f32.mrb[204].mxu0 }
 0x27a   :  { %v3750_v11 = vmax.f32 %v6595_v41, 0.0  ;;  %v2646_v27 = vpop.f32.mrb[205].mxu0  ;;  %v5925_v12 = vpop.f32.mrb[108].mxu1 }
 0x27b   :  { %v3749_v43 = vmax.f32 %v2646_v27, 0.0  ;;  %v5926_v18 = vpop.f32.mrb[109].mxu1 }
 0x27c   :  { %v5927_v9 = vadd.f32 %v5926_v18, %v5925_v12 }
 0x27d   :  { %v7099_v61 = vpack.c.bf16 %v3750_v11, %v3749_v43  ;;  %v6598_v10 = vpop.f32.mrb[206].mxu0 }
 0x27e   :  { %v3752_v38 = vmax.f32 %v6598_v10, 0.0  ;;  %v2656_v62 = vpop.f32.mrb[207].mxu0  ;;  %v9181_v48 = vadd.f32 %v5927_v9, %v4119_v35  ;;  %v5928_v7 = vpop.f32.mrb[110].mxu1 }
 0x27f   :  { %v3751_v52 = vmax.f32 %v2656_v62, 0.0  ;;  %v5929_v55 = vpop.f32.mrb[111].mxu1 }
 0x280   :  { %v5930_v32 = vadd.f32 %v5929_v55, %v5928_v7 }
 0x281   :  { %v7103_v59 = vpack.c.bf16 %v3752_v38, %v3751_v52  ;;  %v6601_v24 = vpop.f32.mrb[208].mxu0 }
 0x282   :  { %v3754_v31 = vmax.f32 %v6601_v24, 0.0  ;;  %v2666_v28 = vpop.f32.mrb[209].mxu0  ;;  %v9183_v41 = vadd.f32 %v5930_v32, %v4124_v25 }
 0x283   :  { %v3753_v27 = vmax.f32 %v2666_v28, 0.0 }
 0x285   :  { %v7073_v17 = vpack.c.bf16 %v3754_v31, %v3753_v27  ;;  %v6604_v42 = vpop.f32.mrb[210].mxu0 }
 0x286   :  { %v3756_v12 = vmax.f32 %v6604_v42, 0.0  ;;  %v2676_v43 = vpop.f32.mrb[211].mxu0 }
 0x287   :  { %v3755_v11 = vmax.f32 %v2676_v43, 0.0  ;;  %7074 = vmatprep.subr.bf16.mxu1 %v7073_v17 }
 0x288   :  { %7076 = vmatpush3.bf16.msra.mxu1 %v9148_v15 }
 0x289   :  { %v7077_v9 = vpack.c.bf16 %v3756_v12, %v3755_v11  ;;  %v6607_v35 = vpop.f32.mrb[212].mxu0 }
 0x28a   :  { %v3758_v62 = vmax.f32 %v6607_v35, 0.0  ;;  %v2686_v18 = vpop.f32.mrb[213].mxu0 }
 0x28b   :  { %v3757_v10 = vmax.f32 %v2686_v18, 0.0  ;;  %7078 = vmatprep.subr.bf16.mxu1 %v7077_v9 }
 0x28c   :  { %7080 = vmatpush3.bf16.msra.mxu1 %v9158_v39 }
 0x28d   :  { %v7081_v38 = vpack.c.bf16 %v3758_v62, %v3757_v10  ;;  %v6610_v25 = vpop.f32.mrb[214].mxu0 }
 0x28e   :  { %v3760_v7 = vmax.f32 %v6610_v25, 0.0  ;;  %v2696_v52 = vpop.f32.mrb[215].mxu0 }
 0x28f   :  { %v3759_v55 = vmax.f32 %v2696_v52, 0.0  ;;  %7082 = vmatprep.subr.bf16.mxu1 %v7081_v38 }
 0x290   :  { %7084 = vmatpush3.bf16.msra.mxu1 %v9167_v21 }
 0x291   :  { %v7085_v32 = vpack.c.bf16 %v3760_v7, %v3759_v55  ;;  %v6613_v24 = vpop.f32.mrb[216].mxu0 }
 0x292   :  { %v3762_v31 = vmax.f32 %v6613_v24, 0.0  ;;  %v2706_v15 = vpop.f32.mrb[217].mxu0 }
 0x293   :  { %v3761_v28 = vmax.f32 %v2706_v15, 0.0  ;;  %7086 = vmatprep.subr.bf16.mxu1 %v7085_v32  ;;  %v3941_v32 = vld [vmem:[%s9334_s2 + $0x60] sm:$0xff] }
 0x294   :  { %7088 = vmatpush3.bf16.msra.mxu1 %v9173_v54 }
 0x295   :  { %v7089_v27 = vpack.c.bf16 %v3762_v31, %v3761_v28  ;;  %v6616_v17 = vpop.f32.mrb[218].mxu0  ;;  %v3966_v31 = vld [vmem:[%s9334_s2 + $0x128] sm:$0xff] }
 0x296   :  { %v3764_v42 = vmax.f32 %v6616_v17, 0.0  ;;  %v2716_v39 = vpop.f32.mrb[219].mxu0 }
 0x297   :  { %v3763_v12 = vmax.f32 %v2716_v39, 0.0  ;;  %7090 = vmatprep.subr.bf16.mxu1 %v7089_v27  ;;  %v3965_v27 = vld [vmem:[%s9334_s2 + $0x120] sm:$0xff] }
 0x298   :  { %7092 = vmatpush3.bf16.msra.mxu1 %v9177_v47 }
 0x299   :  { %v7093_v43 = vpack.c.bf16 %v3764_v42, %v3763_v12  ;;  %v6619_v11 = vpop.f32.mrb[220].mxu0  ;;  %v3944_v42 = vld [vmem:[%s9334_s2 + $0x78] sm:$0xff] }
 0x29a   :  { %v3766_v9 = vmax.f32 %v6619_v11, 0.0  ;;  %v2726_v21 = vpop.f32.mrb[221].mxu0 }
 0x29b   :  { %v3765_v35 = vmax.f32 %v2726_v21, 0.0  ;;  %7094 = vmatprep.subr.bf16.mxu1 %v7093_v43 }
 0x29c   :  { %7096 = vmatpush3.bf16.msra.mxu1 %v9179_v0 }
 0x29d   :  { %v7097_v62 = vpack.c.bf16 %v3766_v9, %v3765_v35  ;;  %v6622_v18 = vpop.f32.mrb[222].mxu0 }
 0x29e   :  { %v3768_v10 = vmax.f32 %v6622_v18, 0.0  ;;  %v2736_v54 = vpop.f32.mrb[223].mxu0 }
 0x29f   :  { %v3767_v38 = vmax.f32 %v2736_v54, 0.0  ;;  %7098 = vmatprep.subr.bf16.mxu1 %v7097_v62 }
 0x2a0   :  { %7100 = vmatpush3.bf16.msra.mxu1 %v7099_v61 }
 0x2a1   :  { %v7101_v25 = vpack.c.bf16 %v3768_v10, %v3767_v38  ;;  %v6625_v7 = vpop.f32.mrb[224].mxu0 }
 0x2a2   :  { %v3770_v52 = vmax.f32 %v6625_v7, 0.0  ;;  %v2746_v55 = vpop.f32.mrb[225].mxu0 }
 0x2a3   :  { %v3769_v47 = vmax.f32 %v2746_v55, 0.0  ;;  %7102 = vmatprep.subr.bf16.mxu1 %v7101_v25 }
 0x2a4   :  { %7104 = vmatpush3.bf16.msra.mxu1 %v7103_v59 }
 0x2a5   :  { %v7107_v24 = vpack.c.bf16 %v3770_v52, %v3769_v47  ;;  %v6628_v0 = vpop.f32.mrb[226].mxu0 }
 0x2a6   :  { %v3772_v15 = vmax.f32 %v6628_v0, 0.0  ;;  %v2756_v28 = vpop.f32.mrb[227].mxu0 }
 0x2a7   :  { %v3771_v61 = vmax.f32 %v2756_v28, 0.0  ;;  %4492 = vmatmul.mubr.f32.vlgmr.msra.gmra.mrb[124].mxu1 %v3941_v32 }
 0x2a8   :  { %4496 = vmatprep.mubr.f32.mxu1 %v3966_v31 }
 0x2a9   :  { %v7111_v59 = vpack.c.bf16 %v3772_v15, %v3771_v61  ;;  %v6631_v17 = vpop.f32.mrb[228].mxu0 }
 0x2aa   :  { %v3774_v39 = vmax.f32 %v6631_v17, 0.0  ;;  %v2766_v12 = vpop.f32.mrb[229].mxu0 }
 0x2ab   :  { %v3773_v43 = vmax.f32 %v2766_v12, 0.0  ;;  %4497 = vmatmul.mubr.f32.gmra.mrb[126].mxu1 %v3965_v27 }
 0x2ac   :  { %4566 = vmatprep.mubr.f32.mxu1 %v3944_v42 }
 0x2ad   :  { %v7115_v11 = vpack.c.bf16 %v3774_v39, %v3773_v43  ;;  %v6634_v9 = vpop.f32.mrb[230].mxu0 }
 0x2ae   :  { %v3776_v21 = vmax.f32 %v6634_v9, 0.0  ;;  %v2776_v35 = vpop.f32.mrb[231].mxu0 }
 0x2af   :  { %v3775_v62 = vmax.f32 %v2776_v35, 0.0 }
 0x2b1   :  { %v7119_v18 = vpack.c.bf16 %v3776_v21, %v3775_v62  ;;  %v6637_v10 = vpop.f32.mrb[232].mxu0 }
 0x2b2   :  { %v3778_v54 = vmax.f32 %v6637_v10, 0.0  ;;  %v2786_v38 = vpop.f32.mrb[233].mxu0 }
 0x2b3   :  { %v3777_v25 = vmax.f32 %v2786_v38, 0.0 }
 0x2b5   :  { %v7123_v7 = vpack.c.bf16 %v3778_v54, %v3777_v25  ;;  %v6640_v52 = vpop.f32.mrb[234].mxu0 }
 0x2b6   :  { %v3780_v55 = vmax.f32 %v6640_v52, 0.0  ;;  %v2796_v47 = vpop.f32.mrb[235].mxu0 }
 0x2b7   :  { %v3779_v32 = vmax.f32 %v2796_v47, 0.0 }
 0x2b9   :  { %v9203_v0 = vpack.c.bf16 %v3780_v55, %v3779_v32  ;;  %v6643_v31 = vpop.f32.mrb[236].mxu0 }
 0x2ba   :  { %v3782_v15 = vmax.f32 %v6643_v31, 0.0  ;;  %v2806_v28 = vpop.f32.mrb[237].mxu0  ;;  %v5963_v61 = vpop.f32.mrb[112].mxu1 }
 0x2bb   :  { %v3781_v27 = vmax.f32 %v2806_v28, 0.0  ;;  %v5964_v17 = vpop.f32.mrb[113].mxu1 }
 0x2bc   :  { %v5965_v42 = vadd.f32 %v5964_v17, %v5963_v61 }
 0x2bd   :  { %v7131_v39 = vpack.c.bf16 %v3782_v15, %v3781_v27  ;;  %v6646_v12 = vpop.f32.mrb[238].mxu0 }
 0x2be   :  { %v3784_v43 = vmax.f32 %v6646_v12, 0.0  ;;  %v2816_v9 = vpop.f32.mrb[239].mxu0  ;;  %v9206_v21 = vadd.f32 %v5965_v42, %v9181_v48  ;;  %v5966_v35 = vpop.f32.mrb[114].mxu1 }
 0x2bf   :  { %v3783_v62 = vmax.f32 %v2816_v9, 0.0  ;;  %v5967_v10 = vpop.f32.mrb[115].mxu1 }
 0x2c0   :  { %v5968_v54 = vadd.f32 %v5967_v10, %v5966_v35 }
 0x2c1   :  { %v7135_v38 = vpack.c.bf16 %v3784_v43, %v3783_v62  ;;  %v6649_v25 = vpop.f32.mrb[240].mxu0 }
 0x2c2   :  { %v3786_v52 = vmax.f32 %v6649_v25, 0.0  ;;  %v2826_v55 = vpop.f32.mrb[241].mxu0  ;;  %v9209_v47 = vadd.f32 %v5968_v54, %v9183_v41 }
 0x2c3   :  { %v3785_v32 = vmax.f32 %v2826_v55, 0.0 }
 0x2c5   :  { %v7105_v31 = vpack.c.bf16 %v3786_v52, %v3785_v32  ;;  %v6652_v15 = vpop.f32.mrb[242].mxu0 }
 0x2c6   :  { %v3788_v28 = vmax.f32 %v6652_v15, 0.0  ;;  %v2836_v61 = vpop.f32.mrb[243].mxu0 }
 0x2c7   :  { %v3787_v27 = vmax.f32 %v2836_v61, 0.0  ;;  %7106 = vmatprep.subr.bf16.mxu1 %v7105_v31 }
 0x2c8   :  { %7108 = vmatpush3.bf16.msra.mxu1 %v7107_v24 }
 0x2c9   :  { %v7109_v48 = vpack.c.bf16 %v3788_v28, %v3787_v27  ;;  %v6655_v17 = vpop.f32.mrb[244].mxu0 }
 0x2ca   :  { %v3790_v42 = vmax.f32 %v6655_v17, 0.0  ;;  %v2846_v12 = vpop.f32.mrb[245].mxu0 }
 0x2cb   :  { %v3789_v9 = vmax.f32 %v2846_v12, 0.0  ;;  %7110 = vmatprep.subr.bf16.mxu1 %v7109_v48 }
 0x2cc   :  { %7112 = vmatpush3.bf16.msra.mxu1 %v7111_v59 }
 0x2cd   :  { %v7113_v43 = vpack.c.bf16 %v3790_v42, %v3789_v9  ;;  %v6658_v35 = vpop.f32.mrb[246].mxu0 }
 0x2ce   :  { %v3792_v62 = vmax.f32 %v6658_v35, 0.0  ;;  %v2856_v41 = vpop.f32.mrb[247].mxu0 }
 0x2cf   :  { %v3791_v10 = vmax.f32 %v2856_v41, 0.0  ;;  %7114 = vmatprep.subr.bf16.mxu1 %v7113_v43 }
 0x2d0   :  { %7116 = vmatpush3.bf16.msra.mxu1 %v7115_v11 }
 0x2d1   :  { %v7117_v54 = vpack.c.bf16 %v3792_v62, %v3791_v10  ;;  %v6661_v25 = vpop.f32.mrb[248].mxu0 }
 0x2d2   :  { %v3794_v52 = vmax.f32 %v6661_v25, 0.0  ;;  %v2866_v55 = vpop.f32.mrb[249].mxu0 }
 0x2d3   :  { %v3793_v32 = vmax.f32 %v2866_v55, 0.0  ;;  %7118 = vmatprep.subr.bf16.mxu1 %v7117_v54  ;;  %v3943_v54 = vld [vmem:[%s9334_s2 + $0x70] sm:$0xff] }
 0x2d4   :  { %7120 = vmatpush3.bf16.msra.mxu1 %v7119_v18 }
 0x2d5   :  { %v7121_v24 = vpack.c.bf16 %v3794_v52, %v3793_v32  ;;  %v6664_v31 = vpop.f32.mrb[250].mxu0  ;;  %v3968_v52 = vld [vmem:[%s9334_s2 + $0x138] sm:$0xff] }
 0x2d6   :  { %v3796_v15 = vmax.f32 %v6664_v31, 0.0  ;;  %v2876_v28 = vpop.f32.mrb[251].mxu0 }
 0x2d7   :  { %v3795_v61 = vmax.f32 %v2876_v28, 0.0  ;;  %7122 = vmatprep.subr.bf16.mxu1 %v7121_v24  ;;  %v3967_v24 = vld [vmem:[%s9334_s2 + $0x130] sm:$0xff] }
 0x2d8   :  { %7124 = vmatpush3.bf16.msra.mxu1 %v7123_v7 }
 0x2d9   :  { %v7125_v59 = vpack.c.bf16 %v3796_v15, %v3795_v61  ;;  %v6667_v27 = vpop.f32.mrb[252].mxu0  ;;  %v3946_v15 = vld [vmem:[%s9334_s2 + $0x88] sm:$0xff] }
 0x2da   :  { %v3798_v48 = vmax.f32 %v6667_v27, 0.0  ;;  %v2886_v17 = vpop.f32.mrb[253].mxu0 }
 0x2db   :  { %v3797_v42 = vmax.f32 %v2886_v17, 0.0  ;;  %7126 = vmatprep.subr.bf16.mxu1 %v7125_v59 }
 0x2dc   :  { %7128 = vmatpush3.bf16.msra.mxu1 %v9203_v0 }
 0x2dd   :  { %v7129_v11 = vpack.c.bf16 %v3798_v48, %v3797_v42  ;;  %v6670_v12 = vpop.f32.mrb[254].mxu0 }
 0x2de   :  { %v3800_v9 = vmax.f32 %v6670_v12, 0.0  ;;  %v2896_v43 = vpop.f32.mrb[255].mxu0 }
 0x2df   :  { %v3799_v18 = vmax.f32 %v2896_v43, 0.0  ;;  %7130 = vmatprep.subr.bf16.mxu1 %v7129_v11 }
 0x2e0   :  { %7132 = vmatpush3.bf16.msra.mxu1 %v7131_v39 }
 0x2e1   :  { %v7133_v35 = vpack.c.bf16 %v3800_v9, %v3799_v18  ;;  %v6673_v62 = vpop.f32.mrb[0].mxu0 }
 0x2e2   :  { %v3802_v41 = vmax.f32 %v6673_v62, 0.0  ;;  %v2906_v10 = vpop.f32.mrb[1].mxu0 }
 0x2e3   :  { %v3801_v7 = vmax.f32 %v2906_v10, 0.0  ;;  %7134 = vmatprep.subr.bf16.mxu1 %v7133_v35 }
 0x2e4   :  { %7136 = vmatpush3.bf16.msra.mxu1 %v7135_v38 }
 0x2e5   :  { %v7139_v25 = vpack.c.bf16 %v3802_v41, %v3801_v7  ;;  %v6676_v0 = vpop.f32.mrb[2].mxu0 }
 0x2e6   :  { %v3804_v55 = vmax.f32 %v6676_v0, 0.0  ;;  %v2916_v32 = vpop.f32.mrb[3].mxu0 }
 0x2e7   :  { %v3803_v39 = vmax.f32 %v2916_v32, 0.0  ;;  %4567 = vmatmul.mubr.f32.vlgmr.msra.gmra.mrb[128].mxu1 %v3943_v54 }
 0x2e8   :  { %4571 = vmatprep.mubr.f32.mxu1 %v3968_v52 }
 0x2e9   :  { %v7143_v38 = vpack.c.bf16 %v3804_v55, %v3803_v39  ;;  %v6679_v31 = vpop.f32.mrb[4].mxu0 }
 0x2ea   :  { %v3806_v28 = vmax.f32 %v6679_v31, 0.0  ;;  %v2926_v61 = vpop.f32.mrb[5].mxu0 }
 0x2eb   :  { %v3805_v59 = vmax.f32 %v2926_v61, 0.0  ;;  %4572 = vmatmul.mubr.f32.gmra.mrb[130].mxu1 %v3967_v24 }
 0x2ec   :  { %4641 = vmatprep.mubr.f32.mxu1 %v3946_v15 }
 0x2ed   :  { %v7147_v27 = vpack.c.bf16 %v3806_v28, %v3805_v59  ;;  %v6682_v48 = vpop.f32.mrb[6].mxu0 }
 0x2ee   :  { %v3808_v17 = vmax.f32 %v6682_v48, 0.0  ;;  %v2936_v42 = vpop.f32.mrb[7].mxu0 }
 0x2ef   :  { %v3807_v11 = vmax.f32 %v2936_v42, 0.0 }
 0x2f1   :  { %v7151_v12 = vpack.c.bf16 %v3808_v17, %v3807_v11  ;;  %v6685_v9 = vpop.f32.mrb[8].mxu0 }
 0x2f2   :  { %v3810_v43 = vmax.f32 %v6685_v9, 0.0  ;;  %v2946_v18 = vpop.f32.mrb[9].mxu0 }
 0x2f3   :  { %v3809_v35 = vmax.f32 %v2946_v18, 0.0 }
 0x2f5   :  { %v7155_v62 = vpack.c.bf16 %v3810_v43, %v3809_v35  ;;  %v6688_v41 = vpop.f32.mrb[10].mxu0 }
 0x2f6   :  { %v3812_v10 = vmax.f32 %v6688_v41, 0.0  ;;  %v2956_v7 = vpop.f32.mrb[11].mxu0 }
 0x2f7   :  { %v3811_v54 = vmax.f32 %v2956_v7, 0.0 }
 0x2f9   :  { %v7159_v0 = vpack.c.bf16 %v3812_v10, %v3811_v54  ;;  %v6691_v52 = vpop.f32.mrb[12].mxu0 }
 0x2fa   :  { %v3814_v55 = vmax.f32 %v6691_v52, 0.0  ;;  %v2966_v32 = vpop.f32.mrb[13].mxu0  ;;  %v6001_v39 = vpop.f32.mrb[116].mxu1 }
 0x2fb   :  { %v3813_v24 = vmax.f32 %v2966_v32, 0.0  ;;  %v6002_v31 = vpop.f32.mrb[117].mxu1 }
 0x2fc   :  { %v6003_v15 = vadd.f32 %v6002_v31, %v6001_v39 }
 0x2fd   :  { %v7163_v28 = vpack.c.bf16 %v3814_v55, %v3813_v24  ;;  %v6694_v61 = vpop.f32.mrb[14].mxu0 }
 0x2fe   :  { %v3816_v59 = vmax.f32 %v6694_v61, 0.0  ;;  %v2976_v48 = vpop.f32.mrb[15].mxu0  ;;  %v9225_v17 = vadd.f32 %v6003_v15, %v9206_v21  ;;  %v6004_v42 = vpop.f32.mrb[118].mxu1 }
 0x2ff   :  { %v3815_v11 = vmax.f32 %v2976_v48, 0.0  ;;  %v6005_v9 = vpop.f32.mrb[119].mxu1 }
 0x300   :  { %v6006_v43 = vadd.f32 %v6005_v9, %v6004_v42 }
 0x301   :  { %v7167_v18 = vpack.c.bf16 %v3816_v59, %v3815_v11  ;;  %v6697_v35 = vpop.f32.mrb[16].mxu0 }
 0x302   :  { %v3818_v41 = vmax.f32 %v6697_v35, 0.0  ;;  %v2986_v10 = vpop.f32.mrb[17].mxu0  ;;  %v9228_v7 = vadd.f32 %v6006_v43, %v9209_v47 }
 0x303   :  { %v3817_v54 = vmax.f32 %v2986_v10, 0.0 }
 0x305   :  { %v7137_v52 = vpack.c.bf16 %v3818_v41, %v3817_v54  ;;  %v6700_v55 = vpop.f32.mrb[18].mxu0 }
 0x306   :  { %v3820_v32 = vmax.f32 %v6700_v55, 0.0  ;;  %v2996_v39 = vpop.f32.mrb[19].mxu0 }
 0x307   :  { %v3819_v24 = vmax.f32 %v2996_v39, 0.0  ;;  %7138 = vmatprep.subr.bf16.mxu1 %v7137_v52 }
 0x308   :  { %7140 = vmatpush3.bf16.msra.mxu1 %v7139_v25 }
 0x309   :  { %v7141_v21 = vpack.c.bf16 %v3820_v32, %v3819_v24  ;;  %v6703_v31 = vpop.f32.mrb[20].mxu0 }
 0x30a   :  { %v3822_v15 = vmax.f32 %v6703_v31, 0.0  ;;  %v3006_v61 = vpop.f32.mrb[21].mxu0  ;;  %v3951_v31 = vld [vmem:[%s9334_s2 + $0xb0] sm:$0xff] }
 0x30b   :  { %v3821_v48 = vmax.f32 %v3006_v61, 0.0  ;;  %7142 = vmatprep.subr.bf16.mxu1 %v7141_v21  ;;  %v9367_v21 = vld [vmem:[#allocation9_spill] sm:$0xff]  ;;  %v3975_v61 = vld [vmem:[%s9334_s2 + $0x170] sm:$0xff] }
 0x30c   :  { %7144 = vmatpush3.bf16.msra.mxu1 %v7143_v38 }
 0x30d   :  { %v7145_v59 = vpack.c.bf16 %v3822_v15, %v3821_v48  ;;  %v6706_v42 = vpop.f32.mrb[22].mxu0  ;;  %v3976_v15 = vld [vmem:[%s9334_s2 + $0x178] sm:$0xff] }
 0x30e   :  { %v3824_v11 = vmax.f32 %v6706_v42, 0.0  ;;  %v3016_v47 = vpop.f32.mrb[23].mxu0 }
 0x30f   :  { %v3823_v9 = vmax.f32 %v3016_v47, 0.0  ;;  %7146 = vmatprep.subr.bf16.mxu1 %v7145_v59 }
 0x310   :  { %7148 = vmatpush3.bf16.msra.mxu1 %v7147_v27  ;;  %v3945_v27 = vld [vmem:[%s9334_s2 + $0x80] sm:$0xff] }
 0x311   :  { %v7149_v43 = vpack.c.bf16 %v3824_v11, %v3823_v9  ;;  %v6709_v35 = vpop.f32.mrb[24].mxu0 }
 0x312   :  { %v3826_v41 = vmax.f32 %v6709_v35, 0.0  ;;  %v3026_v10 = vpop.f32.mrb[25].mxu0 }
 0x313   :  { %v3825_v54 = vmax.f32 %v3026_v10, 0.0  ;;  %7150 = vmatprep.subr.bf16.mxu1 %v7149_v43 }
 0x314   :  { %7152 = vmatpush3.bf16.msra.mxu1 %v7151_v12  ;;  %v3970_v12 = vld [vmem:[%s9334_s2 + $0x148] sm:$0xff] }
 0x315   :  { %v7153_v25 = vpack.c.bf16 %v3826_v41, %v3825_v54  ;;  %v6712_v52 = vpop.f32.mrb[26].mxu0  ;;  %v7276_v41 = vmov 0.0  }
 0x316   :  { %v3828_v55 = vmax.f32 %v6712_v52, 0.0  ;;  %v3036_v32 = vpop.f32.mrb[27].mxu0 }
 0x317   :  { %v3827_v39 = vmax.f32 %v3036_v32, 0.0  ;;  %7154 = vmatprep.subr.bf16.mxu1 %v7153_v25 }
 0x318   :  { %7156 = vmatpush3.bf16.msra.mxu1 %v7155_v62 }
 0x319   :  { %v7157_v38 = vpack.c.bf16 %v3828_v55, %v3827_v39 }
 0x31b   :  { %7158 = vmatprep.subr.bf16.mxu1 %v7157_v38 }
 0x31c   :  { %7160 = vmatpush3.bf16.msra.mxu1 %v7159_v0 }
 0x31d   :  { %7162 = vmatprep.subr.bf16.mxu1 %v8694_v33  ;;  %v3969_v33 = vld [vmem:[%s9334_s2 + $0x140] sm:$0xff] }
 0x320   :  { %7164 = vmatpush3.bf16.msra.mxu1 %v7163_v28 }
 0x321   :  { %7166 = vmatprep.subr.bf16.mxu1 %v8706_v46  ;;  %v3948_v46 = vld [vmem:[%s9334_s2 + $0x98] sm:$0xff] }
 0x324   :  { %7168 = vmatpush3.bf16.msra.mxu1 %v7167_v18  ;;  %v9365_v18 = vld [vmem:[#allocation8_spill] sm:$0xff] }
 0x325   :  { %7170 = vmatprep.subr.bf16.mxu1 %v8806_v34 }
 0x327   :  { %4642 = vmatmul.mubr.f32.vlgmr.msra.gmra.mrb[132].mxu1 %v3945_v27 }
 0x328   :  { %7172 = vmatpush3.bf16.msra.mxu1 %v8718_v57  ;;  %4646 = vmatprep.mubr.f32.mxu1 %v3970_v12 }
 0x329   :  { %7174 = vmatprep.subr.bf16.mxu1 %v8817_v53 }
 0x32b   :  { %4647 = vmatmul.mubr.f32.gmra.mrb[134].mxu1 %v3969_v33 }
 0x32c   :  { %7176 = vmatpush3.bf16.msra.mxu1 %v8730_v2  ;;  %4716 = vmatprep.mubr.f32.mxu1 %v3948_v46 }
 0x32d   :  { %7178 = vmatprep.subr.bf16.mxu1 %v8836_v1 }
 0x330   :  { %7180 = vmatpush3.bf16.msra.mxu1 %v8740_v14 }
 0x331   :  { %7182 = vmatprep.subr.bf16.mxu1 %v8854_v23 }
 0x334   :  { %7184 = vmatpush3.bf16.msra.mxu1 %v8751_v29 }
 0x335   :  { %7186 = vmatprep.subr.bf16.mxu1 %v8866_v58  ;;  %v3949_v58 = vld [vmem:[%s9334_s2 + $0xa0] sm:$0xff] }
 0x338   :  { %7188 = vmatpush3.bf16.msra.mxu1 %v8762_v49  ;;  %v3947_v49 = vld [vmem:[%s9334_s2 + $0x90] sm:$0xff] }
 0x339   :  { %7190 = vmatprep.subr.bf16.mxu1 %v8878_v51  ;;  %v9352_v51 = vld [vmem:[#allocation10_spill] sm:$0xff] }
 0x33a   :  { %v6039_v57 = vpop.f32.mrb[120].mxu1 }
 0x33b   :  { %v6040_v34 = vpop.f32.mrb[121].mxu1 }
 0x33c   :  { %v6041_v53 = vadd.f32 %v6040_v34, %v6039_v57  ;;  %7192 = vmatpush3.bf16.msra.mxu1 %v8773_v63  ;;  %v3972_v63 = vld [vmem:[%s9334_s2 + $0x158] sm:$0xff] }
 0x33d   :  { %7194 = vmatprep.subr.bf16.mxu1 %v8890_v4  ;;  %v3974_v4 = vld [vmem:[%s9334_s2 + $0x168] sm:$0xff] }
 0x33e   :  { %v4419_v2 = vadd.f32 %v6041_v53, %v9225_v17  ;;  %v6042_v14 = vpop.f32.mrb[122].mxu1 }
 0x33f   :  { %v6043_v1 = vpop.f32.mrb[123].mxu1 }
 0x340   :  { %v6044_v23 = vadd.f32 %v6043_v1, %v6042_v14  ;;  %7196 = vmatpush3.bf16.msra.mxu1 %v8784_v13  ;;  %v3971_v13 = vld [vmem:[%s9334_s2 + $0x150] sm:$0xff] }
 0x341   :  { %7198 = vmatprep.subr.bf16.mxu1 %v8902_v16  ;;  %v9353_v16 = vld [vmem:[#allocation2_spill] sm:$0xff] }
 0x342   :  { %v4424_v29 = vadd.f32 %v6044_v23, %v9228_v7  ;;  %v9366_v7 = vld [vmem:[#allocation17_spill] sm:$0xff] }
 0x344   :  { %7200 = vmatpush3.bf16.msra.mxu1 %v8795_v26  ;;  %v3950_v26 = vld [vmem:[%s9334_s2 + $0xa8] sm:$0xff] }
 0x345   :  { %7202 = vmatprep.subr.bf16.mxu1 %v9002_v8  ;;  %v9360_v8 = vld [vmem:[#allocation14_spill] sm:$0xff] }
 0x347   :  { %4717 = vmatmul.mubr.f32.vlgmr.msra.gmra.mrb[136].mxu1 %v3947_v49 }
 0x348   :  { %7204 = vmatpush3.bf16.msra.mxu1 %v8914_v40  ;;  %4721 = vmatprep.mubr.f32.mxu1 %v3972_v63  ;;  %v3973_v40 = vld [vmem:[%s9334_s2 + $0x160] sm:$0xff] }
 0x349   :  { %7206 = vmatprep.subr.bf16.mxu1 %v9013_v22  ;;  %v9361_v22 = vld [vmem:[#allocation6_spill] sm:$0xff] }
 0x34b   :  { %4722 = vmatmul.mubr.f32.gmra.mrb[138].mxu1 %v3971_v13 }
 0x34c   :  { %7208 = vmatpush3.bf16.msra.mxu1 %v8926_v45  ;;  %4791 = vmatprep.mubr.f32.mxu1 %v3950_v26  ;;  %v9354_v45 = vld [vmem:[#allocation11_spill] sm:$0xff] }
 0x34d   :  { %7210 = vmatprep.subr.bf16.mxu1 %v9032_v3  ;;  %v9362_v3 = vld [vmem:[#allocation15_spill] sm:$0xff] }
 0x350   :  { %7212 = vmatpush3.bf16.msra.mxu1 %v8936_v6  ;;  %v3952_v6 = vld [vmem:[%s9334_s2 + $0xb8] sm:$0xff] }
 0x351   :  { %7214 = vmatprep.subr.bf16.mxu1 %v9050_v19 }
 0x354   :  { %7216 = vmatpush3.bf16.msra.mxu1 %v8947_v36  ;;  %v9355_v36 = vld [vmem:[#allocation3_spill] sm:$0xff] }
 0x355   :  { %7218 = vmatprep.subr.bf16.mxu1 %v9062_v37 }
 0x358   :  { %7220 = vmatpush3.bf16.msra.mxu1 %v8958_v56  ;;  %v9356_v56 = vld [vmem:[#allocation12_spill] sm:$0xff] }
 0x359   :  { %7222 = vmatprep.subr.bf16.mxu1 %v9074_v60 }
 0x35c   :  { %7224 = vmatpush3.bf16.msra.mxu1 %v8969_v5  ;;  %v9357_v5 = vld [vmem:[#allocation4_spill] sm:$0xff] }
 0x35d   :  { %7226 = vmatprep.subr.bf16.mxu1 %v9086_v20  ;;  %v9363_v20 = vld [vmem:[#allocation7_spill] sm:$0xff] }
 0x360   :  { %7228 = vmatpush3.bf16.msra.mxu1 %v8980_v30  ;;  %v9358_v30 = vld [vmem:[#allocation13_spill] sm:$0xff] }
 0x361   :  { %7230 = vmatprep.subr.bf16.mxu1 %v9098_v44  ;;  %v9364_v44 = vld [vmem:[#allocation16_spill] sm:$0xff] }
 0x364   :  { %7232 = vmatpush3.bf16.msra.mxu1 %v8991_v50  ;;  %v9359_v50 = vld [vmem:[#allocation5_spill] sm:$0xff] }
 0x365   :  { %7234 = vmatprep.subr.bf16.mxu1 %v9352_v51 }
 0x367   :  { %4792 = vmatmul.mubr.f32.vlgmr.msra.gmra.mrb[140].mxu1 %v3949_v58 }
 0x368   :  { %7236 = vmatpush3.bf16.msra.mxu1 %v9353_v16  ;;  %4796 = vmatprep.mubr.f32.mxu1 %v3974_v4 }
 0x369   :  { %7238 = vmatprep.subr.bf16.mxu1 %v9354_v45 }
 0x36b   :  { %4797 = vmatmul.mubr.f32.gmra.mrb[142].mxu1 %v3973_v40 }
 0x36c   :  { %7240 = vmatpush3.bf16.msra.mxu1 %v9355_v36  ;;  %4866 = vmatprep.mubr.f32.mxu1 %v3952_v6 }
 0x36d   :  { %7242 = vmatprep.subr.bf16.mxu1 %v9356_v56 }
 0x370   :  { %7244 = vmatpush3.bf16.msra.mxu1 %v9357_v5 }
 0x371   :  { %7246 = vmatprep.subr.bf16.mxu1 %v9358_v30  ;;  %v7278_v30 = vmov 1.0  }
 0x374   :  { %7248 = vmatpush3.bf16.msra.mxu1 %v9359_v50  ;;  %v5021_v50 = vlaneseq }
 0x375   :  { %7250 = vmatprep.subr.bf16.mxu1 %v9360_v8 }
 0x376   :  { %v5022_v8 = vshrl.u32 %v5021_v50, 7 }
 0x378   :  { %7252 = vmatpush3.bf16.msra.mxu1 %v9361_v22 }
 0x379   :  { %7254 = vmatprep.subr.bf16.mxu1 %v9362_v3 }
 0x37a   :  { %v6077_v19 = vpop.f32.mrb[124].mxu1 }
 0x37b   :  { %v6078_v37 = vpop.f32.mrb[125].mxu1 }
 0x37c   :  { %v6079_v60 = vadd.f32 %v6078_v37, %v6077_v19  ;;  %7256 = vmatpush3.bf16.msra.mxu1 %v9363_v20  ;;  %v5023_v19 = vsub.s32 0, %v5022_v8 }
 0x37d   :  { %7258 = vmatprep.subr.bf16.mxu1 %v9364_v44 }
 0x37e   :  { %v4494_v62 = vadd.f32 %v6079_v60, %v4419_v2  ;;  %v6080_v0 = vpop.f32.mrb[126].mxu1 }
 0x37f   :  { %v6081_v28 = vpop.f32.mrb[127].mxu1 }
 0x380   :  { %v6082_v17 = vadd.f32 %v6081_v28, %v6080_v0  ;;  %7260 = vmatpush3.bf16.msra.mxu1 %v9365_v18 }
 0x381   :  { %7262 = vmatprep.subr.bf16.mxu1 %v9366_v7 }
 0x382   :  { %v4499_v24 = vadd.f32 %v6082_v17, %v4424_v29 }
 0x384   :  { %7264 = vmatpush3.bf16.msra.mxu1 %v9367_v21 }
 0x385   :  { %6863 = vmatprep.subr.mxu1 %v7276_v41 }
 0x387   :  { %4867 = vmatmul.mubr.f32.vlgmr.msra.gmra.mrb[144].mxu1 %v3951_v31 }
 0x388   :  { %4871 = vmatprep.mubr.f32.mxu1 %v3976_v15 }
 0x38b   :  { %4872 = vmatmul.mubr.f32.gmra.mrb[146].mxu1 %v3975_v61 }
 0x38c   :  { %6865 = vmatprep.mubr.msk.f32.mxu1 %vm7277_vm2, %v7276_v41 }
 0x3ba   :  { %v6115_v48 = vpop.f32.mrb[128].mxu1 }
 0x3bb   :  { %v6116_v59 = vpop.f32.mrb[129].mxu1 }
 0x3bc   :  { %v6117_v42 = vadd.f32 %v6116_v59, %v6115_v48 }
 0x3be   :  { %v4569_v11 = vadd.f32 %v6117_v42, %v4494_v62  ;;  %v6118_v47 = vpop.f32.mrb[130].mxu1 }
 0x3bf   :  { %v6119_v9 = vpop.f32.mrb[131].mxu1 }
 0x3c0   :  { %v6120_v43 = vadd.f32 %v6119_v9, %v6118_v47 }
 0x3c2   :  { %v4574_v35 = vadd.f32 %v6120_v43, %v4499_v24 }
 0x3fa   :  { %v6153_v10 = vpop.f32.mrb[132].mxu1 }
 0x3fb   :  { %v6154_v54 = vpop.f32.mrb[133].mxu1 }
 0x3fc   :  { %v6155_v25 = vadd.f32 %v6154_v54, %v6153_v10 }
 0x3fe   :  { %v4644_v52 = vadd.f32 %v6155_v25, %v4569_v11  ;;  %v6156_v55 = vpop.f32.mrb[134].mxu1 }
 0x3ff   :  { %v6157_v32 = vpop.f32.mrb[135].mxu1 }
 0x400   :  { %v6158_v39 = vadd.f32 %v6157_v32, %v6156_v55 }
 0x402   :  { %v4649_v38 = vadd.f32 %v6158_v39, %v4574_v35 }
 0x41a   :  { %v6191_v27 = vpop.f32.mrb[136].mxu1 }
 0x41b   :  { %v6192_v12 = vpop.f32.mrb[137].mxu1 }
 0x41c   :  { %v6193_v33 = vadd.f32 %v6192_v12, %v6191_v27 }
 0x41e   :  { %v4719_v46 = vadd.f32 %v6193_v33, %v4644_v52  ;;  %v6194_v57 = vpop.f32.mrb[138].mxu1 }
 0x41f   :  { %v6195_v34 = vpop.f32.mrb[139].mxu1 }
 0x420   :  { %v6196_v53 = vadd.f32 %v6195_v34, %v6194_v57 }
 0x422   :  { %v4724_v2 = vadd.f32 %v6196_v53, %v4649_v38 }
 0x43a   :  { %v6229_v14 = vpop.f32.mrb[140].mxu1 }
 0x43b   :  { %v6230_v1 = vpop.f32.mrb[141].mxu1 }
 0x43c   :  { %v6231_v23 = vadd.f32 %v6230_v1, %v6229_v14 }
 0x43e   :  { %v4794_v29 = vadd.f32 %v6231_v23, %v4719_v46  ;;  %v6232_v49 = vpop.f32.mrb[142].mxu1 }
 0x43f   :  { %v6233_v63 = vpop.f32.mrb[143].mxu1 }
 0x440   :  { %v6234_v13 = vadd.f32 %v6233_v63, %v6232_v49 }
 0x442   :  { %v4799_v26 = vadd.f32 %v6234_v13, %v4724_v2 }
 0x45a   :  { %v6267_v58 = vpop.f32.mrb[144].mxu1 }
 0x45b   :  { %v6268_v51 = vpop.f32.mrb[145].mxu1 }
 0x45c   :  { %v6269_v4 = vadd.f32 %v6268_v51, %v6267_v58 }
 0x45e   :  { %v4869_v16 = vadd.f32 %v6269_v4, %v4794_v29  ;;  %v6270_v40 = vpop.f32.mrb[146].mxu1 }
 0x45f   :  { %v6271_v45 = vpop.f32.mrb[147].mxu1 }
 0x460   :  { %v6272_v6 = vadd.f32 %v6271_v45, %v6270_v40  ;;  %6864 = vmatpush3.xpose.msra.mxu1 %v4869_v16  ;;  %v4950_v56 = vmul.f32 %v4869_v16, %v4869_v16 }
 0x461   :  { %6868 = vmatprep.subr.mxu1 %v7276_v41 }
 0x462   :  { %v4874_v36 = vadd.f32 %v6272_v6, %v4799_v26 }
 0x464   :  { %6866 = vmatmul.mubr.f32.vlgmr.msra.gmra.mrb[148].mxu1 %v4874_v36  ;;  %v4947_v5 = vmul.f32 %v4874_v36, %v4874_v36 }
 0x465   :  { %6869 = vmatpush3.xpose.msra.mxu1 %v4950_v56  ;;  %6870 = vmatprep.mubr.msk.f32.mxu1 %vm7277_vm2, %v7276_v41 }
 0x466   :  { %4948 = vadd.xlane.f32.xlu0 %v4947_v5 }
 0x468   :  { %6871 = vmatmul.mubr.f32.vlgmr.msra.gmra.mrb[150].mxu1 %v7278_v30 }
 0x4f3   :  { %v4949_v44 = vpop.xlane.xlu0 %4948 }
 0x537   :  { %v4943_v22 = vpop.f32.mrb[148].mxu1 }
 0x538   :  { %v6867_v3 = vpop.f32.mrb[149].mxu1  ;;  %v5026_v62 = vmul.f32 2.0, %v4943_v22 }
 0x53b   :  { %v5017_v37 = vpop.f32.mrb[150].mxu1 }
 0x53c   :  { %v5024_v60 = vrot.slane %v5017_v37, %v5023_v19  ;;  %v6872_v20 = vpop.f32.mrb[151].mxu1 }
 0x53e   :  { %v5025_v0 = vadd.f32 %v5024_v60, %v4949_v44 }
 0x540   :  { %v5027_v28 = vsub.f32 %v5025_v0, %v5026_v62 }
 0x542   :  { %v5028_v17 = vmax.f32 %v5027_v28, 0.0 }
 0x544   :  { %7274 = vrsqrt.f32 %v5028_v17  ;;  %vm5031_vm3 = vcmp.eq.f32.partialorder %v5028_v17, inf  ;;  %v5034_v24 = vand.u32 2147483648, %v5028_v17  ;;  %vm5033_vm4 = vcmp.eq.f32.partialorder %v5028_v17, 0.0 }
 0x54e   :  { %v7275_v18 = vpop.eup %7274 }
 0x54f   :  { %v5030_v7 = vmul.f32 %v7275_v18, %v5028_v17 }
 0x551   :  { %v5032_v21 = vsel %vm5031_vm3, %v5028_v17, %v5030_v7 }
 0x552   :  { %v5035_v31 = vsel %vm5033_vm4, %v5034_v24, %v5032_v21 }
 0x553   :  { %v5036_v15 = vsub.f32 0.0, %v5035_v31 }
 0x555   :  { %5038 = vst.msk [vmem:[%s9335_s3] sm:$0x3f] %vm5037_vm5, %v5036_v15 }

</bundles_post_ra>
